<compile_context>
chip_gen: v5e
topology: v5e:2x2
jax: 0.10.0
libtpu: 0.0.40
codegen_flags: <defaults>
</compile_context>

<pallas_src>
import math
from functools import partial

import jax
import jax.numpy as jnp
from jax.experimental import pallas as pl
from jax.experimental.pallas import tpu as pltpu

_LN_EPS = 1e-5
_LANE = 128


def _round_up(x, m):
    return (x + m - 1) // m * m


def _pad_last(x, target):
    pad = target - x.shape[-1]
    if pad == 0:
        return x
    return jnp.pad(x, [(0, 0)] * (x.ndim - 1) + [(0, pad)])


# ----------------------------------------------------------------------------------
# Fused Pallas kernel: entire TwoWayAttentionBlock3D forward for one batch block
# ----------------------------------------------------------------------------------
def _two_way_block_kernel(
        q_ref, k_ref,
        sa_wqkv, sa_bqkv, sa_wo, sa_bo,
        t2i_wqkv, t2i_bqkv, t2i_wo, t2i_bo,
        i2t_wqkv, i2t_bqkv, i2t_wo, i2t_bo,
        mlp_w1, mlp_b1, mlp_w2, mlp_b2,
        gamma_ref, beta_ref,
        q_out_ref, k_out_ref,
        *, num_heads, d_self, d_cross, e_valid):
    f32, bf16 = jnp.float32, jnp.bfloat16
    bb, n_q, e_pad = q_ref.shape
    n_k = k_ref.shape[1]
    mq, mk = bb * n_q, bb * n_k

    # Residual streams kept as lane-dense 2-D (rows = batch_block * tokens) f32 slabs so every
    # projection / MLP matmul is one big (M, 128k) x (128k, 128k) MXU contraction.
    queries = q_ref[...].astype(f32).reshape(mq, e_pad)
    keys = k_ref[...].astype(f32).reshape(mk, e_pad)

    gammas, betas = gamma_ref[...], beta_ref[...]           # (4, E_pad) f32
    needs_mask = (e_valid != e_pad)
    inv_e = 1.0 / float(e_valid)
    if needs_mask:
        lane = jax.lax.broadcasted_iota(jnp.int32, (1, e_pad), 1)
        lane_mask = (lane < e_valid).astype(f32)

    def add_ln(x, res, idx):
        # residual add + LayerNorm (PyTorch eps=1e-5) over the true e_valid lanes
        y = x + res
        if needs_mask:
            y = y * lane_mask            # keep zero-padded feature lanes exactly zero
        mu = jnp.sum(y, axis=-1, keepdims=True) * inv_e
        yc = y - mu
        if needs_mask:
            yc = yc * lane_mask
        var = jnp.sum(yc * yc, axis=-1, keepdims=True) * inv_e
        return yc * jax.lax.rsqrt(var + _LN_EPS) * gammas[idx:idx + 1] + betas[idx:idx + 1]

    def mha(xq, xk, xv, nq, nk, wqkv_r, bqkv_r, wo_r, bo_r, d_int):
        H = num_heads
        dh = d_int // H
        d_pad = wo_r.shape[0]
        scale = 1.0 / math.sqrt(dh)

        def proj(x2d, idx):
            # merged lane-dense QKV projection: one (M, E_pad) x (E_pad, D_pad) matmul
            y = jnp.dot(x2d.astype(bf16), wqkv_r[idx], preferred_element_type=f32)
            return y + bqkv_r[idx]                                   # (M, D_pad) f32

        qp = proj(xq, 0).reshape(bb, nq, d_pad)
        kp = proj(xk, 1).reshape(bb, nk, d_pad)
        vp = proj(xv, 2).reshape(bb, nk, d_pad).astype(bf16)

        # Per-head score / softmax / PV: the dh-wide contraction is inherent to MHA; the head
        # slices are cheap static lane slices of the lane-dense projected slabs.
        head_outs = []
        for h in range(H):
            sl = slice(h * dh, (h + 1) * dh)
            s = jax.lax.dot_general(
                qp[:, :, sl].astype(bf16), kp[:, :, sl].astype(bf16),
                dimension_numbers=(((2,), (2,)), ((0,), (0,))),
                preferred_element_type=f32) * scale                  # (bb, nq, nk)
            s = s - jnp.max(s, axis=-1, keepdims=True)
            p = jnp.exp(s)
            p = p * pl.reciprocal(jnp.sum(p, axis=-1, keepdims=True), approx=True)
            head_outs.append(jax.lax.dot_general(
                p.astype(bf16), vp[:, :, sl],
                dimension_numbers=(((2,), (1,)), ((0,), (0,))),
                preferred_element_type=f32))                         # (bb, nq, dh)
        if d_pad > d_int:
            head_outs.append(jnp.zeros((bb, nq, d_pad - d_int), f32))
        # concat heads in the lane dim -> ONE merged out-projection (no per-head proj + sum)
        o = jnp.concatenate(head_outs, axis=-1).reshape(bb * nq, d_pad)
        return jnp.dot(o.astype(bf16), wo_r[...], preferred_element_type=f32) + bo_r[...]

    # (1) self-attention on sparse tokens   (+ residual, norm1)
    attn = mha(queries, queries, queries, n_q, n_q, sa_wqkv, sa_bqkv, sa_wo, sa_bo, d_self)
    queries = add_ln(queries, attn, 0)

    # (2) cross attention: tokens -> image  (+ residual, norm2)
    attn = mha(queries, keys, keys, n_q, n_k, t2i_wqkv, t2i_bqkv, t2i_wo, t2i_bo, d_cross)
    queries = add_ln(queries, attn, 1)

    # (3) MLPBlock3D: lin2(ReLU(lin1(x)))   (+ residual, norm3)
    h = jnp.dot(queries.astype(bf16), mlp_w1[...], preferred_element_type=f32) + mlp_b1[...]
    h = jnp.maximum(h, 0.0)
    mlp_out = jnp.dot(h.astype(bf16), mlp_w2[...], preferred_element_type=f32) + mlp_b2[...]
    queries = add_ln(queries, mlp_out, 2)

    # (4) cross attention: image -> tokens  (+ residual, norm4)
    attn = mha(keys, queries, queries, n_k, n_q, i2t_wqkv, i2t_bqkv, i2t_wo, i2t_bo, d_cross)
    keys = add_ln(keys, attn, 3)

    q_out_ref[...] = queries.reshape(bb, n_q, e_pad)
    k_out_ref[...] = keys.reshape(bb, n_k, e_pad)


# ----------------------------------------------------------------------------------
# Parameter preparation: lane-dense, merged-head weight layouts (review items 1-3)
# ----------------------------------------------------------------------------------
def prepare_kernel_params(params, num_heads, e_pad):
    bf16, f32 = jnp.bfloat16, jnp.float32
    E = params["norm1"]["gamma"].shape[-1]

    def prep_attn(p):
        E_, D = p["wq"].shape
        d_pad = _round_up(D, _LANE)

        def pw(w):          # (E, D) -> (E_pad, D_pad) bf16, zero padded
            return jnp.pad(w, ((0, e_pad - E_), (0, d_pad - D))).astype(bf16)

        def pb(b):          # (1, D) -> (1, D_pad) f32
            return jnp.pad(b, ((0, 0), (0, d_pad - D))).astype(f32)

        wqkv = jnp.stack([pw(p["wq"]), pw(p["wk"]), pw(p["wv"])])      # (3, E_pad, D_pad)
        bqkv = jnp.stack([pb(p["bq"]), pb(p["bk"]), pb(p["bv"])])      # (3, 1, D_pad)
        wo = jnp.pad(p["wo"], ((0, d_pad - D), (0, e_pad - E_))).astype(bf16)   # (D_pad, E_pad)
        bo = jnp.pad(p["bo"], ((0, 0), (0, e_pad - E_))).astype(f32)            # (1, E_pad)
        return (wqkv, bqkv, wo, bo), D, d_pad

    sa, d_self, dp_self = prep_attn(params["self_attn"])
    t2i, d_cross, dp_cross = prep_attn(params["cross_t2i"])
    i2t, d_cross2, _ = prep_attn(params["cross_i2t"])
    assert d_cross == d_cross2
    assert d_self % num_heads == 0 and d_cross % num_heads == 0

    Hm = params["mlp"]["w1"].shape[1]
    hm_pad = _round_up(Hm, _LANE)
    mlp_w1 = jnp.pad(params["mlp"]["w1"], ((0, e_pad - E), (0, hm_pad - Hm))).astype(bf16)
    mlp_b1 = jnp.pad(params["mlp"]["b1"], ((0, 0), (0, hm_pad - Hm))).astype(f32)
    mlp_w2 = jnp.pad(params["mlp"]["w2"], ((0, hm_pad - Hm), (0, e_pad - E))).astype(bf16)
    mlp_b2 = jnp.pad(params["mlp"]["b2"], ((0, 0), (0, e_pad - E))).astype(f32)

    gammas = jnp.concatenate(
        [jnp.pad(params[f"norm{i}"]["gamma"], ((0, 0), (0, e_pad - E))) for i in (1, 2, 3, 4)],
        axis=0).astype(f32)                                            # (4, E_pad)
    betas = jnp.concatenate(
        [jnp.pad(params[f"norm{i}"]["beta"], ((0, 0), (0, e_pad - E))) for i in (1, 2, 3, 4)],
        axis=0).astype(f32)                                            # (4, E_pad)

    weight_args = list(sa) + list(t2i) + list(i2t) + [mlp_w1, mlp_b1, mlp_w2, mlp_b2,
                                                      gammas, betas]
    dims = dict(d_self=d_self, d_cross=d_cross,
                d_pad_max=max(dp_self, dp_cross), hm_pad=hm_pad)
    return weight_args, dims


# ----------------------------------------------------------------------------------
# VMEM budget derived from actual sizes (review item 8)
# ----------------------------------------------------------------------------------
def _physical_vmem_bytes():
    # best-effort query; fall back to the smallest generation (v7x: 64 MiB per TensorCore)
    try:
        return int(pltpu.get_tpu_info().vmem_capacity_bytes)
    except Exception:
        return 64 << 20


def _derive_vmem_limit(weight_args, b_blk, nq, nk, e_pad, d_pad_max, hm_pad):
    w_bytes = sum(int(a.size) * a.dtype.itemsize for a in weight_args)
    tok_rows = b_blk * (nq + nk)
    io_bytes = 2 * tok_rows * e_pad * (2 + 4)            # double-buffered bf16 in + f32 out tiles
    act_bytes = (tok_rows * e_pad * 4 * 6                # residual / attn / mlp f32 slabs
                 + tok_rows * d_pad_max * 4 * 3          # merged q/k/v projections
                 + b_blk * max(nq, nk) ** 2 * 4 * 3      # score / prob tiles
                 + b_blk * nq * hm_pad * 4)              # mlp hidden
    need = 2 * w_bytes + io_bytes + act_bytes            # weights assumed double-buffered
    cap = int(_physical_vmem_bytes() * 0.8)              # ~100 MiB on v5e/v6e, ~51 MiB on v7x
    return int(min(max(2 * need, 32 << 20), cap))


# ----------------------------------------------------------------------------------
# Wrapper: one fused pallas_call over batch blocks
# ----------------------------------------------------------------------------------
def two_way_attention_block(queries, keys, query_pe, key_pe, text_embed, params, num_heads,
                            batch_block=None):
    """Pallas implementation of TwoWayAttentionBlock3D.forward.

    query_pe / key_pe must be None (the only well-defined PyTorch branch);
    text_embed is accepted but unused, as in the reference forward.
    """
    assert query_pe is None and key_pe is None, "only the PE-less PyTorch branch is supported"
    del text_embed

    B, Nq, E = queries.shape
    Nk = keys.shape[1]
    assert Nq % 8 == 0 and Nk % 8 == 0, "token counts must be multiples of 8 (sublane aligned)"
    e_pad = _round_up(E, _LANE)

    weight_args, dims = prepare_kernel_params(params, num_heads, e_pad)

    # Batch blocking (review item 5): fold several batch elements into the M dim of every
    # projection / MLP matmul and amortize the per-grid-step pipeline overhead.
    if batch_block is None:
        batch_block = max(1, -(-128 // Nq))          # aim for >=128 rows in the q-side matmuls
    b_blk = max(1, min(batch_block, B))
    n_blocks = pl.cdiv(B, b_blk)
    B_pad = n_blocks * b_blk

    def prep_tokens(x):
        x = _pad_last(x.astype(jnp.float32), e_pad)
        if B_pad != B:
            x = jnp.pad(x, ((0, B_pad - B), (0, 0), (0, 0)))
        return x.astype(jnp.bfloat16)                # halve HBM->VMEM token DMA (review item 7)

    q_in, k_in = prep_tokens(queries), prep_tokens(keys)

    def tok_spec(n):
        return pl.BlockSpec((b_blk, n, e_pad), lambda b: (b, 0, 0))

    def full_spec(arr):
        # Weights: full-array block, constant index map -> resident across the batch grid.
        return pl.BlockSpec(arr.shape, lambda b, _nd=arr.ndim: (0,) * _nd)

    kernel = partial(_two_way_block_kernel, num_heads=num_heads,
                     d_self=dims["d_self"], d_cross=dims["d_cross"], e_valid=E)

    vmem_limit = _derive_vmem_limit(weight_args, b_blk, Nq, Nk, e_pad,
                                    dims["d_pad_max"], dims["hm_pad"])

    q_out, k_out = pl.pallas_call(
        kernel,
        grid=(n_blocks,),
        in_specs=[tok_spec(Nq), tok_spec(Nk)] + [full_spec(a) for a in weight_args],
        out_specs=(tok_spec(Nq), tok_spec(Nk)),
        out_shape=(jax.ShapeDtypeStruct((B_pad, Nq, e_pad), jnp.float32),
                   jax.ShapeDtypeStruct((B_pad, Nk, e_pad), jnp.float32)),
        compiler_params=pltpu.CompilerParams(
            dimension_semantics=("parallel",),
            vmem_limit_bytes=vmem_limit),
    )(q_in, k_in, *weight_args)

    if B_pad != B or e_pad != E:
        # At production E (a multiple of 128) and aligned B this slice disappears entirely.
        q_out = q_out[:B, :, :E]
        k_out = k_out[:B, :, :E]
    return q_out, k_out


# ----------------------------------------------------------------------------------
# Deterministic parameter init (PyTorch-style layout: W as (in_features, out_features))
# ----------------------------------------------------------------------------------
def _init_linear(key, fan_in, fan_out):
    k1, k2 = jax.random.split(key)
    w = jax.random.normal(k1, (fan_in, fan_out), jnp.float32) / math.sqrt(fan_in)
    b = 0.01 * jax.random.normal(k2, (1, fan_out), jnp.float32)
    return w, b


def _init_attention(key, embed_dim, downsample_rate):
    D = embed_dim // downsample_rate
    ks = jax.random.split(key, 4)
    wq, bq = _init_linear(ks[0], embed_dim, D)
    wk, bk = _init_linear(ks[1], embed_dim, D)
    wv, bv = _init_linear(ks[2], embed_dim, D)
    wo, bo = _init_linear(ks[3], D, embed_dim)
    return dict(wq=wq, bq=bq, wk=wk, bk=bk, wv=wv, bv=bv, wo=wo, bo=bo)


def _init_layernorm(key, embed_dim):
    k1, k2 = jax.random.split(key)
    gamma = 1.0 + 0.1 * jax.random.normal(k1, (1, embed_dim), jnp.float32)
    beta = 0.1 * jax.random.normal(k2, (1, embed_dim), jnp.float32)
    return dict(gamma=gamma, beta=beta)


def init_params(key, embed_dim, mlp_dim, attention_downsample_rate=2):
    ks = jax.random.split(key, 8)
    k_mlp1, k_mlp2 = jax.random.split(ks[7])
    w1, b1 = _init_linear(k_mlp1, embed_dim, mlp_dim)
    w2, b2 = _init_linear(k_mlp2, mlp_dim, embed_dim)
    return dict(
        self_attn=_init_attention(ks[0], embed_dim, 1),
        cross_t2i=_init_attention(ks[1], embed_dim, attention_downsample_rate),
        cross_i2t=_init_attention(ks[2], embed_dim, attention_downsample_rate),
        norm1=_init_layernorm(ks[3], embed_dim),
        norm2=_init_layernorm(ks[4], embed_dim),
        norm3=_init_layernorm(ks[5], embed_dim),
        norm4=_init_layernorm(ks[6], embed_dim),
        mlp=dict(w1=w1, b1=b1, w2=w2, b2=b2),
    )


# ----------------------------------------------------------------------------------
# Pure-JAX fp32 reference (mirrors the PyTorch forward) for validation
# ----------------------------------------------------------------------------------
def _ref_attention(q, k, v, p, num_heads):
    qp = q @ p["wq"] + p["bq"]
    kp = k @ p["wk"] + p["bk"]
    vp = v @ p["wv"] + p["bv"]
    B, Nq, D = qp.shape
    Nk = kp.shape[1]
    dh = D // num_heads
    qh = qp.reshape(B, Nq, num_heads, dh).transpose(0, 2, 1, 3)
    kh = kp.reshape(B, Nk, num_heads, dh).transpose(0, 2, 1, 3)
    vh = vp.reshape(B, Nk, num_heads, dh).transpose(0, 2, 1, 3)
    attn = (qh @ kh.transpose(0, 1, 3, 2)) / math.sqrt(dh)
    attn = jax.nn.softmax(attn, axis=-1)
    out = (attn @ vh).transpose(0, 2, 1, 3).reshape(B, Nq, D)
    return out @ p["wo"] + p["bo"]


def _ref_add_ln(x, res, ln):
    x = x + res
    mu = jnp.mean(x, axis=-1, keepdims=True)
    var = jnp.mean((x - mu) ** 2, axis=-1, keepdims=True)
    return (x - mu) / jnp.sqrt(var + _LN_EPS) * ln["gamma"] + ln["beta"]


def _ref_block(queries, keys, params, num_heads):
    attn_out = _ref_attention(queries, queries, queries, params["self_attn"], num_heads)
    queries = _ref_add_ln(queries, attn_out, params["norm1"])
    attn_out = _ref_attention(queries, keys, keys, params["cross_t2i"], num_heads)
    queries = _ref_add_ln(queries, attn_out, params["norm2"])
    h = jnp.maximum(queries @ params["mlp"]["w1"] + params["mlp"]["b1"], 0.0)
    mlp_out = h @ params["mlp"]["w2"] + params["mlp"]["b2"]
    queries = _ref_add_ln(queries, mlp_out, params["norm3"])
    attn_out = _ref_attention(keys, queries, queries, params["cross_i2t"], num_heads)
    keys = _ref_add_ln(keys, attn_out, params["norm4"])
    return queries, keys


# ----------------------------------------------------------------------------------
if __name__ == "__main__":
    EMBED_DIM = 32
    NUM_HEADS = 4
    MLP_DIM = 64
    B, NQ, NK = 2, 16, 32

    root = jax.random.PRNGKey(0)
    k_params, k_q, k_k, k_t = jax.random.split(root, 4)

    params = init_params(k_params, EMBED_DIM, MLP_DIM, attention_downsample_rate=2)
    queries = jax.random.normal(k_q, (B, NQ, EMBED_DIM), jnp.float32)    # sparse tokens
    keys = jax.random.normal(k_k, (B, NK, EMBED_DIM), jnp.float32)       # dense (image) tokens
    text_embed = jax.random.normal(k_t, (B, 1, EMBED_DIM), jnp.float32)  # unused by forward

    q_out, k_out = two_way_attention_block(queries, keys, None, None, text_embed,
                                           params, NUM_HEADS)
    jax.block_until_ready((q_out, k_out))

    q_ref, k_ref = _ref_block(queries, keys, params, NUM_HEADS)
    assert q_out.shape == (B, NQ, EMBED_DIM) and k_out.shape == (B, NK, EMBED_DIM)
    # bf16 MXU operands + bf16 token DMA + approx-reciprocal softmax -> bf16-level tolerance
    assert jnp.allclose(q_out, q_ref, atol=5e-2, rtol=5e-2), "queries mismatch"
    assert jnp.allclose(k_out, k_ref, atol=5e-2, rtol=5e-2), "keys mismatch"

    print("KERNEL_OK")
</pallas_src>

<mosaic_0001>
module attributes {stable_mosaic.version = 11 : i64} {
  func.func @_two_way_block_kernel(%arg0: i32, %arg1: memref<2x16x128xbf16, #tpu.memory_space<vmem>>, %arg2: memref<2x32x128xbf16, #tpu.memory_space<vmem>>, %arg3: memref<3x128x128xbf16, #tpu.memory_space<vmem>>, %arg4: memref<3x1x128xf32, #tpu.memory_space<vmem>>, %arg5: memref<128x128xbf16, #tpu.memory_space<vmem>>, %arg6: memref<1x128xf32, #tpu.memory_space<vmem>>, %arg7: memref<3x128x128xbf16, #tpu.memory_space<vmem>>, %arg8: memref<3x1x128xf32, #tpu.memory_space<vmem>>, %arg9: memref<128x128xbf16, #tpu.memory_space<vmem>>, %arg10: memref<1x128xf32, #tpu.memory_space<vmem>>, %arg11: memref<3x128x128xbf16, #tpu.memory_space<vmem>>, %arg12: memref<3x1x128xf32, #tpu.memory_space<vmem>>, %arg13: memref<128x128xbf16, #tpu.memory_space<vmem>>, %arg14: memref<1x128xf32, #tpu.memory_space<vmem>>, %arg15: memref<128x128xbf16, #tpu.memory_space<vmem>>, %arg16: memref<1x128xf32, #tpu.memory_space<vmem>>, %arg17: memref<128x128xbf16, #tpu.memory_space<vmem>>, %arg18: memref<1x128xf32, #tpu.memory_space<vmem>>, %arg19: memref<4x128xf32, #tpu.memory_space<vmem>>, %arg20: memref<4x128xf32, #tpu.memory_space<vmem>>, %arg21: memref<2x16x128xf32, #tpu.memory_space<vmem>>, %arg22: memref<2x32x128xf32, #tpu.memory_space<vmem>>) attributes {dimension_semantics = [#tpu.dimension_semantics<parallel>], iteration_bounds = array<i64: 1>, scalar_prefetch = 0 : i64, scratch_operands = 0 : i64, tpu.core_type = #tpu.core_type<tc>, window_params = [{transform_indices = @transform_0, window_bounds = array<i64: 2, 16, 128>}, {transform_indices = @transform_1, window_bounds = array<i64: 2, 32, 128>}, {pipeline_mode = #tpu.pipeline_mode<synchronous>, transform_indices = @transform_2, window_bounds = array<i64: 3, 128, 128>}, {pipeline_mode = #tpu.pipeline_mode<synchronous>, transform_indices = @transform_3, window_bounds = array<i64: 3, 1, 128>}, {pipeline_mode = #tpu.pipeline_mode<synchronous>, transform_indices = @transform_4, window_bounds = array<i64: 128, 128>}, {pipeline_mode = #tpu.pipeline_mode<synchronous>, transform_indices = @transform_5, window_bounds = array<i64: 1, 128>}, {pipeline_mode = #tpu.pipeline_mode<synchronous>, transform_indices = @transform_6, window_bounds = array<i64: 3, 128, 128>}, {pipeline_mode = #tpu.pipeline_mode<synchronous>, transform_indices = @transform_7, window_bounds = array<i64: 3, 1, 128>}, {pipeline_mode = #tpu.pipeline_mode<synchronous>, transform_indices = @transform_8, window_bounds = array<i64: 128, 128>}, {pipeline_mode = #tpu.pipeline_mode<synchronous>, transform_indices = @transform_9, window_bounds = array<i64: 1, 128>}, {pipeline_mode = #tpu.pipeline_mode<synchronous>, transform_indices = @transform_10, window_bounds = array<i64: 3, 128, 128>}, {pipeline_mode = #tpu.pipeline_mode<synchronous>, transform_indices = @transform_11, window_bounds = array<i64: 3, 1, 128>}, {pipeline_mode = #tpu.pipeline_mode<synchronous>, transform_indices = @transform_12, window_bounds = array<i64: 128, 128>}, {pipeline_mode = #tpu.pipeline_mode<synchronous>, transform_indices = @transform_13, window_bounds = array<i64: 1, 128>}, {pipeline_mode = #tpu.pipeline_mode<synchronous>, transform_indices = @transform_14, window_bounds = array<i64: 128, 128>}, {pipeline_mode = #tpu.pipeline_mode<synchronous>, transform_indices = @transform_15, window_bounds = array<i64: 1, 128>}, {pipeline_mode = #tpu.pipeline_mode<synchronous>, transform_indices = @transform_16, window_bounds = array<i64: 128, 128>}, {pipeline_mode = #tpu.pipeline_mode<synchronous>, transform_indices = @transform_17, window_bounds = array<i64: 1, 128>}, {pipeline_mode = #tpu.pipeline_mode<synchronous>, transform_indices = @transform_18, window_bounds = array<i64: 4, 128>}, {pipeline_mode = #tpu.pipeline_mode<synchronous>, transform_indices = @transform_19, window_bounds = array<i64: 4, 128>}, {transform_indices = @transform_20, window_bounds = array<i64: 2, 16, 128>}, {transform_indices = @transform_21, window_bounds = array<i64: 2, 32, 128>}]} {
    %c0 = arith.constant 0 : index
    %c0_0 = arith.constant 0 : index
    %c0_1 = arith.constant 0 : index
    %0 = vector.load %arg1[%c0, %c0_0, %c0_1] : memref<2x16x128xbf16, #tpu.memory_space<vmem>>, vector<2x16x128xbf16>
    %1 = arith.extf %0 : vector<2x16x128xbf16> to vector<2x16x128xf32>
    %2 = vector.shape_cast %1 : vector<2x16x128xf32> to vector<32x128xf32>
    %c0_2 = arith.constant 0 : index
    %c0_3 = arith.constant 0 : index
    %c0_4 = arith.constant 0 : index
    %3 = vector.load %arg2[%c0_2, %c0_3, %c0_4] : memref<2x32x128xbf16, #tpu.memory_space<vmem>>, vector<2x32x128xbf16>
    %4 = arith.extf %3 : vector<2x32x128xbf16> to vector<2x32x128xf32>
    %5 = vector.shape_cast %4 : vector<2x32x128xf32> to vector<64x128xf32>
    %c0_5 = arith.constant 0 : index
    %c0_6 = arith.constant 0 : index
    %6 = vector.load %arg19[%c0_5, %c0_6] : memref<4x128xf32, #tpu.memory_space<vmem>>, vector<4x128xf32>
    %c0_7 = arith.constant 0 : index
    %c0_8 = arith.constant 0 : index
    %7 = vector.load %arg20[%c0_7, %c0_8] : memref<4x128xf32, #tpu.memory_space<vmem>>, vector<4x128xf32>
    %8 = tpu.iota {dimensions = array<i32: 1>} : vector<1x128xi32>
    %c32_i32 = arith.constant 32 : i32
    %9 = vector.broadcast %c32_i32 : i32 to vector<1x128xi32>
    %10 = arith.cmpi slt, %8, %9 : vector<1x128xi32>
    %11 = arith.extui %10 : vector<1x128xi1> to vector<1x128xi32>
    %12 = arith.sitofp %11 : vector<1x128xi32> to vector<1x128xf32>
    %13 = arith.truncf %2 : vector<32x128xf32> to vector<32x128xbf16>
    %c0_9 = arith.constant 0 : index
    %c0_10 = arith.constant 0 : index
    %c0_11 = arith.constant 0 : index
    %14 = vector.load %arg3[%c0_9, %c0_10, %c0_11] : memref<3x128x128xbf16, #tpu.memory_space<vmem>>, vector<1x128x128xbf16>
    %15 = vector.shape_cast %14 : vector<1x128x128xbf16> to vector<128x128xbf16>
    %cst = arith.constant dense<0.000000e+00> : vector<32x128xf32>
    %16 = tpu.matmul %13, %15, %cst {dimension_numbers = #tpu.dot_dimension_numbers<[1], [0], [0], [1], [0, 0, 1, 1], [], []>} : vector<32x128xbf16>, vector<128x128xbf16>, vector<32x128xf32> -> vector<32x128xf32>
    %c0_12 = arith.constant 0 : index
    %c0_13 = arith.constant 0 : index
    %c0_14 = arith.constant 0 : index
    %17 = vector.load %arg4[%c0_12, %c0_13, %c0_14] : memref<3x1x128xf32, #tpu.memory_space<vmem>>, vector<1x1x128xf32>
    %18 = vector.shape_cast %17 : vector<1x1x128xf32> to vector<1x128xf32>
    %19 = vector.broadcast %18 : vector<1x128xf32> to vector<32x128xf32>
    %20 = arith.addf %16, %19 : vector<32x128xf32>
    %21 = vector.shape_cast %20 : vector<32x128xf32> to vector<2x16x128xf32>
    %22 = arith.truncf %2 : vector<32x128xf32> to vector<32x128xbf16>
    %c1 = arith.constant 1 : index
    %c0_15 = arith.constant 0 : index
    %c0_16 = arith.constant 0 : index
    %23 = vector.load %arg3[%c1, %c0_15, %c0_16] : memref<3x128x128xbf16, #tpu.memory_space<vmem>>, vector<1x128x128xbf16>
    %24 = vector.shape_cast %23 : vector<1x128x128xbf16> to vector<128x128xbf16>
    %cst_17 = arith.constant dense<0.000000e+00> : vector<32x128xf32>
    %25 = tpu.matmul %22, %24, %cst_17 {dimension_numbers = #tpu.dot_dimension_numbers<[1], [0], [0], [1], [0, 0, 1, 1], [], []>} : vector<32x128xbf16>, vector<128x128xbf16>, vector<32x128xf32> -> vector<32x128xf32>
    %c1_18 = arith.constant 1 : index
    %c0_19 = arith.constant 0 : index
    %c0_20 = arith.constant 0 : index
    %26 = vector.load %arg4[%c1_18, %c0_19, %c0_20] : memref<3x1x128xf32, #tpu.memory_space<vmem>>, vector<1x1x128xf32>
    %27 = vector.shape_cast %26 : vector<1x1x128xf32> to vector<1x128xf32>
    %28 = vector.broadcast %27 : vector<1x128xf32> to vector<32x128xf32>
    %29 = arith.addf %25, %28 : vector<32x128xf32>
    %30 = vector.shape_cast %29 : vector<32x128xf32> to vector<2x16x128xf32>
    %31 = arith.truncf %2 : vector<32x128xf32> to vector<32x128xbf16>
    %c2 = arith.constant 2 : index
    %c0_21 = arith.constant 0 : index
    %c0_22 = arith.constant 0 : index
    %32 = vector.load %arg3[%c2, %c0_21, %c0_22] : memref<3x128x128xbf16, #tpu.memory_space<vmem>>, vector<1x128x128xbf16>
    %33 = vector.shape_cast %32 : vector<1x128x128xbf16> to vector<128x128xbf16>
    %cst_23 = arith.constant dense<0.000000e+00> : vector<32x128xf32>
    %34 = tpu.matmul %31, %33, %cst_23 {dimension_numbers = #tpu.dot_dimension_numbers<[1], [0], [0], [1], [0, 0, 1, 1], [], []>} : vector<32x128xbf16>, vector<128x128xbf16>, vector<32x128xf32> -> vector<32x128xf32>
    %c2_24 = arith.constant 2 : index
    %c0_25 = arith.constant 0 : index
    %c0_26 = arith.constant 0 : index
    %35 = vector.load %arg4[%c2_24, %c0_25, %c0_26] : memref<3x1x128xf32, #tpu.memory_space<vmem>>, vector<1x1x128xf32>
    %36 = vector.shape_cast %35 : vector<1x1x128xf32> to vector<1x128xf32>
    %37 = vector.broadcast %36 : vector<1x128xf32> to vector<32x128xf32>
    %38 = arith.addf %34, %37 : vector<32x128xf32>
    %39 = vector.shape_cast %38 : vector<32x128xf32> to vector<2x16x128xf32>
    %40 = arith.truncf %39 : vector<2x16x128xf32> to vector<2x16x128xbf16>
    %41 = vector.extract_strided_slice %21 {offsets = [0, 0, 0], sizes = [2, 16, 8], strides = [1, 1, 1]} : vector<2x16x128xf32> to vector<2x16x8xf32>
    %42 = arith.truncf %41 : vector<2x16x8xf32> to vector<2x16x8xbf16>
    %43 = vector.extract_strided_slice %30 {offsets = [0, 0, 0], sizes = [2, 16, 8], strides = [1, 1, 1]} : vector<2x16x128xf32> to vector<2x16x8xf32>
    %44 = arith.truncf %43 : vector<2x16x8xf32> to vector<2x16x8xbf16>
    %cst_27 = arith.constant dense<0.000000e+00> : vector<2x16x16xf32>
    %45 = tpu.matmul %42, %44, %cst_27 {dimension_numbers = #tpu.dot_dimension_numbers<[2], [2], [1], [1], [0, 0, 0, 1, 1, 1], [0], [0]>} : vector<2x16x8xbf16>, vector<2x16x8xbf16>, vector<2x16x16xf32> -> vector<2x16x16xf32>
    %cst_28 = arith.constant 0.353553385 : f32
    %46 = vector.broadcast %cst_28 : f32 to vector<2x16x16xf32>
    %47 = arith.mulf %45, %46 : vector<2x16x16xf32>
    %cst_29 = arith.constant dense<0xFF800000> : vector<2x16xf32>
    %48 = vector.multi_reduction <maximumf>, %47, %cst_29 [2] : vector<2x16x16xf32> to vector<2x16xf32>
    %49 = vector.shape_cast %48 : vector<2x16xf32> to vector<2x16x1xf32>
    %50 = vector.broadcast %49 : vector<2x16x1xf32> to vector<2x16x16xf32>
    %51 = arith.subf %47, %50 : vector<2x16x16xf32>
    %52 = math.exp %51 : vector<2x16x16xf32>
    %cst_30 = arith.constant dense<0.000000e+00> : vector<2x16xf32>
    %53 = vector.multi_reduction <add>, %52, %cst_30 [2] : vector<2x16x16xf32> to vector<2x16xf32>
    %54 = vector.shape_cast %53 : vector<2x16xf32> to vector<2x16x1xf32>
    %55 = tpu.reciprocal %54 {approx = true} : vector<2x16x1xf32> -> vector<2x16x1xf32>
    %56 = vector.broadcast %55 : vector<2x16x1xf32> to vector<2x16x16xf32>
    %57 = arith.mulf %52, %56 : vector<2x16x16xf32>
    %58 = arith.truncf %57 : vector<2x16x16xf32> to vector<2x16x16xbf16>
    %59 = vector.extract_strided_slice %40 {offsets = [0, 0, 0], sizes = [2, 16, 8], strides = [1, 1, 1]} : vector<2x16x128xbf16> to vector<2x16x8xbf16>
    %cst_31 = arith.constant dense<0.000000e+00> : vector<2x16x8xf32>
    %60 = tpu.matmul %58, %59, %cst_31 {dimension_numbers = #tpu.dot_dimension_numbers<[2], [1], [1], [2], [0, 0, 0, 1, 1, 2], [0], [0]>} : vector<2x16x16xbf16>, vector<2x16x8xbf16>, vector<2x16x8xf32> -> vector<2x16x8xf32>
    %61 = vector.extract_strided_slice %21 {offsets = [0, 0, 8], sizes = [2, 16, 8], strides = [1, 1, 1]} : vector<2x16x128xf32> to vector<2x16x8xf32>
    %62 = arith.truncf %61 : vector<2x16x8xf32> to vector<2x16x8xbf16>
    %63 = vector.extract_strided_slice %30 {offsets = [0, 0, 8], sizes = [2, 16, 8], strides = [1, 1, 1]} : vector<2x16x128xf32> to vector<2x16x8xf32>
    %64 = arith.truncf %63 : vector<2x16x8xf32> to vector<2x16x8xbf16>
    %cst_32 = arith.constant dense<0.000000e+00> : vector<2x16x16xf32>
    %65 = tpu.matmul %62, %64, %cst_32 {dimension_numbers = #tpu.dot_dimension_numbers<[2], [2], [1], [1], [0, 0, 0, 1, 1, 1], [0], [0]>} : vector<2x16x8xbf16>, vector<2x16x8xbf16>, vector<2x16x16xf32> -> vector<2x16x16xf32>
    %cst_33 = arith.constant 0.353553385 : f32
    %66 = vector.broadcast %cst_33 : f32 to vector<2x16x16xf32>
    %67 = arith.mulf %65, %66 : vector<2x16x16xf32>
    %cst_34 = arith.constant dense<0xFF800000> : vector<2x16xf32>
    %68 = vector.multi_reduction <maximumf>, %67, %cst_34 [2] : vector<2x16x16xf32> to vector<2x16xf32>
    %69 = vector.shape_cast %68 : vector<2x16xf32> to vector<2x16x1xf32>
    %70 = vector.broadcast %69 : vector<2x16x1xf32> to vector<2x16x16xf32>
    %71 = arith.subf %67, %70 : vector<2x16x16xf32>
    %72 = math.exp %71 : vector<2x16x16xf32>
    %cst_35 = arith.constant dense<0.000000e+00> : vector<2x16xf32>
    %73 = vector.multi_reduction <add>, %72, %cst_35 [2] : vector<2x16x16xf32> to vector<2x16xf32>
    %74 = vector.shape_cast %73 : vector<2x16xf32> to vector<2x16x1xf32>
    %75 = tpu.reciprocal %74 {approx = true} : vector<2x16x1xf32> -> vector<2x16x1xf32>
    %76 = vector.broadcast %75 : vector<2x16x1xf32> to vector<2x16x16xf32>
    %77 = arith.mulf %72, %76 : vector<2x16x16xf32>
    %78 = arith.truncf %77 : vector<2x16x16xf32> to vector<2x16x16xbf16>
    %79 = vector.extract_strided_slice %40 {offsets = [0, 0, 8], sizes = [2, 16, 8], strides = [1, 1, 1]} : vector<2x16x128xbf16> to vector<2x16x8xbf16>
    %cst_36 = arith.constant dense<0.000000e+00> : vector<2x16x8xf32>
    %80 = tpu.matmul %78, %79, %cst_36 {dimension_numbers = #tpu.dot_dimension_numbers<[2], [1], [1], [2], [0, 0, 0, 1, 1, 2], [0], [0]>} : vector<2x16x16xbf16>, vector<2x16x8xbf16>, vector<2x16x8xf32> -> vector<2x16x8xf32>
    %81 = vector.extract_strided_slice %21 {offsets = [0, 0, 16], sizes = [2, 16, 8], strides = [1, 1, 1]} : vector<2x16x128xf32> to vector<2x16x8xf32>
    %82 = arith.truncf %81 : vector<2x16x8xf32> to vector<2x16x8xbf16>
    %83 = vector.extract_strided_slice %30 {offsets = [0, 0, 16], sizes = [2, 16, 8], strides = [1, 1, 1]} : vector<2x16x128xf32> to vector<2x16x8xf32>
    %84 = arith.truncf %83 : vector<2x16x8xf32> to vector<2x16x8xbf16>
    %cst_37 = arith.constant dense<0.000000e+00> : vector<2x16x16xf32>
    %85 = tpu.matmul %82, %84, %cst_37 {dimension_numbers = #tpu.dot_dimension_numbers<[2], [2], [1], [1], [0, 0, 0, 1, 1, 1], [0], [0]>} : vector<2x16x8xbf16>, vector<2x16x8xbf16>, vector<2x16x16xf32> -> vector<2x16x16xf32>
    %cst_38 = arith.constant 0.353553385 : f32
    %86 = vector.broadcast %cst_38 : f32 to vector<2x16x16xf32>
    %87 = arith.mulf %85, %86 : vector<2x16x16xf32>
    %cst_39 = arith.constant dense<0xFF800000> : vector<2x16xf32>
    %88 = vector.multi_reduction <maximumf>, %87, %cst_39 [2] : vector<2x16x16xf32> to vector<2x16xf32>
    %89 = vector.shape_cast %88 : vector<2x16xf32> to vector<2x16x1xf32>
    %90 = vector.broadcast %89 : vector<2x16x1xf32> to vector<2x16x16xf32>
    %91 = arith.subf %87, %90 : vector<2x16x16xf32>
    %92 = math.exp %91 : vector<2x16x16xf32>
    %cst_40 = arith.constant dense<0.000000e+00> : vector<2x16xf32>
    %93 = vector.multi_reduction <add>, %92, %cst_40 [2] : vector<2x16x16xf32> to vector<2x16xf32>
    %94 = vector.shape_cast %93 : vector<2x16xf32> to vector<2x16x1xf32>
    %95 = tpu.reciprocal %94 {approx = true} : vector<2x16x1xf32> -> vector<2x16x1xf32>
    %96 = vector.broadcast %95 : vector<2x16x1xf32> to vector<2x16x16xf32>
    %97 = arith.mulf %92, %96 : vector<2x16x16xf32>
    %98 = arith.truncf %97 : vector<2x16x16xf32> to vector<2x16x16xbf16>
    %99 = vector.extract_strided_slice %40 {offsets = [0, 0, 16], sizes = [2, 16, 8], strides = [1, 1, 1]} : vector<2x16x128xbf16> to vector<2x16x8xbf16>
    %cst_41 = arith.constant dense<0.000000e+00> : vector<2x16x8xf32>
    %100 = tpu.matmul %98, %99, %cst_41 {dimension_numbers = #tpu.dot_dimension_numbers<[2], [1], [1], [2], [0, 0, 0, 1, 1, 2], [0], [0]>} : vector<2x16x16xbf16>, vector<2x16x8xbf16>, vector<2x16x8xf32> -> vector<2x16x8xf32>
    %101 = vector.extract_strided_slice %21 {offsets = [0, 0, 24], sizes = [2, 16, 8], strides = [1, 1, 1]} : vector<2x16x128xf32> to vector<2x16x8xf32>
    %102 = arith.truncf %101 : vector<2x16x8xf32> to vector<2x16x8xbf16>
    %103 = vector.extract_strided_slice %30 {offsets = [0, 0, 24], sizes = [2, 16, 8], strides = [1, 1, 1]} : vector<2x16x128xf32> to vector<2x16x8xf32>
    %104 = arith.truncf %103 : vector<2x16x8xf32> to vector<2x16x8xbf16>
    %cst_42 = arith.constant dense<0.000000e+00> : vector<2x16x16xf32>
    %105 = tpu.matmul %102, %104, %cst_42 {dimension_numbers = #tpu.dot_dimension_numbers<[2], [2], [1], [1], [0, 0, 0, 1, 1, 1], [0], [0]>} : vector<2x16x8xbf16>, vector<2x16x8xbf16>, vector<2x16x16xf32> -> vector<2x16x16xf32>
    %cst_43 = arith.constant 0.353553385 : f32
    %106 = vector.broadcast %cst_43 : f32 to vector<2x16x16xf32>
    %107 = arith.mulf %105, %106 : vector<2x16x16xf32>
    %cst_44 = arith.constant dense<0xFF800000> : vector<2x16xf32>
    %108 = vector.multi_reduction <maximumf>, %107, %cst_44 [2] : vector<2x16x16xf32> to vector<2x16xf32>
    %109 = vector.shape_cast %108 : vector<2x16xf32> to vector<2x16x1xf32>
    %110 = vector.broadcast %109 : vector<2x16x1xf32> to vector<2x16x16xf32>
    %111 = arith.subf %107, %110 : vector<2x16x16xf32>
    %112 = math.exp %111 : vector<2x16x16xf32>
    %cst_45 = arith.constant dense<0.000000e+00> : vector<2x16xf32>
    %113 = vector.multi_reduction <add>, %112, %cst_45 [2] : vector<2x16x16xf32> to vector<2x16xf32>
    %114 = vector.shape_cast %113 : vector<2x16xf32> to vector<2x16x1xf32>
    %115 = tpu.reciprocal %114 {approx = true} : vector<2x16x1xf32> -> vector<2x16x1xf32>
    %116 = vector.broadcast %115 : vector<2x16x1xf32> to vector<2x16x16xf32>
    %117 = arith.mulf %112, %116 : vector<2x16x16xf32>
    %118 = arith.truncf %117 : vector<2x16x16xf32> to vector<2x16x16xbf16>
    %119 = vector.extract_strided_slice %40 {offsets = [0, 0, 24], sizes = [2, 16, 8], strides = [1, 1, 1]} : vector<2x16x128xbf16> to vector<2x16x8xbf16>
    %cst_46 = arith.constant dense<0.000000e+00> : vector<2x16x8xf32>
    %120 = tpu.matmul %118, %119, %cst_46 {dimension_numbers = #tpu.dot_dimension_numbers<[2], [1], [1], [2], [0, 0, 0, 1, 1, 2], [0], [0]>} : vector<2x16x16xbf16>, vector<2x16x8xbf16>, vector<2x16x8xf32> -> vector<2x16x8xf32>
    %cst_47 = arith.constant 0.000000e+00 : f32
    %121 = vector.broadcast %cst_47 : f32 to vector<2x16x96xf32>
    %122 = tpu.concatenate %60, %80, %100, %120, %121 in 2 : vector<2x16x8xf32>, vector<2x16x8xf32>, vector<2x16x8xf32>, vector<2x16x8xf32>, vector<2x16x96xf32> -> vector<2x16x128xf32>
    %123 = vector.shape_cast %122 : vector<2x16x128xf32> to vector<32x128xf32>
    %124 = arith.truncf %123 : vector<32x128xf32> to vector<32x128xbf16>
    %c0_48 = arith.constant 0 : index
    %c0_49 = arith.constant 0 : index
    %125 = vector.load %arg5[%c0_48, %c0_49] : memref<128x128xbf16, #tpu.memory_space<vmem>>, vector<128x128xbf16>
    %cst_50 = arith.constant dense<0.000000e+00> : vector<32x128xf32>
    %126 = tpu.matmul %124, %125, %cst_50 {dimension_numbers = #tpu.dot_dimension_numbers<[1], [0], [0], [1], [0, 0, 1, 1], [], []>} : vector<32x128xbf16>, vector<128x128xbf16>, vector<32x128xf32> -> vector<32x128xf32>
    %c0_51 = arith.constant 0 : index
    %c0_52 = arith.constant 0 : index
    %127 = vector.load %arg6[%c0_51, %c0_52] : memref<1x128xf32, #tpu.memory_space<vmem>>, vector<1x128xf32>
    %128 = vector.broadcast %127 : vector<1x128xf32> to vector<32x128xf32>
    %129 = arith.addf %126, %128 : vector<32x128xf32>
    %130 = arith.addf %2, %129 : vector<32x128xf32>
    %131 = vector.broadcast %12 : vector<1x128xf32> to vector<32x128xf32>
    %132 = arith.mulf %130, %131 : vector<32x128xf32>
    %cst_53 = arith.constant dense<0.000000e+00> : vector<32xf32>
    %133 = vector.multi_reduction <add>, %132, %cst_53 [1] : vector<32x128xf32> to vector<32xf32>
    %134 = vector.shape_cast %133 : vector<32xf32> to vector<32x1xf32>
    %cst_54 = arith.constant 3.125000e-02 : f32
    %135 = vector.broadcast %cst_54 : f32 to vector<32x1xf32>
    %136 = arith.mulf %134, %135 : vector<32x1xf32>
    %137 = vector.broadcast %136 : vector<32x1xf32> to vector<32x128xf32>
    %138 = arith.subf %132, %137 : vector<32x128xf32>
    %139 = vector.broadcast %12 : vector<1x128xf32> to vector<32x128xf32>
    %140 = arith.mulf %138, %139 : vector<32x128xf32>
    %141 = arith.mulf %140, %140 : vector<32x128xf32>
    %cst_55 = arith.constant dense<0.000000e+00> : vector<32xf32>
    %142 = vector.multi_reduction <add>, %141, %cst_55 [1] : vector<32x128xf32> to vector<32xf32>
    %143 = vector.shape_cast %142 : vector<32xf32> to vector<32x1xf32>
    %cst_56 = arith.constant 3.125000e-02 : f32
    %144 = vector.broadcast %cst_56 : f32 to vector<32x1xf32>
    %145 = arith.mulf %143, %144 : vector<32x1xf32>
    %cst_57 = arith.constant 9.99999974E-6 : f32
    %146 = vector.broadcast %cst_57 : f32 to vector<32x1xf32>
    %147 = arith.addf %145, %146 : vector<32x1xf32>
    %148 = math.rsqrt %147 : vector<32x1xf32>
    %149 = vector.broadcast %148 : vector<32x1xf32> to vector<32x128xf32>
    %150 = arith.mulf %140, %149 : vector<32x128xf32>
    %151 = vector.extract_strided_slice %6 {offsets = [0, 0], sizes = [1, 128], strides = [1, 1]} : vector<4x128xf32> to vector<1x128xf32>
    %152 = vector.broadcast %151 : vector<1x128xf32> to vector<32x128xf32>
    %153 = arith.mulf %150, %152 : vector<32x128xf32>
    %154 = vector.extract_strided_slice %7 {offsets = [0, 0], sizes = [1, 128], strides = [1, 1]} : vector<4x128xf32> to vector<1x128xf32>
    %155 = vector.broadcast %154 : vector<1x128xf32> to vector<32x128xf32>
    %156 = arith.addf %153, %155 : vector<32x128xf32>
    %157 = arith.truncf %156 : vector<32x128xf32> to vector<32x128xbf16>
    %c0_58 = arith.constant 0 : index
    %c0_59 = arith.constant 0 : index
    %c0_60 = arith.constant 0 : index
    %158 = vector.load %arg7[%c0_58, %c0_59, %c0_60] : memref<3x128x128xbf16, #tpu.memory_space<vmem>>, vector<1x128x128xbf16>
    %159 = vector.shape_cast %158 : vector<1x128x128xbf16> to vector<128x128xbf16>
    %cst_61 = arith.constant dense<0.000000e+00> : vector<32x128xf32>
    %160 = tpu.matmul %157, %159, %cst_61 {dimension_numbers = #tpu.dot_dimension_numbers<[1], [0], [0], [1], [0, 0, 1, 1], [], []>} : vector<32x128xbf16>, vector<128x128xbf16>, vector<32x128xf32> -> vector<32x128xf32>
    %c0_62 = arith.constant 0 : index
    %c0_63 = arith.constant 0 : index
    %c0_64 = arith.constant 0 : index
    %161 = vector.load %arg8[%c0_62, %c0_63, %c0_64] : memref<3x1x128xf32, #tpu.memory_space<vmem>>, vector<1x1x128xf32>
    %162 = vector.shape_cast %161 : vector<1x1x128xf32> to vector<1x128xf32>
    %163 = vector.broadcast %162 : vector<1x128xf32> to vector<32x128xf32>
    %164 = arith.addf %160, %163 : vector<32x128xf32>
    %165 = vector.shape_cast %164 : vector<32x128xf32> to vector<2x16x128xf32>
    %166 = arith.truncf %5 : vector<64x128xf32> to vector<64x128xbf16>
    %c1_65 = arith.constant 1 : index
    %c0_66 = arith.constant 0 : index
    %c0_67 = arith.constant 0 : index
    %167 = vector.load %arg7[%c1_65, %c0_66, %c0_67] : memref<3x128x128xbf16, #tpu.memory_space<vmem>>, vector<1x128x128xbf16>
    %168 = vector.shape_cast %167 : vector<1x128x128xbf16> to vector<128x128xbf16>
    %cst_68 = arith.constant dense<0.000000e+00> : vector<64x128xf32>
    %169 = tpu.matmul %166, %168, %cst_68 {dimension_numbers = #tpu.dot_dimension_numbers<[1], [0], [0], [1], [0, 0, 1, 1], [], []>} : vector<64x128xbf16>, vector<128x128xbf16>, vector<64x128xf32> -> vector<64x128xf32>
    %c1_69 = arith.constant 1 : index
    %c0_70 = arith.constant 0 : index
    %c0_71 = arith.constant 0 : index
    %170 = vector.load %arg8[%c1_69, %c0_70, %c0_71] : memref<3x1x128xf32, #tpu.memory_space<vmem>>, vector<1x1x128xf32>
    %171 = vector.shape_cast %170 : vector<1x1x128xf32> to vector<1x128xf32>
    %172 = vector.broadcast %171 : vector<1x128xf32> to vector<64x128xf32>
    %173 = arith.addf %169, %172 : vector<64x128xf32>
    %174 = vector.shape_cast %173 : vector<64x128xf32> to vector<2x32x128xf32>
    %175 = arith.truncf %5 : vector<64x128xf32> to vector<64x128xbf16>
    %c2_72 = arith.constant 2 : index
    %c0_73 = arith.constant 0 : index
    %c0_74 = arith.constant 0 : index
    %176 = vector.load %arg7[%c2_72, %c0_73, %c0_74] : memref<3x128x128xbf16, #tpu.memory_space<vmem>>, vector<1x128x128xbf16>
    %177 = vector.shape_cast %176 : vector<1x128x128xbf16> to vector<128x128xbf16>
    %cst_75 = arith.constant dense<0.000000e+00> : vector<64x128xf32>
    %178 = tpu.matmul %175, %177, %cst_75 {dimension_numbers = #tpu.dot_dimension_numbers<[1], [0], [0], [1], [0, 0, 1, 1], [], []>} : vector<64x128xbf16>, vector<128x128xbf16>, vector<64x128xf32> -> vector<64x128xf32>
    %c2_76 = arith.constant 2 : index
    %c0_77 = arith.constant 0 : index
    %c0_78 = arith.constant 0 : index
    %179 = vector.load %arg8[%c2_76, %c0_77, %c0_78] : memref<3x1x128xf32, #tpu.memory_space<vmem>>, vector<1x1x128xf32>
    %180 = vector.shape_cast %179 : vector<1x1x128xf32> to vector<1x128xf32>
    %181 = vector.broadcast %180 : vector<1x128xf32> to vector<64x128xf32>
    %182 = arith.addf %178, %181 : vector<64x128xf32>
    %183 = vector.shape_cast %182 : vector<64x128xf32> to vector<2x32x128xf32>
    %184 = arith.truncf %183 : vector<2x32x128xf32> to vector<2x32x128xbf16>
    %185 = vector.extract_strided_slice %165 {offsets = [0, 0, 0], sizes = [2, 16, 4], strides = [1, 1, 1]} : vector<2x16x128xf32> to vector<2x16x4xf32>
    %186 = arith.truncf %185 : vector<2x16x4xf32> to vector<2x16x4xbf16>
    %187 = vector.extract_strided_slice %174 {offsets = [0, 0, 0], sizes = [2, 32, 4], strides = [1, 1, 1]} : vector<2x32x128xf32> to vector<2x32x4xf32>
    %188 = arith.truncf %187 : vector<2x32x4xf32> to vector<2x32x4xbf16>
    %cst_79 = arith.constant dense<0.000000e+00> : vector<2x16x32xf32>
    %189 = tpu.matmul %186, %188, %cst_79 {dimension_numbers = #tpu.dot_dimension_numbers<[2], [2], [1], [1], [0, 0, 0, 1, 1, 1], [0], [0]>} : vector<2x16x4xbf16>, vector<2x32x4xbf16>, vector<2x16x32xf32> -> vector<2x16x32xf32>
    %cst_80 = arith.constant 5.000000e-01 : f32
    %190 = vector.broadcast %cst_80 : f32 to vector<2x16x32xf32>
    %191 = arith.mulf %189, %190 : vector<2x16x32xf32>
    %cst_81 = arith.constant dense<0xFF800000> : vector<2x16xf32>
    %192 = vector.multi_reduction <maximumf>, %191, %cst_81 [2] : vector<2x16x32xf32> to vector<2x16xf32>
    %193 = vector.shape_cast %192 : vector<2x16xf32> to vector<2x16x1xf32>
    %194 = vector.broadcast %193 : vector<2x16x1xf32> to vector<2x16x32xf32>
    %195 = arith.subf %191, %194 : vector<2x16x32xf32>
    %196 = math.exp %195 : vector<2x16x32xf32>
    %cst_82 = arith.constant dense<0.000000e+00> : vector<2x16xf32>
    %197 = vector.multi_reduction <add>, %196, %cst_82 [2] : vector<2x16x32xf32> to vector<2x16xf32>
    %198 = vector.shape_cast %197 : vector<2x16xf32> to vector<2x16x1xf32>
    %199 = tpu.reciprocal %198 {approx = true} : vector<2x16x1xf32> -> vector<2x16x1xf32>
    %200 = vector.broadcast %199 : vector<2x16x1xf32> to vector<2x16x32xf32>
    %201 = arith.mulf %196, %200 : vector<2x16x32xf32>
    %202 = arith.truncf %201 : vector<2x16x32xf32> to vector<2x16x32xbf16>
    %203 = vector.extract_strided_slice %184 {offsets = [0, 0, 0], sizes = [2, 32, 4], strides = [1, 1, 1]} : vector<2x32x128xbf16> to vector<2x32x4xbf16>
    %cst_83 = arith.constant dense<0.000000e+00> : vector<2x16x4xf32>
    %204 = tpu.matmul %202, %203, %cst_83 {dimension_numbers = #tpu.dot_dimension_numbers<[2], [1], [1], [2], [0, 0, 0, 1, 1, 2], [0], [0]>} : vector<2x16x32xbf16>, vector<2x32x4xbf16>, vector<2x16x4xf32> -> vector<2x16x4xf32>
    %205 = vector.extract_strided_slice %165 {offsets = [0, 0, 4], sizes = [2, 16, 4], strides = [1, 1, 1]} : vector<2x16x128xf32> to vector<2x16x4xf32>
    %206 = arith.truncf %205 : vector<2x16x4xf32> to vector<2x16x4xbf16>
    %207 = vector.extract_strided_slice %174 {offsets = [0, 0, 4], sizes = [2, 32, 4], strides = [1, 1, 1]} : vector<2x32x128xf32> to vector<2x32x4xf32>
    %208 = arith.truncf %207 : vector<2x32x4xf32> to vector<2x32x4xbf16>
    %cst_84 = arith.constant dense<0.000000e+00> : vector<2x16x32xf32>
    %209 = tpu.matmul %206, %208, %cst_84 {dimension_numbers = #tpu.dot_dimension_numbers<[2], [2], [1], [1], [0, 0, 0, 1, 1, 1], [0], [0]>} : vector<2x16x4xbf16>, vector<2x32x4xbf16>, vector<2x16x32xf32> -> vector<2x16x32xf32>
    %cst_85 = arith.constant 5.000000e-01 : f32
    %210 = vector.broadcast %cst_85 : f32 to vector<2x16x32xf32>
    %211 = arith.mulf %209, %210 : vector<2x16x32xf32>
    %cst_86 = arith.constant dense<0xFF800000> : vector<2x16xf32>
    %212 = vector.multi_reduction <maximumf>, %211, %cst_86 [2] : vector<2x16x32xf32> to vector<2x16xf32>
    %213 = vector.shape_cast %212 : vector<2x16xf32> to vector<2x16x1xf32>
    %214 = vector.broadcast %213 : vector<2x16x1xf32> to vector<2x16x32xf32>
    %215 = arith.subf %211, %214 : vector<2x16x32xf32>
    %216 = math.exp %215 : vector<2x16x32xf32>
    %cst_87 = arith.constant dense<0.000000e+00> : vector<2x16xf32>
    %217 = vector.multi_reduction <add>, %216, %cst_87 [2] : vector<2x16x32xf32> to vector<2x16xf32>
    %218 = vector.shape_cast %217 : vector<2x16xf32> to vector<2x16x1xf32>
    %219 = tpu.reciprocal %218 {approx = true} : vector<2x16x1xf32> -> vector<2x16x1xf32>
    %220 = vector.broadcast %219 : vector<2x16x1xf32> to vector<2x16x32xf32>
    %221 = arith.mulf %216, %220 : vector<2x16x32xf32>
    %222 = arith.truncf %221 : vector<2x16x32xf32> to vector<2x16x32xbf16>
    %223 = vector.extract_strided_slice %184 {offsets = [0, 0, 4], sizes = [2, 32, 4], strides = [1, 1, 1]} : vector<2x32x128xbf16> to vector<2x32x4xbf16>
    %cst_88 = arith.constant dense<0.000000e+00> : vector<2x16x4xf32>
    %224 = tpu.matmul %222, %223, %cst_88 {dimension_numbers = #tpu.dot_dimension_numbers<[2], [1], [1], [2], [0, 0, 0, 1, 1, 2], [0], [0]>} : vector<2x16x32xbf16>, vector<2x32x4xbf16>, vector<2x16x4xf32> -> vector<2x16x4xf32>
    %225 = vector.extract_strided_slice %165 {offsets = [0, 0, 8], sizes = [2, 16, 4], strides = [1, 1, 1]} : vector<2x16x128xf32> to vector<2x16x4xf32>
    %226 = arith.truncf %225 : vector<2x16x4xf32> to vector<2x16x4xbf16>
    %227 = vector.extract_strided_slice %174 {offsets = [0, 0, 8], sizes = [2, 32, 4], strides = [1, 1, 1]} : vector<2x32x128xf32> to vector<2x32x4xf32>
    %228 = arith.truncf %227 : vector<2x32x4xf32> to vector<2x32x4xbf16>
    %cst_89 = arith.constant dense<0.000000e+00> : vector<2x16x32xf32>
    %229 = tpu.matmul %226, %228, %cst_89 {dimension_numbers = #tpu.dot_dimension_numbers<[2], [2], [1], [1], [0, 0, 0, 1, 1, 1], [0], [0]>} : vector<2x16x4xbf16>, vector<2x32x4xbf16>, vector<2x16x32xf32> -> vector<2x16x32xf32>
    %cst_90 = arith.constant 5.000000e-01 : f32
    %230 = vector.broadcast %cst_90 : f32 to vector<2x16x32xf32>
    %231 = arith.mulf %229, %230 : vector<2x16x32xf32>
    %cst_91 = arith.constant dense<0xFF800000> : vector<2x16xf32>
    %232 = vector.multi_reduction <maximumf>, %231, %cst_91 [2] : vector<2x16x32xf32> to vector<2x16xf32>
    %233 = vector.shape_cast %232 : vector<2x16xf32> to vector<2x16x1xf32>
    %234 = vector.broadcast %233 : vector<2x16x1xf32> to vector<2x16x32xf32>
    %235 = arith.subf %231, %234 : vector<2x16x32xf32>
    %236 = math.exp %235 : vector<2x16x32xf32>
    %cst_92 = arith.constant dense<0.000000e+00> : vector<2x16xf32>
    %237 = vector.multi_reduction <add>, %236, %cst_92 [2] : vector<2x16x32xf32> to vector<2x16xf32>
    %238 = vector.shape_cast %237 : vector<2x16xf32> to vector<2x16x1xf32>
    %239 = tpu.reciprocal %238 {approx = true} : vector<2x16x1xf32> -> vector<2x16x1xf32>
    %240 = vector.broadcast %239 : vector<2x16x1xf32> to vector<2x16x32xf32>
    %241 = arith.mulf %236, %240 : vector<2x16x32xf32>
    %242 = arith.truncf %241 : vector<2x16x32xf32> to vector<2x16x32xbf16>
    %243 = vector.extract_strided_slice %184 {offsets = [0, 0, 8], sizes = [2, 32, 4], strides = [1, 1, 1]} : vector<2x32x128xbf16> to vector<2x32x4xbf16>
    %cst_93 = arith.constant dense<0.000000e+00> : vector<2x16x4xf32>
    %244 = tpu.matmul %242, %243, %cst_93 {dimension_numbers = #tpu.dot_dimension_numbers<[2], [1], [1], [2], [0, 0, 0, 1, 1, 2], [0], [0]>} : vector<2x16x32xbf16>, vector<2x32x4xbf16>, vector<2x16x4xf32> -> vector<2x16x4xf32>
    %245 = vector.extract_strided_slice %165 {offsets = [0, 0, 12], sizes = [2, 16, 4], strides = [1, 1, 1]} : vector<2x16x128xf32> to vector<2x16x4xf32>
    %246 = arith.truncf %245 : vector<2x16x4xf32> to vector<2x16x4xbf16>
    %247 = vector.extract_strided_slice %174 {offsets = [0, 0, 12], sizes = [2, 32, 4], strides = [1, 1, 1]} : vector<2x32x128xf32> to vector<2x32x4xf32>
    %248 = arith.truncf %247 : vector<2x32x4xf32> to vector<2x32x4xbf16>
    %cst_94 = arith.constant dense<0.000000e+00> : vector<2x16x32xf32>
    %249 = tpu.matmul %246, %248, %cst_94 {dimension_numbers = #tpu.dot_dimension_numbers<[2], [2], [1], [1], [0, 0, 0, 1, 1, 1], [0], [0]>} : vector<2x16x4xbf16>, vector<2x32x4xbf16>, vector<2x16x32xf32> -> vector<2x16x32xf32>
    %cst_95 = arith.constant 5.000000e-01 : f32
    %250 = vector.broadcast %cst_95 : f32 to vector<2x16x32xf32>
    %251 = arith.mulf %249, %250 : vector<2x16x32xf32>
    %cst_96 = arith.constant dense<0xFF800000> : vector<2x16xf32>
    %252 = vector.multi_reduction <maximumf>, %251, %cst_96 [2] : vector<2x16x32xf32> to vector<2x16xf32>
    %253 = vector.shape_cast %252 : vector<2x16xf32> to vector<2x16x1xf32>
    %254 = vector.broadcast %253 : vector<2x16x1xf32> to vector<2x16x32xf32>
    %255 = arith.subf %251, %254 : vector<2x16x32xf32>
    %256 = math.exp %255 : vector<2x16x32xf32>
    %cst_97 = arith.constant dense<0.000000e+00> : vector<2x16xf32>
    %257 = vector.multi_reduction <add>, %256, %cst_97 [2] : vector<2x16x32xf32> to vector<2x16xf32>
    %258 = vector.shape_cast %257 : vector<2x16xf32> to vector<2x16x1xf32>
    %259 = tpu.reciprocal %258 {approx = true} : vector<2x16x1xf32> -> vector<2x16x1xf32>
    %260 = vector.broadcast %259 : vector<2x16x1xf32> to vector<2x16x32xf32>
    %261 = arith.mulf %256, %260 : vector<2x16x32xf32>
    %262 = arith.truncf %261 : vector<2x16x32xf32> to vector<2x16x32xbf16>
    %263 = vector.extract_strided_slice %184 {offsets = [0, 0, 12], sizes = [2, 32, 4], strides = [1, 1, 1]} : vector<2x32x128xbf16> to vector<2x32x4xbf16>
    %cst_98 = arith.constant dense<0.000000e+00> : vector<2x16x4xf32>
    %264 = tpu.matmul %262, %263, %cst_98 {dimension_numbers = #tpu.dot_dimension_numbers<[2], [1], [1], [2], [0, 0, 0, 1, 1, 2], [0], [0]>} : vector<2x16x32xbf16>, vector<2x32x4xbf16>, vector<2x16x4xf32> -> vector<2x16x4xf32>
    %cst_99 = arith.constant 0.000000e+00 : f32
    %265 = vector.broadcast %cst_99 : f32 to vector<2x16x112xf32>
    %266 = tpu.concatenate %204, %224, %244, %264, %265 in 2 : vector<2x16x4xf32>, vector<2x16x4xf32>, vector<2x16x4xf32>, vector<2x16x4xf32>, vector<2x16x112xf32> -> vector<2x16x128xf32>
    %267 = vector.shape_cast %266 : vector<2x16x128xf32> to vector<32x128xf32>
    %268 = arith.truncf %267 : vector<32x128xf32> to vector<32x128xbf16>
    %c0_100 = arith.constant 0 : index
    %c0_101 = arith.constant 0 : index
    %269 = vector.load %arg9[%c0_100, %c0_101] : memref<128x128xbf16, #tpu.memory_space<vmem>>, vector<128x128xbf16>
    %cst_102 = arith.constant dense<0.000000e+00> : vector<32x128xf32>
    %270 = tpu.matmul %268, %269, %cst_102 {dimension_numbers = #tpu.dot_dimension_numbers<[1], [0], [0], [1], [0, 0, 1, 1], [], []>} : vector<32x128xbf16>, vector<128x128xbf16>, vector<32x128xf32> -> vector<32x128xf32>
    %c0_103 = arith.constant 0 : index
    %c0_104 = arith.constant 0 : index
    %271 = vector.load %arg10[%c0_103, %c0_104] : memref<1x128xf32, #tpu.memory_space<vmem>>, vector<1x128xf32>
    %272 = vector.broadcast %271 : vector<1x128xf32> to vector<32x128xf32>
    %273 = arith.addf %270, %272 : vector<32x128xf32>
    %274 = arith.addf %156, %273 : vector<32x128xf32>
    %275 = vector.broadcast %12 : vector<1x128xf32> to vector<32x128xf32>
    %276 = arith.mulf %274, %275 : vector<32x128xf32>
    %cst_105 = arith.constant dense<0.000000e+00> : vector<32xf32>
    %277 = vector.multi_reduction <add>, %276, %cst_105 [1] : vector<32x128xf32> to vector<32xf32>
    %278 = vector.shape_cast %277 : vector<32xf32> to vector<32x1xf32>
    %cst_106 = arith.constant 3.125000e-02 : f32
    %279 = vector.broadcast %cst_106 : f32 to vector<32x1xf32>
    %280 = arith.mulf %278, %279 : vector<32x1xf32>
    %281 = vector.broadcast %280 : vector<32x1xf32> to vector<32x128xf32>
    %282 = arith.subf %276, %281 : vector<32x128xf32>
    %283 = vector.broadcast %12 : vector<1x128xf32> to vector<32x128xf32>
    %284 = arith.mulf %282, %283 : vector<32x128xf32>
    %285 = arith.mulf %284, %284 : vector<32x128xf32>
    %cst_107 = arith.constant dense<0.000000e+00> : vector<32xf32>
    %286 = vector.multi_reduction <add>, %285, %cst_107 [1] : vector<32x128xf32> to vector<32xf32>
    %287 = vector.shape_cast %286 : vector<32xf32> to vector<32x1xf32>
    %cst_108 = arith.constant 3.125000e-02 : f32
    %288 = vector.broadcast %cst_108 : f32 to vector<32x1xf32>
    %289 = arith.mulf %287, %288 : vector<32x1xf32>
    %cst_109 = arith.constant 9.99999974E-6 : f32
    %290 = vector.broadcast %cst_109 : f32 to vector<32x1xf32>
    %291 = arith.addf %289, %290 : vector<32x1xf32>
    %292 = math.rsqrt %291 : vector<32x1xf32>
    %293 = vector.broadcast %292 : vector<32x1xf32> to vector<32x128xf32>
    %294 = arith.mulf %284, %293 : vector<32x128xf32>
    %295 = vector.extract_strided_slice %6 {offsets = [1, 0], sizes = [1, 128], strides = [1, 1]} : vector<4x128xf32> to vector<1x128xf32>
    %296 = vector.broadcast %295 : vector<1x128xf32> to vector<32x128xf32>
    %297 = arith.mulf %294, %296 : vector<32x128xf32>
    %298 = vector.extract_strided_slice %7 {offsets = [1, 0], sizes = [1, 128], strides = [1, 1]} : vector<4x128xf32> to vector<1x128xf32>
    %299 = vector.broadcast %298 : vector<1x128xf32> to vector<32x128xf32>
    %300 = arith.addf %297, %299 : vector<32x128xf32>
    %301 = arith.truncf %300 : vector<32x128xf32> to vector<32x128xbf16>
    %c0_110 = arith.constant 0 : index
    %c0_111 = arith.constant 0 : index
    %302 = vector.load %arg15[%c0_110, %c0_111] : memref<128x128xbf16, #tpu.memory_space<vmem>>, vector<128x128xbf16>
    %cst_112 = arith.constant dense<0.000000e+00> : vector<32x128xf32>
    %303 = tpu.matmul %301, %302, %cst_112 {dimension_numbers = #tpu.dot_dimension_numbers<[1], [0], [0], [1], [0, 0, 1, 1], [], []>} : vector<32x128xbf16>, vector<128x128xbf16>, vector<32x128xf32> -> vector<32x128xf32>
    %c0_113 = arith.constant 0 : index
    %c0_114 = arith.constant 0 : index
    %304 = vector.load %arg16[%c0_113, %c0_114] : memref<1x128xf32, #tpu.memory_space<vmem>>, vector<1x128xf32>
    %305 = vector.broadcast %304 : vector<1x128xf32> to vector<32x128xf32>
    %306 = arith.addf %303, %305 : vector<32x128xf32>
    %cst_115 = arith.constant 0.000000e+00 : f32
    %307 = vector.broadcast %cst_115 : f32 to vector<32x128xf32>
    %308 = arith.maximumf %306, %307 : vector<32x128xf32>
    %309 = arith.truncf %308 : vector<32x128xf32> to vector<32x128xbf16>
    %c0_116 = arith.constant 0 : index
    %c0_117 = arith.constant 0 : index
    %310 = vector.load %arg17[%c0_116, %c0_117] : memref<128x128xbf16, #tpu.memory_space<vmem>>, vector<128x128xbf16>
    %cst_118 = arith.constant dense<0.000000e+00> : vector<32x128xf32>
    %311 = tpu.matmul %309, %310, %cst_118 {dimension_numbers = #tpu.dot_dimension_numbers<[1], [0], [0], [1], [0, 0, 1, 1], [], []>} : vector<32x128xbf16>, vector<128x128xbf16>, vector<32x128xf32> -> vector<32x128xf32>
    %c0_119 = arith.constant 0 : index
    %c0_120 = arith.constant 0 : index
    %312 = vector.load %arg18[%c0_119, %c0_120] : memref<1x128xf32, #tpu.memory_space<vmem>>, vector<1x128xf32>
    %313 = vector.broadcast %312 : vector<1x128xf32> to vector<32x128xf32>
    %314 = arith.addf %311, %313 : vector<32x128xf32>
    %315 = arith.addf %300, %314 : vector<32x128xf32>
    %316 = vector.broadcast %12 : vector<1x128xf32> to vector<32x128xf32>
    %317 = arith.mulf %315, %316 : vector<32x128xf32>
    %cst_121 = arith.constant dense<0.000000e+00> : vector<32xf32>
    %318 = vector.multi_reduction <add>, %317, %cst_121 [1] : vector<32x128xf32> to vector<32xf32>
    %319 = vector.shape_cast %318 : vector<32xf32> to vector<32x1xf32>
    %cst_122 = arith.constant 3.125000e-02 : f32
    %320 = vector.broadcast %cst_122 : f32 to vector<32x1xf32>
    %321 = arith.mulf %319, %320 : vector<32x1xf32>
    %322 = vector.broadcast %321 : vector<32x1xf32> to vector<32x128xf32>
    %323 = arith.subf %317, %322 : vector<32x128xf32>
    %324 = vector.broadcast %12 : vector<1x128xf32> to vector<32x128xf32>
    %325 = arith.mulf %323, %324 : vector<32x128xf32>
    %326 = arith.mulf %325, %325 : vector<32x128xf32>
    %cst_123 = arith.constant dense<0.000000e+00> : vector<32xf32>
    %327 = vector.multi_reduction <add>, %326, %cst_123 [1] : vector<32x128xf32> to vector<32xf32>
    %328 = vector.shape_cast %327 : vector<32xf32> to vector<32x1xf32>
    %cst_124 = arith.constant 3.125000e-02 : f32
    %329 = vector.broadcast %cst_124 : f32 to vector<32x1xf32>
    %330 = arith.mulf %328, %329 : vector<32x1xf32>
    %cst_125 = arith.constant 9.99999974E-6 : f32
    %331 = vector.broadcast %cst_125 : f32 to vector<32x1xf32>
    %332 = arith.addf %330, %331 : vector<32x1xf32>
    %333 = math.rsqrt %332 : vector<32x1xf32>
    %334 = vector.broadcast %333 : vector<32x1xf32> to vector<32x128xf32>
    %335 = arith.mulf %325, %334 : vector<32x128xf32>
    %336 = vector.extract_strided_slice %6 {offsets = [2, 0], sizes = [1, 128], strides = [1, 1]} : vector<4x128xf32> to vector<1x128xf32>
    %337 = vector.broadcast %336 : vector<1x128xf32> to vector<32x128xf32>
    %338 = arith.mulf %335, %337 : vector<32x128xf32>
    %339 = vector.extract_strided_slice %7 {offsets = [2, 0], sizes = [1, 128], strides = [1, 1]} : vector<4x128xf32> to vector<1x128xf32>
    %340 = vector.broadcast %339 : vector<1x128xf32> to vector<32x128xf32>
    %341 = arith.addf %338, %340 : vector<32x128xf32>
    %342 = arith.truncf %5 : vector<64x128xf32> to vector<64x128xbf16>
    %c0_126 = arith.constant 0 : index
    %c0_127 = arith.constant 0 : index
    %c0_128 = arith.constant 0 : index
    %343 = vector.load %arg11[%c0_126, %c0_127, %c0_128] : memref<3x128x128xbf16, #tpu.memory_space<vmem>>, vector<1x128x128xbf16>
    %344 = vector.shape_cast %343 : vector<1x128x128xbf16> to vector<128x128xbf16>
    %cst_129 = arith.constant dense<0.000000e+00> : vector<64x128xf32>
    %345 = tpu.matmul %342, %344, %cst_129 {dimension_numbers = #tpu.dot_dimension_numbers<[1], [0], [0], [1], [0, 0, 1, 1], [], []>} : vector<64x128xbf16>, vector<128x128xbf16>, vector<64x128xf32> -> vector<64x128xf32>
    %c0_130 = arith.constant 0 : index
    %c0_131 = arith.constant 0 : index
    %c0_132 = arith.constant 0 : index
    %346 = vector.load %arg12[%c0_130, %c0_131, %c0_132] : memref<3x1x128xf32, #tpu.memory_space<vmem>>, vector<1x1x128xf32>
    %347 = vector.shape_cast %346 : vector<1x1x128xf32> to vector<1x128xf32>
    %348 = vector.broadcast %347 : vector<1x128xf32> to vector<64x128xf32>
    %349 = arith.addf %345, %348 : vector<64x128xf32>
    %350 = vector.shape_cast %349 : vector<64x128xf32> to vector<2x32x128xf32>
    %351 = arith.truncf %341 : vector<32x128xf32> to vector<32x128xbf16>
    %c1_133 = arith.constant 1 : index
    %c0_134 = arith.constant 0 : index
    %c0_135 = arith.constant 0 : index
    %352 = vector.load %arg11[%c1_133, %c0_134, %c0_135] : memref<3x128x128xbf16, #tpu.memory_space<vmem>>, vector<1x128x128xbf16>
    %353 = vector.shape_cast %352 : vector<1x128x128xbf16> to vector<128x128xbf16>
    %cst_136 = arith.constant dense<0.000000e+00> : vector<32x128xf32>
    %354 = tpu.matmul %351, %353, %cst_136 {dimension_numbers = #tpu.dot_dimension_numbers<[1], [0], [0], [1], [0, 0, 1, 1], [], []>} : vector<32x128xbf16>, vector<128x128xbf16>, vector<32x128xf32> -> vector<32x128xf32>
    %c1_137 = arith.constant 1 : index
    %c0_138 = arith.constant 0 : index
    %c0_139 = arith.constant 0 : index
    %355 = vector.load %arg12[%c1_137, %c0_138, %c0_139] : memref<3x1x128xf32, #tpu.memory_space<vmem>>, vector<1x1x128xf32>
    %356 = vector.shape_cast %355 : vector<1x1x128xf32> to vector<1x128xf32>
    %357 = vector.broadcast %356 : vector<1x128xf32> to vector<32x128xf32>
    %358 = arith.addf %354, %357 : vector<32x128xf32>
    %359 = vector.shape_cast %358 : vector<32x128xf32> to vector<2x16x128xf32>
    %360 = arith.truncf %341 : vector<32x128xf32> to vector<32x128xbf16>
    %c2_140 = arith.constant 2 : index
    %c0_141 = arith.constant 0 : index
    %c0_142 = arith.constant 0 : index
    %361 = vector.load %arg11[%c2_140, %c0_141, %c0_142] : memref<3x128x128xbf16, #tpu.memory_space<vmem>>, vector<1x128x128xbf16>
    %362 = vector.shape_cast %361 : vector<1x128x128xbf16> to vector<128x128xbf16>
    %cst_143 = arith.constant dense<0.000000e+00> : vector<32x128xf32>
    %363 = tpu.matmul %360, %362, %cst_143 {dimension_numbers = #tpu.dot_dimension_numbers<[1], [0], [0], [1], [0, 0, 1, 1], [], []>} : vector<32x128xbf16>, vector<128x128xbf16>, vector<32x128xf32> -> vector<32x128xf32>
    %c2_144 = arith.constant 2 : index
    %c0_145 = arith.constant 0 : index
    %c0_146 = arith.constant 0 : index
    %364 = vector.load %arg12[%c2_144, %c0_145, %c0_146] : memref<3x1x128xf32, #tpu.memory_space<vmem>>, vector<1x1x128xf32>
    %365 = vector.shape_cast %364 : vector<1x1x128xf32> to vector<1x128xf32>
    %366 = vector.broadcast %365 : vector<1x128xf32> to vector<32x128xf32>
    %367 = arith.addf %363, %366 : vector<32x128xf32>
    %368 = vector.shape_cast %367 : vector<32x128xf32> to vector<2x16x128xf32>
    %369 = arith.truncf %368 : vector<2x16x128xf32> to vector<2x16x128xbf16>
    %370 = vector.extract_strided_slice %350 {offsets = [0, 0, 0], sizes = [2, 32, 4], strides = [1, 1, 1]} : vector<2x32x128xf32> to vector<2x32x4xf32>
    %371 = arith.truncf %370 : vector<2x32x4xf32> to vector<2x32x4xbf16>
    %372 = vector.extract_strided_slice %359 {offsets = [0, 0, 0], sizes = [2, 16, 4], strides = [1, 1, 1]} : vector<2x16x128xf32> to vector<2x16x4xf32>
    %373 = arith.truncf %372 : vector<2x16x4xf32> to vector<2x16x4xbf16>
    %cst_147 = arith.constant dense<0.000000e+00> : vector<2x32x16xf32>
    %374 = tpu.matmul %371, %373, %cst_147 {dimension_numbers = #tpu.dot_dimension_numbers<[2], [2], [1], [1], [0, 0, 0, 1, 1, 1], [0], [0]>} : vector<2x32x4xbf16>, vector<2x16x4xbf16>, vector<2x32x16xf32> -> vector<2x32x16xf32>
    %cst_148 = arith.constant 5.000000e-01 : f32
    %375 = vector.broadcast %cst_148 : f32 to vector<2x32x16xf32>
    %376 = arith.mulf %374, %375 : vector<2x32x16xf32>
    %cst_149 = arith.constant dense<0xFF800000> : vector<2x32xf32>
    %377 = vector.multi_reduction <maximumf>, %376, %cst_149 [2] : vector<2x32x16xf32> to vector<2x32xf32>
    %378 = vector.shape_cast %377 : vector<2x32xf32> to vector<2x32x1xf32>
    %379 = vector.broadcast %378 : vector<2x32x1xf32> to vector<2x32x16xf32>
    %380 = arith.subf %376, %379 : vector<2x32x16xf32>
    %381 = math.exp %380 : vector<2x32x16xf32>
    %cst_150 = arith.constant dense<0.000000e+00> : vector<2x32xf32>
    %382 = vector.multi_reduction <add>, %381, %cst_150 [2] : vector<2x32x16xf32> to vector<2x32xf32>
    %383 = vector.shape_cast %382 : vector<2x32xf32> to vector<2x32x1xf32>
    %384 = tpu.reciprocal %383 {approx = true} : vector<2x32x1xf32> -> vector<2x32x1xf32>
    %385 = vector.broadcast %384 : vector<2x32x1xf32> to vector<2x32x16xf32>
    %386 = arith.mulf %381, %385 : vector<2x32x16xf32>
    %387 = arith.truncf %386 : vector<2x32x16xf32> to vector<2x32x16xbf16>
    %388 = vector.extract_strided_slice %369 {offsets = [0, 0, 0], sizes = [2, 16, 4], strides = [1, 1, 1]} : vector<2x16x128xbf16> to vector<2x16x4xbf16>
    %cst_151 = arith.constant dense<0.000000e+00> : vector<2x32x4xf32>
    %389 = tpu.matmul %387, %388, %cst_151 {dimension_numbers = #tpu.dot_dimension_numbers<[2], [1], [1], [2], [0, 0, 0, 1, 1, 2], [0], [0]>} : vector<2x32x16xbf16>, vector<2x16x4xbf16>, vector<2x32x4xf32> -> vector<2x32x4xf32>
    %390 = vector.extract_strided_slice %350 {offsets = [0, 0, 4], sizes = [2, 32, 4], strides = [1, 1, 1]} : vector<2x32x128xf32> to vector<2x32x4xf32>
    %391 = arith.truncf %390 : vector<2x32x4xf32> to vector<2x32x4xbf16>
    %392 = vector.extract_strided_slice %359 {offsets = [0, 0, 4], sizes = [2, 16, 4], strides = [1, 1, 1]} : vector<2x16x128xf32> to vector<2x16x4xf32>
    %393 = arith.truncf %392 : vector<2x16x4xf32> to vector<2x16x4xbf16>
    %cst_152 = arith.constant dense<0.000000e+00> : vector<2x32x16xf32>
    %394 = tpu.matmul %391, %393, %cst_152 {dimension_numbers = #tpu.dot_dimension_numbers<[2], [2], [1], [1], [0, 0, 0, 1, 1, 1], [0], [0]>} : vector<2x32x4xbf16>, vector<2x16x4xbf16>, vector<2x32x16xf32> -> vector<2x32x16xf32>
    %cst_153 = arith.constant 5.000000e-01 : f32
    %395 = vector.broadcast %cst_153 : f32 to vector<2x32x16xf32>
    %396 = arith.mulf %394, %395 : vector<2x32x16xf32>
    %cst_154 = arith.constant dense<0xFF800000> : vector<2x32xf32>
    %397 = vector.multi_reduction <maximumf>, %396, %cst_154 [2] : vector<2x32x16xf32> to vector<2x32xf32>
    %398 = vector.shape_cast %397 : vector<2x32xf32> to vector<2x32x1xf32>
    %399 = vector.broadcast %398 : vector<2x32x1xf32> to vector<2x32x16xf32>
    %400 = arith.subf %396, %399 : vector<2x32x16xf32>
    %401 = math.exp %400 : vector<2x32x16xf32>
    %cst_155 = arith.constant dense<0.000000e+00> : vector<2x32xf32>
    %402 = vector.multi_reduction <add>, %401, %cst_155 [2] : vector<2x32x16xf32> to vector<2x32xf32>
    %403 = vector.shape_cast %402 : vector<2x32xf32> to vector<2x32x1xf32>
    %404 = tpu.reciprocal %403 {approx = true} : vector<2x32x1xf32> -> vector<2x32x1xf32>
    %405 = vector.broadcast %404 : vector<2x32x1xf32> to vector<2x32x16xf32>
    %406 = arith.mulf %401, %405 : vector<2x32x16xf32>
    %407 = arith.truncf %406 : vector<2x32x16xf32> to vector<2x32x16xbf16>
    %408 = vector.extract_strided_slice %369 {offsets = [0, 0, 4], sizes = [2, 16, 4], strides = [1, 1, 1]} : vector<2x16x128xbf16> to vector<2x16x4xbf16>
    %cst_156 = arith.constant dense<0.000000e+00> : vector<2x32x4xf32>
    %409 = tpu.matmul %407, %408, %cst_156 {dimension_numbers = #tpu.dot_dimension_numbers<[2], [1], [1], [2], [0, 0, 0, 1, 1, 2], [0], [0]>} : vector<2x32x16xbf16>, vector<2x16x4xbf16>, vector<2x32x4xf32> -> vector<2x32x4xf32>
    %410 = vector.extract_strided_slice %350 {offsets = [0, 0, 8], sizes = [2, 32, 4], strides = [1, 1, 1]} : vector<2x32x128xf32> to vector<2x32x4xf32>
    %411 = arith.truncf %410 : vector<2x32x4xf32> to vector<2x32x4xbf16>
    %412 = vector.extract_strided_slice %359 {offsets = [0, 0, 8], sizes = [2, 16, 4], strides = [1, 1, 1]} : vector<2x16x128xf32> to vector<2x16x4xf32>
    %413 = arith.truncf %412 : vector<2x16x4xf32> to vector<2x16x4xbf16>
    %cst_157 = arith.constant dense<0.000000e+00> : vector<2x32x16xf32>
    %414 = tpu.matmul %411, %413, %cst_157 {dimension_numbers = #tpu.dot_dimension_numbers<[2], [2], [1], [1], [0, 0, 0, 1, 1, 1], [0], [0]>} : vector<2x32x4xbf16>, vector<2x16x4xbf16>, vector<2x32x16xf32> -> vector<2x32x16xf32>
    %cst_158 = arith.constant 5.000000e-01 : f32
    %415 = vector.broadcast %cst_158 : f32 to vector<2x32x16xf32>
    %416 = arith.mulf %414, %415 : vector<2x32x16xf32>
    %cst_159 = arith.constant dense<0xFF800000> : vector<2x32xf32>
    %417 = vector.multi_reduction <maximumf>, %416, %cst_159 [2] : vector<2x32x16xf32> to vector<2x32xf32>
    %418 = vector.shape_cast %417 : vector<2x32xf32> to vector<2x32x1xf32>
    %419 = vector.broadcast %418 : vector<2x32x1xf32> to vector<2x32x16xf32>
    %420 = arith.subf %416, %419 : vector<2x32x16xf32>
    %421 = math.exp %420 : vector<2x32x16xf32>
    %cst_160 = arith.constant dense<0.000000e+00> : vector<2x32xf32>
    %422 = vector.multi_reduction <add>, %421, %cst_160 [2] : vector<2x32x16xf32> to vector<2x32xf32>
    %423 = vector.shape_cast %422 : vector<2x32xf32> to vector<2x32x1xf32>
    %424 = tpu.reciprocal %423 {approx = true} : vector<2x32x1xf32> -> vector<2x32x1xf32>
    %425 = vector.broadcast %424 : vector<2x32x1xf32> to vector<2x32x16xf32>
    %426 = arith.mulf %421, %425 : vector<2x32x16xf32>
    %427 = arith.truncf %426 : vector<2x32x16xf32> to vector<2x32x16xbf16>
    %428 = vector.extract_strided_slice %369 {offsets = [0, 0, 8], sizes = [2, 16, 4], strides = [1, 1, 1]} : vector<2x16x128xbf16> to vector<2x16x4xbf16>
    %cst_161 = arith.constant dense<0.000000e+00> : vector<2x32x4xf32>
    %429 = tpu.matmul %427, %428, %cst_161 {dimension_numbers = #tpu.dot_dimension_numbers<[2], [1], [1], [2], [0, 0, 0, 1, 1, 2], [0], [0]>} : vector<2x32x16xbf16>, vector<2x16x4xbf16>, vector<2x32x4xf32> -> vector<2x32x4xf32>
    %430 = vector.extract_strided_slice %350 {offsets = [0, 0, 12], sizes = [2, 32, 4], strides = [1, 1, 1]} : vector<2x32x128xf32> to vector<2x32x4xf32>
    %431 = arith.truncf %430 : vector<2x32x4xf32> to vector<2x32x4xbf16>
    %432 = vector.extract_strided_slice %359 {offsets = [0, 0, 12], sizes = [2, 16, 4], strides = [1, 1, 1]} : vector<2x16x128xf32> to vector<2x16x4xf32>
    %433 = arith.truncf %432 : vector<2x16x4xf32> to vector<2x16x4xbf16>
    %cst_162 = arith.constant dense<0.000000e+00> : vector<2x32x16xf32>
    %434 = tpu.matmul %431, %433, %cst_162 {dimension_numbers = #tpu.dot_dimension_numbers<[2], [2], [1], [1], [0, 0, 0, 1, 1, 1], [0], [0]>} : vector<2x32x4xbf16>, vector<2x16x4xbf16>, vector<2x32x16xf32> -> vector<2x32x16xf32>
    %cst_163 = arith.constant 5.000000e-01 : f32
    %435 = vector.broadcast %cst_163 : f32 to vector<2x32x16xf32>
    %436 = arith.mulf %434, %435 : vector<2x32x16xf32>
    %cst_164 = arith.constant dense<0xFF800000> : vector<2x32xf32>
    %437 = vector.multi_reduction <maximumf>, %436, %cst_164 [2] : vector<2x32x16xf32> to vector<2x32xf32>
    %438 = vector.shape_cast %437 : vector<2x32xf32> to vector<2x32x1xf32>
    %439 = vector.broadcast %438 : vector<2x32x1xf32> to vector<2x32x16xf32>
    %440 = arith.subf %436, %439 : vector<2x32x16xf32>
    %441 = math.exp %440 : vector<2x32x16xf32>
    %cst_165 = arith.constant dense<0.000000e+00> : vector<2x32xf32>
    %442 = vector.multi_reduction <add>, %441, %cst_165 [2] : vector<2x32x16xf32> to vector<2x32xf32>
    %443 = vector.shape_cast %442 : vector<2x32xf32> to vector<2x32x1xf32>
    %444 = tpu.reciprocal %443 {approx = true} : vector<2x32x1xf32> -> vector<2x32x1xf32>
    %445 = vector.broadcast %444 : vector<2x32x1xf32> to vector<2x32x16xf32>
    %446 = arith.mulf %441, %445 : vector<2x32x16xf32>
    %447 = arith.truncf %446 : vector<2x32x16xf32> to vector<2x32x16xbf16>
    %448 = vector.extract_strided_slice %369 {offsets = [0, 0, 12], sizes = [2, 16, 4], strides = [1, 1, 1]} : vector<2x16x128xbf16> to vector<2x16x4xbf16>
    %cst_166 = arith.constant dense<0.000000e+00> : vector<2x32x4xf32>
    %449 = tpu.matmul %447, %448, %cst_166 {dimension_numbers = #tpu.dot_dimension_numbers<[2], [1], [1], [2], [0, 0, 0, 1, 1, 2], [0], [0]>} : vector<2x32x16xbf16>, vector<2x16x4xbf16>, vector<2x32x4xf32> -> vector<2x32x4xf32>
    %cst_167 = arith.constant 0.000000e+00 : f32
    %450 = vector.broadcast %cst_167 : f32 to vector<2x32x112xf32>
    %451 = tpu.concatenate %389, %409, %429, %449, %450 in 2 : vector<2x32x4xf32>, vector<2x32x4xf32>, vector<2x32x4xf32>, vector<2x32x4xf32>, vector<2x32x112xf32> -> vector<2x32x128xf32>
    %452 = vector.shape_cast %451 : vector<2x32x128xf32> to vector<64x128xf32>
    %453 = arith.truncf %452 : vector<64x128xf32> to vector<64x128xbf16>
    %c0_168 = arith.constant 0 : index
    %c0_169 = arith.constant 0 : index
    %454 = vector.load %arg13[%c0_168, %c0_169] : memref<128x128xbf16, #tpu.memory_space<vmem>>, vector<128x128xbf16>
    %cst_170 = arith.constant dense<0.000000e+00> : vector<64x128xf32>
    %455 = tpu.matmul %453, %454, %cst_170 {dimension_numbers = #tpu.dot_dimension_numbers<[1], [0], [0], [1], [0, 0, 1, 1], [], []>} : vector<64x128xbf16>, vector<128x128xbf16>, vector<64x128xf32> -> vector<64x128xf32>
    %c0_171 = arith.constant 0 : index
    %c0_172 = arith.constant 0 : index
    %456 = vector.load %arg14[%c0_171, %c0_172] : memref<1x128xf32, #tpu.memory_space<vmem>>, vector<1x128xf32>
    %457 = vector.broadcast %456 : vector<1x128xf32> to vector<64x128xf32>
    %458 = arith.addf %455, %457 : vector<64x128xf32>
    %459 = arith.addf %5, %458 : vector<64x128xf32>
    %460 = vector.broadcast %12 : vector<1x128xf32> to vector<64x128xf32>
    %461 = arith.mulf %459, %460 : vector<64x128xf32>
    %cst_173 = arith.constant dense<0.000000e+00> : vector<64xf32>
    %462 = vector.multi_reduction <add>, %461, %cst_173 [1] : vector<64x128xf32> to vector<64xf32>
    %463 = vector.shape_cast %462 : vector<64xf32> to vector<64x1xf32>
    %cst_174 = arith.constant 3.125000e-02 : f32
    %464 = vector.broadcast %cst_174 : f32 to vector<64x1xf32>
    %465 = arith.mulf %463, %464 : vector<64x1xf32>
    %466 = vector.broadcast %465 : vector<64x1xf32> to vector<64x128xf32>
    %467 = arith.subf %461, %466 : vector<64x128xf32>
    %468 = vector.broadcast %12 : vector<1x128xf32> to vector<64x128xf32>
    %469 = arith.mulf %467, %468 : vector<64x128xf32>
    %470 = arith.mulf %469, %469 : vector<64x128xf32>
    %cst_175 = arith.constant dense<0.000000e+00> : vector<64xf32>
    %471 = vector.multi_reduction <add>, %470, %cst_175 [1] : vector<64x128xf32> to vector<64xf32>
    %472 = vector.shape_cast %471 : vector<64xf32> to vector<64x1xf32>
    %cst_176 = arith.constant 3.125000e-02 : f32
    %473 = vector.broadcast %cst_176 : f32 to vector<64x1xf32>
    %474 = arith.mulf %472, %473 : vector<64x1xf32>
    %cst_177 = arith.constant 9.99999974E-6 : f32
    %475 = vector.broadcast %cst_177 : f32 to vector<64x1xf32>
    %476 = arith.addf %474, %475 : vector<64x1xf32>
    %477 = math.rsqrt %476 : vector<64x1xf32>
    %478 = vector.broadcast %477 : vector<64x1xf32> to vector<64x128xf32>
    %479 = arith.mulf %469, %478 : vector<64x128xf32>
    %480 = vector.extract_strided_slice %6 {offsets = [3, 0], sizes = [1, 128], strides = [1, 1]} : vector<4x128xf32> to vector<1x128xf32>
    %481 = vector.broadcast %480 : vector<1x128xf32> to vector<64x128xf32>
    %482 = arith.mulf %479, %481 : vector<64x128xf32>
    %483 = vector.extract_strided_slice %7 {offsets = [3, 0], sizes = [1, 128], strides = [1, 1]} : vector<4x128xf32> to vector<1x128xf32>
    %484 = vector.broadcast %483 : vector<1x128xf32> to vector<64x128xf32>
    %485 = arith.addf %482, %484 : vector<64x128xf32>
    %486 = vector.shape_cast %341 : vector<32x128xf32> to vector<2x16x128xf32>
    %c0_178 = arith.constant 0 : index
    %c0_179 = arith.constant 0 : index
    %c0_180 = arith.constant 0 : index
    %487 = vector.load %arg21[%c0_178, %c0_179, %c0_180] : memref<2x16x128xf32, #tpu.memory_space<vmem>>, vector<2x16x128xf32>
    tpu.vector_store %arg21[%c0_178, %c0_179, %c0_180], %486 {strides = array<i32>} : memref<2x16x128xf32, #tpu.memory_space<vmem>>, vector<2x16x128xf32>,
    %488 = vector.shape_cast %485 : vector<64x128xf32> to vector<2x32x128xf32>
    %c0_181 = arith.constant 0 : index
    %c0_182 = arith.constant 0 : index
    %c0_183 = arith.constant 0 : index
    %489 = vector.load %arg22[%c0_181, %c0_182, %c0_183] : memref<2x32x128xf32, #tpu.memory_space<vmem>>, vector<2x32x128xf32>
    tpu.vector_store %arg22[%c0_181, %c0_182, %c0_183], %488 {strides = array<i32>} : memref<2x32x128xf32, #tpu.memory_space<vmem>>, vector<2x32x128xf32>,
    return
  }
  func.func @transform_0(%arg0: i32) -> (i32, i32, i32) {
    %c0_i32 = arith.constant 0 : i32
    %c0_i32_0 = arith.constant 0 : i32
    %c0_i32_1 = arith.constant 0 : i32
    return %arg0, %c0_i32, %c0_i32_0 : i32, i32, i32
  }
  func.func @transform_1(%arg0: i32) -> (i32, i32, i32) {
    %c0_i32 = arith.constant 0 : i32
    %c0_i32_0 = arith.constant 0 : i32
    %c0_i32_1 = arith.constant 0 : i32
    return %arg0, %c0_i32, %c0_i32_0 : i32, i32, i32
  }
  func.func @transform_2(%arg0: i32) -> (i32, i32, i32) {
    %c0_i32 = arith.constant 0 : i32
    %c0_i32_0 = arith.constant 0 : i32
    %c0_i32_1 = arith.constant 0 : i32
    %c0_i32_2 = arith.constant 0 : i32
    return %c0_i32, %c0_i32_0, %c0_i32_1 : i32, i32, i32
  }
  func.func @transform_3(%arg0: i32) -> (i32, i32, i32) {
    %c0_i32 = arith.constant 0 : i32
    %c0_i32_0 = arith.constant 0 : i32
    %c0_i32_1 = arith.constant 0 : i32
    %c0_i32_2 = arith.constant 0 : i32
    return %c0_i32, %c0_i32_0, %c0_i32_1 : i32, i32, i32
  }
  func.func @transform_4(%arg0: i32) -> (i32, i32) {
    %c0_i32 = arith.constant 0 : i32
    %c0_i32_0 = arith.constant 0 : i32
    %c0_i32_1 = arith.constant 0 : i32
    return %c0_i32, %c0_i32_0 : i32, i32
  }
  func.func @transform_5(%arg0: i32) -> (i32, i32) {
    %c0_i32 = arith.constant 0 : i32
    %c0_i32_0 = arith.constant 0 : i32
    %c0_i32_1 = arith.constant 0 : i32
    return %c0_i32, %c0_i32_0 : i32, i32
  }
  func.func @transform_6(%arg0: i32) -> (i32, i32, i32) {
    %c0_i32 = arith.constant 0 : i32
    %c0_i32_0 = arith.constant 0 : i32
    %c0_i32_1 = arith.constant 0 : i32
    %c0_i32_2 = arith.constant 0 : i32
    return %c0_i32, %c0_i32_0, %c0_i32_1 : i32, i32, i32
  }
  func.func @transform_7(%arg0: i32) -> (i32, i32, i32) {
    %c0_i32 = arith.constant 0 : i32
    %c0_i32_0 = arith.constant 0 : i32
    %c0_i32_1 = arith.constant 0 : i32
    %c0_i32_2 = arith.constant 0 : i32
    return %c0_i32, %c0_i32_0, %c0_i32_1 : i32, i32, i32
  }
  func.func @transform_8(%arg0: i32) -> (i32, i32) {
    %c0_i32 = arith.constant 0 : i32
    %c0_i32_0 = arith.constant 0 : i32
    %c0_i32_1 = arith.constant 0 : i32
    return %c0_i32, %c0_i32_0 : i32, i32
  }
  func.func @transform_9(%arg0: i32) -> (i32, i32) {
    %c0_i32 = arith.constant 0 : i32
    %c0_i32_0 = arith.constant 0 : i32
    %c0_i32_1 = arith.constant 0 : i32
    return %c0_i32, %c0_i32_0 : i32, i32
  }
  func.func @transform_10(%arg0: i32) -> (i32, i32, i32) {
    %c0_i32 = arith.constant 0 : i32
    %c0_i32_0 = arith.constant 0 : i32
    %c0_i32_1 = arith.constant 0 : i32
    %c0_i32_2 = arith.constant 0 : i32
    return %c0_i32, %c0_i32_0, %c0_i32_1 : i32, i32, i32
  }
  func.func @transform_11(%arg0: i32) -> (i32, i32, i32) {
    %c0_i32 = arith.constant 0 : i32
    %c0_i32_0 = arith.constant 0 : i32
    %c0_i32_1 = arith.constant 0 : i32
    %c0_i32_2 = arith.constant 0 : i32
    return %c0_i32, %c0_i32_0, %c0_i32_1 : i32, i32, i32
  }
  func.func @transform_12(%arg0: i32) -> (i32, i32) {
    %c0_i32 = arith.constant 0 : i32
    %c0_i32_0 = arith.constant 0 : i32
    %c0_i32_1 = arith.constant 0 : i32
    return %c0_i32, %c0_i32_0 : i32, i32
  }
  func.func @transform_13(%arg0: i32) -> (i32, i32) {
    %c0_i32 = arith.constant 0 : i32
    %c0_i32_0 = arith.constant 0 : i32
    %c0_i32_1 = arith.constant 0 : i32
    return %c0_i32, %c0_i32_0 : i32, i32
  }
  func.func @transform_14(%arg0: i32) -> (i32, i32) {
    %c0_i32 = arith.constant 0 : i32
    %c0_i32_0 = arith.constant 0 : i32
    %c0_i32_1 = arith.constant 0 : i32
    return %c0_i32, %c0_i32_0 : i32, i32
  }
  func.func @transform_15(%arg0: i32) -> (i32, i32) {
    %c0_i32 = arith.constant 0 : i32
    %c0_i32_0 = arith.constant 0 : i32
    %c0_i32_1 = arith.constant 0 : i32
    return %c0_i32, %c0_i32_0 : i32, i32
  }
  func.func @transform_16(%arg0: i32) -> (i32, i32) {
    %c0_i32 = arith.constant 0 : i32
    %c0_i32_0 = arith.constant 0 : i32
    %c0_i32_1 = arith.constant 0 : i32
    return %c0_i32, %c0_i32_0 : i32, i32
  }
  func.func @transform_17(%arg0: i32) -> (i32, i32) {
    %c0_i32 = arith.constant 0 : i32
    %c0_i32_0 = arith.constant 0 : i32
    %c0_i32_1 = arith.constant 0 : i32
    return %c0_i32, %c0_i32_0 : i32, i32
  }
  func.func @transform_18(%arg0: i32) -> (i32, i32) {
    %c0_i32 = arith.constant 0 : i32
    %c0_i32_0 = arith.constant 0 : i32
    %c0_i32_1 = arith.constant 0 : i32
    return %c0_i32, %c0_i32_0 : i32, i32
  }
  func.func @transform_19(%arg0: i32) -> (i32, i32) {
    %c0_i32 = arith.constant 0 : i32
    %c0_i32_0 = arith.constant 0 : i32
    %c0_i32_1 = arith.constant 0 : i32
    return %c0_i32, %c0_i32_0 : i32, i32
  }
  func.func @transform_20(%arg0: i32) -> (i32, i32, i32) {
    %c0_i32 = arith.constant 0 : i32
    %c0_i32_0 = arith.constant 0 : i32
    %c0_i32_1 = arith.constant 0 : i32
    return %arg0, %c0_i32, %c0_i32_0 : i32, i32, i32
  }
  func.func @transform_21(%arg0: i32) -> (i32, i32, i32) {
    %c0_i32 = arith.constant 0 : i32
    %c0_i32_0 = arith.constant 0 : i32
    %c0_i32_1 = arith.constant 0 : i32
    return %arg0, %c0_i32, %c0_i32_0 : i32, i32, i32
  }
}

</mosaic_0001>

<bundles_post_ra>
// kernel: tpu_custom_call.1
= control target key start
LH: loop header
LB: loop body
LE: loop exit
PB: predicated region body
PF: predicated region fallthrough
CT: control target
= control target key end

     0   :  { %s7925_s0 = inlined_call_operand.hbm [shape: bf16[2,16,128], index: 0, kind: input, shape index: {}]   ;;  %s7926_s1 = inlined_call_operand.hbm [shape: bf16[2,32,128], index: 1, kind: input, shape index: {}]   ;;  %s7927_s2 = inlined_call_operand.hbm [shape: bf16[3,128,128], index: 2, kind: input, shape index: {}]   ;;  %s7928_s3 = inlined_call_operand.hbm [shape: f32[3,1,128], index: 3, kind: input, shape index: {}]   ;;  %s7929_s4 = inlined_call_operand.hbm [shape: bf16[128,128], index: 4, kind: input, shape index: {}]   ;;  %s7930_s5 = inlined_call_operand.hbm [shape: f32[1,128], index: 5, kind: input, shape index: {}]   ;;  %s7931_s6 = inlined_call_operand.hbm [shape: bf16[3,128,128], index: 6, kind: input, shape index: {}]   ;;  %s7932_s7 = inlined_call_operand.hbm [shape: f32[3,1,128], index: 7, kind: input, shape index: {}]   ;;  %s7933_s8 = inlined_call_operand.hbm [shape: bf16[128,128], index: 8, kind: input, shape index: {}]   ;;  %s7934_s9 = inlined_call_operand.hbm [shape: f32[1,128], index: 9, kind: input, shape index: {}]   ;;  %s7935_s10 = inlined_call_operand.hbm [shape: bf16[3,128,128], index: 10, kind: input, shape index: {}]   ;;  %s7936_s11 = inlined_call_operand.hbm [shape: f32[3,1,128], index: 11, kind: input, shape index: {}]   ;;  %s7937_s12 = inlined_call_operand.hbm [shape: bf16[128,128], index: 12, kind: input, shape index: {}]   ;;  %s7938_s13 = inlined_call_operand.vmem [shape: f32[1,128], index: 13, kind: input, shape index: {}]   ;;  %s7939_s14 = inlined_call_operand.hbm [shape: bf16[128,128], index: 14, kind: input, shape index: {}]   ;;  %s7940_s15 = inlined_call_operand.vmem [shape: f32[1,128], index: 15, kind: input, shape index: {}]   ;;  %s7941_s16 = inlined_call_operand.hbm [shape: bf16[128,128], index: 16, kind: input, shape index: {}]   ;;  %s7942_s17 = inlined_call_operand.vmem [shape: f32[1,128], index: 17, kind: input, shape index: {}]   ;;  %s7943_s18 = inlined_call_operand.vmem [shape: f32[4,128], index: 18, kind: input, shape index: {}]   ;;  %s7944_s19 = inlined_call_operand.vmem [shape: f32[4,128], index: 19, kind: input, shape index: {}]   ;;  %s7945_s20 = inlined_call_operand.hbm [shape: f32[2,16,128], index: 20, kind: output, shape index: {0}]   ;;  %s7946_s21 = inlined_call_operand.hbm [shape: f32[2,32,128], index: 21, kind: output, shape index: {1}]  }
   0x1   :  { %7951 = sst [smem:[#allocation39_spill]] %s7925_s0 }
   0x2   :  { %7952 = sst [smem:[#allocation40_spill]] %s7926_s1 }
   0x3   :  { %7953 = sst [smem:[#allocation41_spill]] %s7927_s2 }
   0x4   :  { %7954 = sst [smem:[#allocation42_spill]] %s7928_s3 }
   0x5   :  { %7955 = sst [smem:[#allocation43_spill]] %s7929_s4 }
   0x6   :  { %7956 = sst [smem:[#allocation44_spill]] %s7930_s5 }
   0x7   :  { %7957 = sst [smem:[#allocation45_spill]] %s7945_s20 }
   0x8   :  { %7958 = sst [smem:[#allocation46_spill]] %s7946_s21 }
   0x9   :  { %27 = vsyncpa [#allocation3], 0 }
   0xa   :  { %28 = vsyncpa [#allocation6], 0 }
   0xb   :  { %29 = vsyncpa [#allocation9], 0 }
   0xc   :  { %30 = vsyncpa [#allocation12], 0 }
   0xd   :  { %31 = vsyncpa [#allocation15], 0 }
   0xe   :  { %32 = vsyncpa [#allocation18], 0 }
   0xf   :  { %33 = vsyncpa [#allocation21], 0 }
  0x10   :  { %34 = vsyncpa [#allocation24], 0 }
  0x11   :  { %35 = vsyncpa [#allocation4], 0 }
  0x12   :  { %36 = vsyncpa [#allocation28], 0  ;;  %s7959_s26 = sld [smem:[#allocation40_spill]]  ;;  %s6408_s3 = smov [#allocation5]  }
  0x13   :  { %s56_s28 = sshll.u32 %s6408_s3, 4  ;;  %s7960_s4 = sld [smem:[#allocation42_spill]]  ;;  %s57_s28 = int_to_ptr.vmem [resolvable:$true] %s56_s28 }
  0x14   :  { %s7947_s5 = smov 64   ;;  %s7949_s22 = smov 4  }
  0x15   :  { %s6411_s23 = smov [#allocation8]   ;;  %s6412_s24 = smov 16  }
  0x16   :  { %s82_s1 = sshll.u32 %s6411_s23, 4  ;;  %s6413_s2 = smov 1   ;;  %s83_s1 = int_to_ptr.vmem [resolvable:$true] %s82_s1 }
  0x17   :  { %s7961_s3 = sld [smem:[#allocation44_spill]]  ;;  %s6414_s0 = smov [#allocation11]  }
  0x18   :  { %s54_s27 = sshll.u32 %s7959_s26, 4  ;;  %s6415_s23 = smov [#allocation14]   ;;  %s55_s27 = int_to_ptr.hbm [resolvable:$true] %s54_s27 }
  0x19   :  { %s80_s30 = sshll.u32 %s7960_s4, 4  ;;  %s109_s4 = sshll.u32 %s6414_s0, 4  ;;  %s81_s30 = int_to_ptr.hbm [resolvable:$true] %s80_s30  ;;  %s110_s4 = int_to_ptr.vmem [resolvable:$true] %s109_s4 }
  0x1a   :  { %62 = dma.hbm_to_vmem [thread:$0]  %s55_s27, 512, %s57_s28, [#allocation6], %s7947_s5, %s7947_s5, %s7949_s22  }
  0x1b   :  { %88 = dma.hbm_to_vmem [thread:$0]  %s81_s30, 48, %s83_s1, [#allocation9], %s6412_s24, %s6412_s24, %s6413_s2  }
  0x1c   :  { %s130_s28 = sshll.u32 %s7932_s7, 4  ;;  %s132_s5 = sshll.u32 %s6415_s23, 4  ;;  %s131_s28 = int_to_ptr.hbm [resolvable:$true] %s130_s28  ;;  %s133_s5 = int_to_ptr.vmem [resolvable:$true] %s132_s5 }
  0x1d   :  { %s107_s29 = sshll.u32 %s7961_s3, 4  ;;  %s157_s30 = sshll.u32 %s7934_s9, 4  ;;  %s108_s29 = int_to_ptr.hbm [resolvable:$true] %s107_s29  ;;  %s158_s30 = int_to_ptr.hbm [resolvable:$true] %s157_s30 }
  0x1e   :  { %112 = dma.hbm_to_vmem [thread:$0]  %s108_s29, 16, %s110_s4, [#allocation12]  }
  0x1f   :  { %138 = dma.hbm_to_vmem [thread:$0]  %s131_s28, 48, %s133_s5, [#allocation15], %s6412_s24, %s6412_s24, %s6413_s2  }
  0x20   :  { %s180_s26 = sshll.u32 %s7936_s11, 4  ;;  %s6416_s21 = smov [#allocation17]   ;;  %s181_s26 = int_to_ptr.hbm [resolvable:$true] %s180_s26 }
  0x21   :  { %s159_s7 = sshll.u32 %s6416_s21, 4  ;;  %s6417_s3 = smov [#allocation20]   ;;  %s160_s7 = int_to_ptr.vmem [resolvable:$true] %s159_s7 }
  0x22   :  { %162 = dma.hbm_to_vmem [thread:$0]  %s158_s30, 16, %s160_s7, [#allocation18]  }
  0x23   :  { %s182_s29 = sshll.u32 %s6417_s3, 4  ;;  %s208_s9 = sshll.u32 %s7939_s14, 4  ;;  %s183_s29 = int_to_ptr.vmem [resolvable:$true] %s182_s29  ;;  %s209_s9 = int_to_ptr.hbm [resolvable:$true] %s208_s9 }
  0x24   :  { %188 = dma.hbm_to_vmem [thread:$0]  %s181_s26, 48, %s183_s29, [#allocation21], %s6412_s24, %s6412_s24, %s6413_s2  }
  0x25   :  { %s7962_s11 = sld [smem:[#allocation39_spill]]  ;;  %s6418_s27 = smov [#allocation23]  }
  0x26   :  { %s210_s28 = sshll.u32 %s6418_s27, 4  ;;  %s7963_s23 = smov 4   ;;  %s211_s28 = int_to_ptr.vmem [resolvable:$true] %s210_s28 }
  0x27   :  { %s7964_s30 = smov 64   ;;  %s6419_s1 = smov [#allocation2]  }
  0x28   :  { %216 = dma.hbm_to_vmem [thread:$0]  %s209_s9, 1024, %s211_s28, [#allocation24], %s7964_s30, %s7964_s30, %s7963_s23  }
  0x29   :  { %s43_s14 = sshll.u32 %s6419_s1, 4  ;;  %s7965_s7 = sld [smem:[#allocation41_spill]]  ;;  %s44_s14 = int_to_ptr.vmem [resolvable:$true] %s43_s14 }
  0x2a   :  { %s7966_s29 = sld [smem:[#allocation43_spill]]  ;;  %s6420_s20 = smov [#allocation7]  }
  0x2b   :  { %s41_s4 = sshll.u32 %s7962_s11, 4  ;;  %s69_s5 = sshll.u32 %s6420_s20, 4  ;;  %s42_s4 = int_to_ptr.hbm [resolvable:$true] %s41_s4  ;;  %s70_s5 = int_to_ptr.vmem [resolvable:$true] %s69_s5 }
  0x2c   :  { %49 = dma.hbm_to_vmem [thread:$0]  %s42_s4, 256, %s44_s14, [#allocation3], %s7964_s30, %s7964_s30, %s7963_s23  }
  0x2d   :  { %s6421_s9 = smov [#allocation10]   ;;  %s117_s28 = sshll.u32 %s7931_s6, 4  ;;  %s118_s28 = int_to_ptr.hbm [resolvable:$true] %s117_s28 }
  0x2e   :  { %s95_s22 = sshll.u32 %s6421_s9, 4  ;;  %s143_s14 = sshll.u32 %s7933_s8, 4  ;;  %s96_s22 = int_to_ptr.vmem [resolvable:$true] %s95_s22  ;;  %s144_s14 = int_to_ptr.hbm [resolvable:$true] %s143_s14 }
  0x2f   :  { %s67_s3 = sshll.u32 %s7965_s7, 4  ;;  %s6422_s25 = smov [#allocation13]   ;;  %s68_s3 = int_to_ptr.hbm [resolvable:$true] %s67_s3 }
  0x30   :  { %s93_s0 = sshll.u32 %s7966_s29, 4  ;;  %s119_s21 = sshll.u32 %s6422_s25, 4  ;;  %s94_s0 = int_to_ptr.hbm [resolvable:$true] %s93_s0  ;;  %s120_s21 = int_to_ptr.vmem [resolvable:$true] %s119_s21 }
  0x31   :  { %75 = dma.hbm_to_vmem [thread:$0]  %s68_s3, 3072, %s70_s5, [#allocation6], %s7964_s30, %s7964_s30, %s7963_s23  }
  0x32   :  { %101 = dma.hbm_to_vmem [thread:$0]  %s94_s0, 1024, %s96_s22, [#allocation9], %s7964_s30, %s7964_s30, %s7963_s23  }
  0x33   :  { %125 = dma.hbm_to_vmem [thread:$0]  %s118_s28, 3072, %s120_s21, [#allocation12], %s7964_s30, %s7964_s30, %s7963_s23  }
  0x34   :  { %s6423_s7 = smov [#allocation16]   ;;  %s167_s26 = sshll.u32 %s7935_s10, 4  ;;  %s168_s26 = int_to_ptr.hbm [resolvable:$true] %s167_s26 }
  0x35   :  { %s145_s6 = sshll.u32 %s6423_s7, 4  ;;  %s193_s0 = sshll.u32 %s7937_s12, 4  ;;  %s146_s6 = int_to_ptr.vmem [resolvable:$true] %s145_s6  ;;  %s194_s0 = int_to_ptr.hbm [resolvable:$true] %s193_s0 }
  0x36   :  { %151 = dma.hbm_to_vmem [thread:$0]  %s144_s14, 1024, %s146_s6, [#allocation15], %s7964_s30, %s7964_s30, %s7963_s23  }
  0x37   :  { %s6424_s20 = smov [#allocation19]   ;;  %s6425_s9 = smov [#allocation22]  }
  0x38   :  { %s169_s5 = sshll.u32 %s6424_s20, 4  ;;  %s195_s10 = sshll.u32 %s6425_s9, 4  ;;  %s170_s5 = int_to_ptr.vmem [resolvable:$true] %s169_s5  ;;  %s196_s10 = int_to_ptr.vmem [resolvable:$true] %s195_s10 }
  0x39   :  { %175 = dma.hbm_to_vmem [thread:$0]  %s168_s26, 3072, %s170_s5, [#allocation18], %s7964_s30, %s7964_s30, %s7963_s23  }
  0x3a   :  { %s223_s27 = sshll.u32 %s7941_s16, 4  ;;  %s6426_s12 = smov [#allocation25]   ;;  %s224_s27 = int_to_ptr.hbm [resolvable:$true] %s223_s27 }
  0x3b   :  { %201 = dma.hbm_to_vmem [thread:$0]  %s194_s0, 1024, %s196_s10, [#allocation21], %s7964_s30, %s7964_s30, %s7963_s23  }
  0x3c   :  { %s225_s28 = sshll.u32 %s6426_s12, 4  ;;  %s226_s28 = int_to_ptr.vmem [resolvable:$true] %s225_s28 }
  0x3d   :  { %231 = dma.hbm_to_vmem [thread:$0]  %s224_s27, 1024, %s226_s28, [#allocation24], %s7964_s30, %s7964_s30, %s7963_s23  }
  0x3e   :  { %6388 = dma.done.wait [#allocation3], 256  }
  0x3f   :  { %6389 = vsyncadd [#allocation3], 4294967040 }
  0x40   :  { %6390 = dma.done.wait [#allocation6], 3584  }
  0x41   :  { %6391 = vsyncadd [#allocation6], 4294963712 }
  0x42   :  { %6392 = dma.done.wait [#allocation9], 1072  }
  0x43   :  { %6393 = vsyncadd [#allocation9], 4294966224 }
  0x44   :  { %6394 = dma.done.wait [#allocation12], 3088  }
  0x45   :  { %6395 = vsyncadd [#allocation12], 4294964208 }
  0x46   :  { %6396 = dma.done.wait [#allocation15], 1072  }
  0x47   :  { %6397 = vsyncadd [#allocation15], 4294966224 }
  0x48   :  { %6398 = dma.done.wait [#allocation18], 3088  }
  0x49   :  { %6399 = vsyncadd [#allocation18], 4294964208 }
  0x4a   :  { %6400 = dma.done.wait [#allocation21], 1072  }
  0x4b   :  { %6401 = vsyncadd [#allocation21], 4294966224 }
  0x4c   :  { %6402 = dma.done.wait [#allocation24], 2048  }
  0x4d   :  { %6403 = vsyncadd [#allocation24], 4294965248  ;;  %v5372_v0 = vld [vmem:[#allocation7 + $0x38] sm:$0xff]  ;;  %v5371_v2 = vld [vmem:[#allocation7 + $0x30] sm:$0xff]  ;;  %vm619_vm0 = vcmask 64512   ;;  %s6427_s16 = smov 112  }
  0x4e   :  { %v5380_v1 = vld [vmem:[#allocation7 + $0x78] sm:$0xff]  ;;  %400 = vmatpush.bf16.msra.mxu0 %v5372_v0  ;;  %v5379_v3 = vld [vmem:[#allocation7 + $0x70] sm:$0xff]  ;;  %v5370_v4 = vld [vmem:[#allocation7 + $0x28] sm:$0xff]  ;;  %s6428_s30 = smov 120   ;;  %s6429_s4 = smov 104   ;;  %vm674_vm1 = vcmask 130048  }
  0x4f   :  { %489 = vmatpush.bf16.msra.mxu1 %v5380_v1  ;;  %v5378_v5 = vld [vmem:[#allocation7 + $0x68] sm:$0xff]  ;;  %v5369_v6 = vld [vmem:[#allocation7 + $0x20] sm:$0xff]  ;;  %v5368_v8 = vld [vmem:[#allocation7 + $0x18] sm:$0xff]  ;;  %s6430_s1 = smov 8   ;;  %s6431_s14 = smov 24   ;;  %vm1285_vm2 = vcmask 195584  }
  0x50   :  { %v5377_v7 = vld [vmem:[#allocation7 + $0x60] sm:$0xff]  ;;  %v5376_v9 = vld [vmem:[#allocation7 + $0x58] sm:$0xff]  ;;  %v5367_v10 = vld [vmem:[#allocation7 + $0x10] sm:$0xff]  ;;  %vm1290_vm3 = vcmask 261120   ;;  %s6433_s6 = smov 124   ;;  %s6434_s3 = smov 116  }
  0x51   :  { %v5375_v11 = vld [vmem:[#allocation7 + $0x50] sm:$0xff]  ;;  %v5366_v12 = vld [vmem:[#allocation7 + $0x8] sm:$0xff]  ;;  %v5365_v14 = vld [vmem:[#allocation7] sm:$0xff]  ;;  %s6435_s2 = smov 12   ;;  %s7971_s22 = sld [smem:[#allocation45_spill]] }
  0x52   :  { %401 = vmatpush.bf16.msra.mxu0 %v5371_v2  ;;  %v5374_v13 = vld [vmem:[#allocation7 + $0x48] sm:$0xff]  ;;  %v5373_v15 = vld [vmem:[#allocation7 + $0x40] sm:$0xff]  ;;  %v6633_v16 = vld [vmem:[#allocation2] sm:$0xff]   ;;  %s6436_s27 = smov [#allocation26]   ;;  %s6437_s28 = smov 128  }
  0x53   :  { %490 = vmatpush.bf16.msra.mxu1 %v5379_v3  ;;  %v6637_v17 = vld [vmem:[#allocation2 + $0x8] sm:$0xff]   ;;  %v5657_v20 = vld [vmem:[#allocation8 + $0x1] ss:$0 sm:$0xff]  ;;  %v5656_v22 = vld [vmem:[#allocation8] ss:$0 sm:$0xff]  ;;  %s4788_s12 = sshll.u32 %s6436_s27, 4  ;;  %s4789_s12 = int_to_ptr.vmem [resolvable:$true] %s4788_s12 }
  0x54   :  { %vm6859_vm4 = vmpackc.low %vm1290_vm3, %vm1290_vm3  ;;  %s7972_s21 = sld [smem:[#allocation46_spill]] }
  0x56   :  { %402 = vmatpush.bf16.msra.mxu0 %v5370_v4 }
  0x57   :  { %491 = vmatpush.bf16.msra.mxu1 %v5378_v5  ;;  %s4790_s11 = sshll.u32 %s7971_s22, 4  ;;  %s4791_s11 = int_to_ptr.hbm [resolvable:$true] %s4790_s11 }
  0x5a   :  { %403 = vmatpush.bf16.msra.mxu0 %v5369_v6  ;;  %s4803_s7 = sshll.u32 %s7972_s21, 4  ;;  %s4804_s7 = int_to_ptr.hbm [resolvable:$true] %s4803_s7 }
  0x5b   :  { %492 = vmatpush.bf16.msra.mxu1 %v5377_v7 }
  0x5e   :  { %404 = vmatpush.bf16.msra.mxu0 %v5368_v8  ;;  %v5388_v8 = vld [vmem:[#allocation7 + $0xb8] sm:$0xff] }
  0x5f   :  { %493 = vmatpush.bf16.msra.mxu1 %v5376_v9  ;;  %578 = vmatpush.bf16.msra.mxu2 %v5388_v8 }
  0x62   :  { %405 = vmatpush.bf16.msra.mxu0 %v5367_v10  ;;  %v5387_v10 = vld [vmem:[#allocation7 + $0xb0] sm:$0xff] }
  0x63   :  { %494 = vmatpush.bf16.msra.mxu1 %v5375_v11  ;;  %579 = vmatpush.bf16.msra.mxu2 %v5387_v10 }
  0x66   :  { %406 = vmatpush.bf16.msra.mxu0 %v5366_v12 }
  0x67   :  { %495 = vmatpush.bf16.msra.mxu1 %v5374_v13  ;;  %v5386_v13 = vld [vmem:[#allocation7 + $0xa8] sm:$0xff] }
  0x68   :  { %580 = vmatpush.bf16.msra.mxu2 %v5386_v13 }
  0x6a   :  { %407 = vmatpush.bf16.msra.mxu0 %v5365_v14 }
  0x6b   :  { %496 = vmatpush.bf16.msra.mxu1 %v5373_v15 }
  0x6d   :  { %408 = vmatmul.bf16.vlgmr.msra.gmra.mxu0 %v6633_v16 }
  0x6e   :  { %497 = vmatmul.bf16.vlgmr.msra.gmra.mxu1 %v6633_v16 }
  0x7d   :  { %413 = vmatmul.bf16.gmra.mxu0 %v6637_v17 }
  0x7e   :  { %502 = vmatmul.bf16.gmra.mxu1 %v6637_v17 }
  0xea   :  { %v409_v18 = vpop.f32.mrf.mxu0 }
  0xeb   :  { %v498_v19 = vpop.f32.mrf.mxu1  ;;  %v410_v27 = vadd.f32 %v5656_v22, %v409_v18 }
  0xec   :  { %v499_v21 = vadd.f32 %v5657_v20, %v498_v19  ;;  %v5385_v19 = vld [vmem:[#allocation7 + $0xa0] sm:$0xff] }
  0xed   :  { %v601_v32 = vpack.c.bf16 %v410_v27, %v410_v27  ;;  %581 = vmatpush.bf16.msra.mxu2 %v5385_v19 }
  0xee   :  { %v605_v25 = vpack.c.bf16 %v499_v21, %v499_v21 }
  0xef   :  { %v611_v38 = vunpack.c.l.b16 %v601_v32 }
  0xf0   :  { %v616_v30 = vunpack.c.l.b16 %v605_v25 }
  0xf2   :  { %v411_v23 = vpop.f32.mrf.mxu0 }
  0xf3   :  { %v500_v24 = vpop.f32.mrf.mxu1  ;;  %v412_v28 = vadd.f32 %v5656_v22, %v411_v23  ;;  %v5384_v23 = vld [vmem:[#allocation7 + $0x98] sm:$0xff] }
  0xf4   :  { %v501_v26 = vadd.f32 %v5657_v20, %v500_v24  ;;  %582 = vmatpush.bf16.msra.mxu2 %v5384_v23 }
  0xf5   :  { %v602_v33 = vpack.c.bf16 %v412_v28, %v412_v28  ;;  %v5382_v28 = vld [vmem:[#allocation7 + $0x88] sm:$0xff] }
  0xf6   :  { %v606_v29 = vpack.c.bf16 %v501_v26, %v501_v26  ;;  %v5383_v26 = vld [vmem:[#allocation7 + $0x90] sm:$0xff] }
  0xf7   :  { %v612_v39 = vunpack.c.l.b16 %v602_v33 }
  0xf8   :  { %v617_v31 = vunpack.c.l.b16 %v606_v29  ;;  %583 = vmatpush.bf16.msra.mxu2 %v5383_v26 }
  0xf9   :  { %v613_v42 = vpack.c.b16 %v612_v39, %v611_v38 }
  0xfa   :  { %v618_v34 = vpack.c.b16 %v617_v31, %v616_v30  ;;  %v414_v35 = vpop.f32.mrf.mxu0  ;;  %v5381_v31 = vld [vmem:[#allocation7 + $0x80] sm:$0xff] }
  0xfb   :  { %v503_v36 = vpop.f32.mrf.mxu1  ;;  %v415_v40 = vadd.f32 %v5656_v22, %v414_v35 }
  0xfc   :  { %931 = vrot.lane.b32.xlu1 %v618_v34, %s6427_s16  ;;  %781 = vrot.lane.b32.xlu0 %v618_v34, %s6428_s30  ;;  %v624_v37 = vsel %vm619_vm0, %v618_v34, 0  ;;  %v504_v41 = vadd.f32 %v5657_v20, %v503_v36 }
  0xfd   :  { %633 = vmatpush.bf16.xpose.msrb.mxu0 %v624_v37  ;;  %v603_v43 = vpack.c.bf16 %v415_v40, %v415_v40  ;;  %584 = vmatpush.bf16.msra.mxu2 %v5382_v28 }
  0xfe   :  { %v607_v44 = vpack.c.bf16 %v504_v41, %v504_v41 }
  0xff   :  { %v642_v49 = vunpack.c.l.b16 %v603_v43 }
 0x100   :  { %v647_v50 = vunpack.c.l.b16 %v607_v44 }
 0x101   :  { %585 = vmatpush.bf16.msra.mxu2 %v5381_v31 }
 0x102   :  { %v416_v45 = vpop.f32.mrf.mxu0 }
 0x103   :  { %v505_v46 = vpop.f32.mrf.mxu1  ;;  %v417_v47 = vadd.f32 %v5656_v22, %v416_v45 }
 0x104   :  { %v506_v48 = vadd.f32 %v5657_v20, %v505_v46  ;;  %929 = vrot.lane.b32.xlu1 %v613_v42, %s6427_s16  ;;  %779 = vrot.lane.b32.xlu0 %v613_v42, %s6428_s30 }
 0x105   :  { %4925 = vmatmul.msk.bf16.vlgmr.msrb.gmra.mxu0 %vm619_vm0, %v613_v42  ;;  %v604_v51 = vpack.c.bf16 %v417_v47, %v417_v47  ;;  %586 = vmatmul.bf16.vlgmr.msra.gmra.mxu2 %v6633_v16 }
 0x106   :  { %v608_v52 = vpack.c.bf16 %v506_v48, %v506_v48 }
 0x107   :  { %v643_v53 = vunpack.c.l.b16 %v604_v51 }
 0x108   :  { %v648_v54 = vunpack.c.l.b16 %v608_v52 }
 0x109   :  { %v644_v55 = vpack.c.b16 %v643_v53, %v642_v49 }
 0x10a   :  { %v649_v56 = vpack.c.b16 %v648_v54, %v647_v50 }
 0x10c   :  { %805 = vrot.lane.b32.xlu2 %v649_v56, %s6428_s30  ;;  %1079 = vrot.lane.b32.xlu1 %v613_v42, %s6429_s4  ;;  %v654_v57 = vsel %vm619_vm0, %v649_v56, 0 }
 0x10d   :  { %803 = vrot.lane.b32.xlu0 %v644_v55, %s6428_s30  ;;  %663 = vmatpush.bf16.xpose.msrb.mxu1 %v654_v57 }
 0x114   :  { %1081 = vrot.lane.b32.xlu2 %v618_v34, %s6429_s4  ;;  %4926 = vmatmul.msk.bf16.vlgmr.msrb.gmra.mxu1 %vm619_vm0, %v644_v55 }
 0x115   :  { %953 = vrot.lane.b32.xlu0 %v644_v55, %s6427_s16  ;;  %1105 = vrot.lane.b32.xlu1 %v649_v56, %s6429_s4 }
 0x116   :  { %591 = vmatmul.bf16.gmra.mxu2 %v6637_v17 }
 0x11c   :  { %955 = vrot.lane.b32.xlu2 %v649_v56, %s6427_s16 }
 0x124   :  { %1103 = vrot.lane.b32.xlu2 %v644_v55, %s6429_s4 }
 0x166   :  { %v806_v58 = vpop.permute.xlu2 %805 }
 0x167   :  { %v811_v59 = vsel %vm619_vm0, %v806_v58, 0 }
 0x168   :  { %820 = vmatpush.bf16.xpose.msra.mxu1 %v811_v59 }
 0x16e   :  { %v1082_v60 = vpop.permute.xlu2 %1081  ;;  %v932_v61 = vpop.permute.xlu1 %931 }
 0x16f   :  { %v937_v62 = vsel %vm619_vm0, %v932_v61, 0  ;;  %v782_v63 = vpop.permute.xlu0 %781  ;;  %v1087_v5 = vsel %vm619_vm0, %v1082_v60, 0 }
 0x170   :  { %v787_v0 = vsel %vm619_vm0, %v782_v63, 0 }
 0x171   :  { %796 = vmatpush.bf16.xpose.msra.mxu0 %v787_v0 }
 0x176   :  { %v930_v1 = vpop.permute.xlu1 %929  ;;  %v956_v2 = vpop.permute.xlu2 %955 }
 0x177   :  { %v780_v3 = vpop.permute.xlu0 %779  ;;  %v961_v4 = vsel %vm619_vm0, %v956_v2, 0 }
 0x178   :  { %4929 = vmatmul.msk.bf16.vlgmr.msra.gmra.mxu0 %vm619_vm0, %v780_v3  ;;  %970 = vmatpush.bf16.xpose.msrb.mxu1 %v961_v4 }
 0x179   :  { %946 = vmatpush.bf16.xpose.msrb.mxu0 %v937_v62 }
 0x17e   :  { %v1080_v6 = vpop.permute.xlu1 %1079  ;;  %v1104_v33 = vpop.permute.xlu2 %1103 }
 0x17f   :  { %v804_v7 = vpop.permute.xlu0 %803 }
 0x180   :  { %4930 = vmatmul.msk.bf16.vlgmr.msra.gmra.mxu1 %vm619_vm0, %v804_v7 }
 0x181   :  { %1096 = vmatpush.bf16.xpose.msra.mxu0 %v1087_v5 }
 0x182   :  { %v635_v9 = vpop.f32.mrf.mxu0 }
 0x183   :  { %v670_v11 = vmul.f32 0.35355338, %v635_v9 }
 0x185   :  { %v675_v12 = vsel %vm674_vm1, %v670_v11, -inf }
 0x186   :  { %676 = vmax.xlane.f32.xlu0 %v675_v12 }
 0x187   :  { %v1106_v14 = vpop.permute.xlu1 %1105  ;;  %v954_v22 = vpop.permute.xlu0 %953 }
 0x188   :  { %4933 = vmatmul.msk.bf16.vlgmr.msrb.gmra.mxu0 %vm619_vm0, %v930_v1  ;;  %v1111_v15 = vsel %vm619_vm0, %v1106_v14, 0  ;;  %v587_v13 = vpop.f32.mrf.mxu2 }
 0x189   :  { %1120 = vmatpush.bf16.xpose.msra.mxu1 %v1111_v15 }
 0x18a   :  { %v637_v18 = vpop.f32.mrf.mxu0 }
 0x18b   :  { %v671_v20 = vmul.f32 0.35355338, %v637_v18 }
 0x18d   :  { %v678_v21 = vsel %vm674_vm1, %v671_v20, -inf }
 0x18e   :  { %679 = vmax.xlane.f32.xlu1 %v678_v21 }
 0x190   :  { %4934 = vmatmul.msk.bf16.vlgmr.msrb.gmra.mxu1 %vm619_vm0, %v954_v22  ;;  %v589_v23 = vpop.f32.mrf.mxu2 }
 0x191   :  { %v665_v24 = vpop.f32.mrf.mxu1 }
 0x192   :  { %v6669_v25 = vmul.f32 0.35355338, %v665_v24 }
 0x194   :  { %v681_v27 = vsel %vm674_vm1, %v6669_v25, -inf }
 0x195   :  { %682 = vmax.xlane.f32.xlu0 %v681_v27 }
 0x198   :  { %4937 = vmatmul.msk.bf16.vlgmr.msra.gmra.mxu0 %vm619_vm0, %v1080_v6 }
 0x199   :  { %v667_v29 = vpop.f32.mrf.mxu1 }
 0x19a   :  { %v6674_v30 = vmul.f32 0.35355338, %v667_v29 }
 0x19c   :  { %v684_v32 = vsel %vm674_vm1, %v6674_v30, -inf }
 0x19d   :  { %685 = vmax.xlane.f32.xlu1 %v684_v32 }
 0x1a0   :  { %4938 = vmatmul.msk.bf16.vlgmr.msra.gmra.mxu1 %vm619_vm0, %v1104_v33 }
 0x1f5   :  { %v798_v34 = vpop.f32.mrf.mxu0 }
 0x1f6   :  { %v6681_v35 = vmul.f32 0.35355338, %v798_v34 }
 0x1f8   :  { %v831_v36 = vsel %vm674_vm1, %v6681_v35, -inf }
 0x1f9   :  { %v677_v37 = vpop.xlane.xlu0 %676  ;;  %832 = vmax.xlane.f32.xlu2 %v831_v36 }
 0x1fa   :  { %v687_v38 = vsub.f32 %v670_v11, %v677_v37  ;;  %v5658_v11 = vld [vmem:[#allocation8 + $0x2] ss:$0 sm:$0xff] }
 0x1fb   :  { %v588_v19 = vadd.f32 %v5658_v11, %v587_v13  ;;  %v590_v24 = vadd.f32 %v5658_v11, %v589_v23 }
 0x1fc   :  { %v691_v39 = vmul.f32 1.442695, %v687_v38  ;;  %v592_v38 = vpop.f32.mrf.mxu2 }
 0x1fd   :  { %v800_v40 = vpop.f32.mrf.mxu0  ;;  %v822_v41 = vpop.f32.mrf.mxu1  ;;  %v597_v22 = vpack.c.bf16 %v588_v19, %v588_v19  ;;  %v598_v27 = vpack.c.bf16 %v590_v24, %v590_v24 }
 0x1fe   :  { %5670 = vpow2.f32 %v691_v39  ;;  %v6685_v42 = vmul.f32 0.35355338, %v800_v40  ;;  %v6695_v50 = vmul.f32 0.35355338, %v822_v41 }
 0x1ff   :  { %v730_v26 = vunpack.c.l.b16 %v597_v22  ;;  %v731_v29 = vunpack.c.l.b16 %v598_v27 }
 0x200   :  { %v834_v16 = vsel %vm674_vm1, %v6685_v42, -inf  ;;  %v837_v52 = vsel %vm674_vm1, %v6695_v50, -inf }
 0x201   :  { %835 = vmax.xlane.f32.xlu2 %v834_v16  ;;  %v680_v17 = vpop.xlane.xlu1 %679  ;;  %v732_v31 = vpack.c.b16 %v731_v29, %v730_v26  ;;  %v593_v16 = vadd.f32 %v5658_v11, %v592_v38 }
 0x202   :  { %v688_v43 = vsub.f32 %v671_v20, %v680_v17 }
 0x203   :  { %744 = vmatpush.bf16.msra.mxu3 %v732_v31 }
 0x204   :  { %v6689_v44 = vpop.eup %5670  ;;  %v693_v45 = vmul.f32 1.442695, %v688_v43 }
 0x205   :  { %v824_v46 = vpop.f32.mrf.mxu1  ;;  %v948_v47 = vpop.f32.mrf.mxu0  ;;  %v699_v48 = vsel %vm674_vm1, %v6689_v44, 0.0 }
 0x206   :  { %v6693_v49 = vmul.f32 0.35355338, %v948_v47  ;;  %700 = vadd.xlane.f32.xlu1 %v699_v48  ;;  %5672 = vpow2.f32 %v693_v45  ;;  %v6709_v59 = vmul.f32 0.35355338, %v824_v46  ;;  %v594_v46 = vpop.f32.mrf.mxu2 }
 0x208   :  { %v981_v51 = vsel %vm674_vm1, %v6693_v49, -inf  ;;  %v840_v63 = vsel %vm674_vm1, %v6709_v59, -inf  ;;  %v683_v3 = vpop.xlane.xlu0 %682 }
 0x209   :  { %982 = vmax.xlane.f32.xlu2 %v981_v51  ;;  %v689_v9 = vsub.f32 %v6669_v25, %v683_v3 }
 0x20b   :  { %v695_v12 = vmul.f32 1.442695, %v689_v9 }
 0x20c   :  { %v6701_v53 = vpop.eup %5672 }
 0x20d   :  { %v950_v54 = vpop.f32.mrf.mxu0  ;;  %v972_v55 = vpop.f32.mrf.mxu1  ;;  %v702_v58 = vsel %vm674_vm1, %v6701_v53, 0.0  ;;  %5674 = vpow2.f32 %v695_v12 }
 0x20e   :  { %v6703_v56 = vmul.f32 0.35355338, %v950_v54  ;;  %838 = vmax.xlane.f32.xlu1 %v837_v52  ;;  %v6719_v2 = vmul.f32 0.35355338, %v972_v55 }
 0x210   :  { %v984_v57 = vsel %vm674_vm1, %v6703_v56, -inf  ;;  %v987_v8 = vsel %vm674_vm1, %v6719_v2, -inf  ;;  %v686_v32 = vpop.xlane.xlu1 %685 }
 0x211   :  { %985 = vmax.xlane.f32.xlu0 %v984_v57  ;;  %703 = vadd.xlane.f32.xlu2 %v702_v58  ;;  %v690_v36 = vsub.f32 %v6674_v30, %v686_v32  ;;  %v595_v30 = vadd.f32 %v5658_v11, %v594_v46 }
 0x213   :  { %v6738_v25 = vpop.eup %5674  ;;  %v697_v39 = vmul.f32 1.442695, %v690_v36  ;;  %v600_v54 = vpack.c.bf16 %v595_v30, %v595_v30 }
 0x214   :  { %v705_v28 = vsel %vm674_vm1, %v6738_v25, 0.0 }
 0x215   :  { %v974_v60 = vpop.f32.mrf.mxu1  ;;  %v1098_v61 = vpop.f32.mrf.mxu0  ;;  %v759_v58 = vunpack.c.l.b16 %v600_v54 }
 0x216   :  { %v6711_v62 = vmul.f32 0.35355338, %v1098_v61  ;;  %v6717_v1 = vmul.f32 0.35355338, %v974_v60 }
 0x218   :  { %v1131_v0 = vsel %vm674_vm1, %v6711_v62, -inf  ;;  %v990_v7 = vsel %vm674_vm1, %v6717_v1, -inf }
 0x219   :  { %1132 = vmax.xlane.f32.xlu0 %v1131_v0  ;;  %841 = vmax.xlane.f32.xlu2 %v840_v63 }
 0x21d   :  { %v1100_v4 = vpop.f32.mrf.mxu0  ;;  %v1122_v5 = vpop.f32.mrf.mxu1 }
 0x21e   :  { %v6721_v6 = vmul.f32 0.35355338, %v1100_v4  ;;  %v6730_v14 = vmul.f32 0.35355338, %v1122_v5 }
 0x220   :  { %v1134_v10 = vsel %vm674_vm1, %v6721_v6, -inf  ;;  %v1137_v21 = vsel %vm674_vm1, %v6730_v14, -inf }
 0x221   :  { %991 = vmax.xlane.f32.xlu0 %v990_v7  ;;  %1135 = vmax.xlane.f32.xlu1 %v1134_v10 }
 0x222   :  { %988 = vmax.xlane.f32.xlu2 %v987_v8 }
 0x225   :  { %v1124_v15 = vpop.f32.mrf.mxu1 }
 0x226   :  { %v6732_v18 = vmul.f32 0.35355338, %v1124_v15 }
 0x228   :  { %v1140_v20 = vsel %vm674_vm1, %v6732_v18, -inf }
 0x229   :  { %1141 = vmax.xlane.f32.xlu0 %v1140_v20 }
 0x22a   :  { %1138 = vmax.xlane.f32.xlu2 %v1137_v21 }
 0x232   :  { %706 = vadd.xlane.f32.xlu2 %v705_v28 }
 0x24a   :  { %1034 = vrot.lane.b32.xlu2 %v732_v31, %s6427_s16 }
 0x26c   :  { %v833_v33 = vpop.xlane.xlu2 %832 }
 0x26d   :  { %v843_v34 = vsub.f32 %v6681_v35, %v833_v33  ;;  %v599_v35 = vpack.c.bf16 %v593_v16, %v593_v16 }
 0x26f   :  { %v847_v37 = vmul.f32 1.442695, %v843_v34 }
 0x271   :  { %5676 = vpow2.f32 %v847_v37 }
 0x272   :  { %5678 = vpow2.f32 %v697_v39 }
 0x274   :  { %v836_v40 = vpop.xlane.xlu2 %835 }
 0x275   :  { %v844_v41 = vsub.f32 %v6685_v42, %v836_v40  ;;  %v758_v42 = vunpack.c.l.b16 %v599_v35 }
 0x277   :  { %v6746_v17 = vpop.eup %5676  ;;  %v849_v43 = vmul.f32 1.442695, %v844_v41  ;;  %v6759_v63 = vpack.c.b16 %v759_v58, %v758_v42 }
 0x278   :  { %v855_v45 = vsel %vm674_vm1, %v6746_v17, 0.0  ;;  %v6750_v51 = vpop.eup %5678 }
 0x279   :  { %5680 = vpow2.f32 %v849_v43  ;;  %856 = vadd.xlane.f32.xlu0 %v855_v45  ;;  %v701_v47 = vpop.xlane.xlu1 %700  ;;  %v708_v61 = vsel %vm674_vm1, %v6750_v51, 0.0  ;;  %772 = vmatpush.bf16.msrb.mxu3 %v6759_v63 }
 0x27a   :  { %5682 = vrcp.f32 %v701_v47 }
 0x27c   :  { %v983_v48 = vpop.xlane.xlu2 %982 }
 0x27d   :  { %v993_v52 = vsub.f32 %v6693_v49, %v983_v48 }
 0x27f   :  { %v6753_v55 = vpop.eup %5680  ;;  %v997_v57 = vmul.f32 1.442695, %v993_v52 }
 0x280   :  { %v858_v60 = vsel %vm674_vm1, %v6753_v55, 0.0  ;;  %v5683_v0 = vpop.eup %5682 }
 0x281   :  { %5684 = vpow2.f32 %v997_v57  ;;  %859 = vadd.xlane.f32.xlu1 %v858_v60  ;;  %709 = vadd.xlane.f32.xlu0 %v708_v61  ;;  %v715_v5 = vmul.f32 %v5683_v0, %v6689_v44  ;;  %v839_v44 = vpop.xlane.xlu1 %838 }
 0x282   :  { %v845_v20 = vsub.f32 %v6695_v50, %v839_v44 }
 0x283   :  { %v719_v9 = vpack.c.bf16 %v715_v5, %v715_v5 }
 0x284   :  { %v704_v49 = vpop.xlane.xlu2 %703  ;;  %v986_v15 = vpop.xlane.xlu0 %985  ;;  %v851_v21 = vmul.f32 1.442695, %v845_v20 }
 0x285   :  { %5686 = vrcp.f32 %v704_v49  ;;  %v725_v11 = vunpack.c.l.b16 %v719_v9  ;;  %v994_v23 = vsub.f32 %v6703_v56, %v986_v15 }
 0x286   :  { %5688 = vpow2.f32 %v851_v21 }
 0x287   :  { %v6762_v3 = vpop.eup %5684  ;;  %v999_v29 = vmul.f32 1.442695, %v994_v23 }
 0x288   :  { %v1005_v4 = vsel %vm674_vm1, %v6762_v3, 0.0 }
 0x289   :  { %1006 = vadd.xlane.f32.xlu2 %v1005_v4 }
 0x28b   :  { %v5687_v7 = vpop.eup %5686 }
 0x28c   :  { %v716_v8 = vmul.f32 %v5687_v7, %v6701_v53  ;;  %v842_v19 = vpop.xlane.xlu2 %841  ;;  %v1133_v53 = vpop.xlane.xlu0 %1132 }
 0x28d   :  { %v846_v22 = vsub.f32 %v6709_v59, %v842_v19  ;;  %v6778_v32 = vpop.eup %5688  ;;  %v1143_v50 = vsub.f32 %v6711_v62, %v1133_v53 }
 0x28e   :  { %v720_v10 = vpack.c.bf16 %v716_v8, %v716_v8  ;;  %v861_v59 = vsel %vm674_vm1, %v6778_v32, 0.0 }
 0x28f   :  { %v853_v26 = vmul.f32 1.442695, %v846_v22 }
 0x290   :  { %v726_v12 = vunpack.c.l.b16 %v720_v10 }
 0x291   :  { %5690 = vpow2.f32 %v853_v26 }
 0x292   :  { %v727_v13 = vpack.c.b16 %v726_v12, %v725_v11  ;;  %5692 = vpow2.f32 %v999_v29 }
 0x294   :  { %4927 = vmatmul.msk.bf16.vlgmr.msra.gmra.mxu3 %vm674_vm1, %v727_v13  ;;  %v992_v27 = vpop.xlane.xlu0 %991  ;;  %v1136_v37 = vpop.xlane.xlu1 %1135 }
 0x295   :  { %1184 = vrot.lane.b32.xlu0 %v732_v31, %s6429_s4  ;;  %v989_v24 = vpop.xlane.xlu2 %988  ;;  %v1144_v62 = vsub.f32 %v6721_v6, %v1136_v37 }
 0x296   :  { %v995_v28 = vsub.f32 %v6719_v2, %v989_v24  ;;  %v1147_v2 = vmul.f32 1.442695, %v1143_v50 }
 0x297   :  { %v6783_v36 = vpop.eup %5690  ;;  %v1149_v45 = vmul.f32 1.442695, %v1144_v62 }
 0x298   :  { %v1001_v33 = vmul.f32 1.442695, %v995_v28  ;;  %v6786_v38 = vpop.eup %5692  ;;  %v864_v39 = vsel %vm674_vm1, %v6783_v36, 0.0 }
 0x299   :  { %v1008_v16 = vsel %vm674_vm1, %v6786_v38, 0.0 }
 0x29a   :  { %884 = vrot.lane.b32.xlu1 %v732_v31, %s6428_s30  ;;  %v996_v31 = vsub.f32 %v6717_v1, %v992_v27  ;;  %5694 = vpow2.f32 %v1001_v33 }
 0x29c   :  { %v1003_v34 = vmul.f32 1.442695, %v996_v31  ;;  %v1142_v42 = vpop.xlane.xlu0 %1141 }
 0x29d   :  { %v1139_v56 = vpop.xlane.xlu2 %1138  ;;  %v1146_v13 = vsub.f32 %v6732_v18, %v1142_v42 }
 0x29e   :  { %5696 = vpow2.f32 %v1003_v34  ;;  %v1145_v1 = vsub.f32 %v6730_v14, %v1139_v56 }
 0x29f   :  { %5698 = vpow2.f32 %v1147_v2  ;;  %v1153_v44 = vmul.f32 1.442695, %v1146_v13 }
 0x2a0   :  { %v6791_v40 = vpop.eup %5694  ;;  %v1151_v41 = vmul.f32 1.442695, %v1145_v1 }
 0x2a1   :  { %909 = vrot.lane.b32.xlu2 %v6759_v63, %s6428_s30  ;;  %v1011_v14 = vsel %vm674_vm1, %v6791_v40, 0.0 }
 0x2a2   :  { %5700 = vpow2.f32 %v1151_v41 }
 0x2a3   :  { %5702 = vpow2.f32 %v1149_v45 }
 0x2a4   :  { %v6795_v43 = vpop.eup %5696 }
 0x2a5   :  { %v6799_v35 = vpop.eup %5698  ;;  %v1014_v6 = vsel %vm674_vm1, %v6795_v43, 0.0  ;;  %v707_v54 = vpop.xlane.xlu2 %706 }
 0x2a6   :  { %v1155_v46 = vsel %vm674_vm1, %v6799_v35, 0.0  ;;  %5704 = vrcp.f32 %v707_v54 }
 0x2a8   :  { %v6805_v30 = vpop.eup %5700 }
 0x2a9   :  { %v6807_v47 = vpop.eup %5702  ;;  %v1161_v48 = vsel %vm674_vm1, %v6805_v30, 0.0 }
 0x2aa   :  { %v1158_v52 = vsel %vm674_vm1, %v6807_v47, 0.0 }
 0x2ac   :  { %v5705_v60 = vpop.eup %5704 }
 0x2ad   :  { %v717_v49 = vmul.f32 %v5705_v60, %v6738_v25  ;;  %v1035_v19 = vpop.permute.xlu2 %1034 }
 0x2af   :  { %v721_v4 = vpack.c.bf16 %v717_v49, %v717_v49 }
 0x2b1   :  { %v753_v9 = vunpack.c.l.b16 %v721_v4 }
 0x2bf   :  { %862 = vadd.xlane.f32.xlu0 %v861_v59 }
 0x2c4   :  { %865 = vadd.xlane.f32.xlu1 %v864_v39 }
 0x2c7   :  { %1009 = vadd.xlane.f32.xlu0 %v1008_v16 }
 0x2ca   :  { %1012 = vadd.xlane.f32.xlu2 %v1011_v14 }
 0x2cc   :  { %1015 = vadd.xlane.f32.xlu1 %v1014_v6 }
 0x2cf   :  { %1156 = vadd.xlane.f32.xlu0 %v1155_v46 }
 0x2d4   :  { %1162 = vadd.xlane.f32.xlu1 %v1161_v48 }
 0x2d7   :  { %1159 = vadd.xlane.f32.xlu0 %v1158_v52 }
 0x2eb   :  { %1059 = vrot.lane.b32.xlu0 %v6759_v63, %s6427_s16 }
 0x2ec   :  { %v857_v57 = vpop.xlane.xlu0 %856 }
 0x2ed   :  { %1209 = vrot.lane.b32.xlu1 %v6759_v63, %s6429_s4 }
 0x2f4   :  { %v710_v58 = vpop.xlane.xlu0 %709  ;;  %v860_v61 = vpop.xlane.xlu1 %859 }
 0x2f5   :  { %5706 = vrcp.f32 %v710_v58 }
 0x2f6   :  { %5708 = vrcp.f32 %v860_v61 }
 0x2f7   :  { %5710 = vrcp.f32 %v857_v57 }
 0x2f8   :  { %5712 = vpow2.f32 %v1153_v44 }
 0x2fb   :  { %v5707_v0 = vpop.eup %5706 }
 0x2fc   :  { %v718_v5 = vmul.f32 %v5707_v0, %v6750_v51  ;;  %v5709_v8 = vpop.eup %5708  ;;  %v1007_v23 = vpop.xlane.xlu2 %1006 }
 0x2fd   :  { %v5711_v11 = vpop.eup %5710  ;;  %v872_v63 = vmul.f32 %v5709_v8, %v6753_v55 }
 0x2fe   :  { %v722_v7 = vpack.c.bf16 %v718_v5, %v718_v5  ;;  %v871_v15 = vmul.f32 %v5711_v11, %v6746_v17  ;;  %v6824_v18 = vpop.eup %5712 }
 0x2ff   :  { %v876_v25 = vpack.c.bf16 %v872_v63, %v872_v63  ;;  %v1164_v17 = vsel %vm674_vm1, %v6824_v18, 0.0 }
 0x300   :  { %v754_v10 = vunpack.c.l.b16 %v722_v7  ;;  %v875_v20 = vpack.c.bf16 %v871_v15, %v871_v15 }
 0x301   :  { %v882_v53 = vunpack.c.l.b16 %v876_v25 }
 0x302   :  { %v755_v12 = vpack.c.b16 %v754_v10, %v753_v9  ;;  %v881_v21 = vunpack.c.l.b16 %v875_v20 }
 0x304   :  { %4928 = vmatmul.msk.bf16.vlgmr.msrb.gmra.mxu3 %vm674_vm1, %v755_v12  ;;  %v883_v22 = vpack.c.b16 %v882_v53, %v881_v21  ;;  %v910_v24 = vpop.permute.xlu2 %909 }
 0x305   :  { %922 = vmatpush.bf16.msra.mxu3 %v910_v24 }
 0x307   :  { %v1185_v55 = vpop.permute.xlu0 %1184 }
 0x30c   :  { %v885_v51 = vpop.permute.xlu1 %884 }
 0x30d   :  { %897 = vmatpush.bf16.msrb.mxu2 %v885_v51 }
 0x310   :  { %4931 = vmatmul.msk.bf16.vlgmr.msrb.gmra.mxu2 %vm674_vm1, %v883_v22 }
 0x311   :  { %1047 = vmatpush.bf16.msra.mxu2 %v1035_v19 }
 0x315   :  { %1197 = vmatpush.bf16.msrb.mxu2 %v1185_v55  ;;  %1165 = vadd.xlane.f32.xlu0 %v1164_v17 }
 0x317   :  { %v746_v55 = vpop.f32.mrf.mxu3 }
 0x31f   :  { %v748_v17 = vpop.f32.mrf.mxu3 }
 0x332   :  { %v863_v26 = vpop.xlane.xlu0 %862 }
 0x333   :  { %5714 = vrcp.f32 %v863_v26 }
 0x334   :  { %5716 = vrcp.f32 %v1007_v23 }
 0x337   :  { %v866_v27 = vpop.xlane.xlu1 %865 }
 0x338   :  { %5718 = vrcp.f32 %v866_v27 }
 0x339   :  { %v5715_v28 = vpop.eup %5714 }
 0x33a   :  { %v1010_v29 = vpop.xlane.xlu0 %1009  ;;  %v5717_v31 = vpop.eup %5716  ;;  %v873_v33 = vmul.f32 %v5715_v28, %v6778_v32 }
 0x33b   :  { %5720 = vrcp.f32 %v1010_v29  ;;  %v1021_v34 = vmul.f32 %v5717_v31, %v6762_v3 }
 0x33c   :  { %v877_v59 = vpack.c.bf16 %v873_v33, %v873_v33 }
 0x33d   :  { %v1025_v1 = vpack.c.bf16 %v1021_v34, %v1021_v34  ;;  %v1013_v48 = vpop.xlane.xlu2 %1012 }
 0x33e   :  { %v5719_v50 = vpop.eup %5718  ;;  %v906_v41 = vunpack.c.l.b16 %v877_v59 }
 0x33f   :  { %v874_v56 = vmul.f32 %v5719_v50, %v6783_v36  ;;  %v1031_v6 = vunpack.c.l.b16 %v1025_v1  ;;  %v1016_v46 = vpop.xlane.xlu1 %1015  ;;  %v5395_v1 = vld [vmem:[#allocation10 + $0x30] sm:$0xff] }
 0x341   :  { %v5721_v2 = vpop.eup %5720  ;;  %v878_v37 = vpack.c.bf16 %v874_v56, %v874_v56 }
 0x342   :  { %v1022_v39 = vmul.f32 %v5721_v2, %v6786_v38  ;;  %v1157_v62 = vpop.xlane.xlu0 %1156 }
 0x343   :  { %v907_v16 = vunpack.c.l.b16 %v878_v37  ;;  %5722 = vrcp.f32 %v1157_v62  ;;  %v5396_v37 = vld [vmem:[#allocation10 + $0x38] sm:$0xff] }
 0x344   :  { %v1026_v45 = vpack.c.bf16 %v1022_v39, %v1022_v39  ;;  %5724 = vrcp.f32 %v1016_v46  ;;  %1365 = vmatpush.bf16.msrb.mxu0 %v5396_v37  ;;  %v5389_v46 = vld [vmem:[#allocation10] sm:$0xff] }
 0x345   :  { %v908_v14 = vpack.c.b16 %v907_v16, %v906_v41  ;;  %v5394_v16 = vld [vmem:[#allocation10 + $0x28] sm:$0xff] }
 0x346   :  { %v1032_v32 = vunpack.c.l.b16 %v1026_v45  ;;  %v5393_v45 = vld [vmem:[#allocation10 + $0x20] sm:$0xff] }
 0x347   :  { %4932 = vmatmul.msk.bf16.vlgmr.msra.gmra.mxu3 %vm674_vm1, %v908_v14  ;;  %v1163_v8 = vpop.xlane.xlu1 %1162  ;;  %v5392_v14 = vld [vmem:[#allocation10 + $0x18] sm:$0xff] }
 0x348   :  { %v1033_v3 = vpack.c.b16 %v1032_v32, %v1031_v6  ;;  %1366 = vmatpush.bf16.msrb.mxu0 %v5395_v1  ;;  %v5391_v6 = vld [vmem:[#allocation10 + $0x10] sm:$0xff]  ;;  %v5390_v32 = vld [vmem:[#allocation10 + $0x8] sm:$0xff] }
 0x349   :  { %v5723_v52 = vpop.eup %5722 }
 0x34a   :  { %v1160_v36 = vpop.xlane.xlu0 %1159  ;;  %4935 = vmatmul.msk.bf16.vlgmr.msra.gmra.mxu2 %vm674_vm1, %v1033_v3  ;;  %v1171_v38 = vmul.f32 %v5723_v52, %v6799_v35  ;;  %v5725_v42 = vpop.eup %5724 }
 0x34b   :  { %5726 = vrcp.f32 %v1160_v36  ;;  %v1024_v61 = vmul.f32 %v5725_v42, %v6795_v43 }
 0x34c   :  { %5728 = vrcp.f32 %v1013_v48  ;;  %v1175_v58 = vpack.c.bf16 %v1171_v38, %v1171_v38  ;;  %1367 = vmatpush.bf16.msrb.mxu0 %v5394_v16 }
 0x34d   :  { %v1028_v7 = vpack.c.bf16 %v1024_v61, %v1024_v61  ;;  %5730 = vrcp.f32 %v1163_v8 }
 0x34e   :  { %v1181_v4 = vunpack.c.l.b16 %v1175_v58 }
 0x34f   :  { %v1057_v35 = vunpack.c.l.b16 %v1028_v7 }
 0x350   :  { %1368 = vmatpush.bf16.msrb.mxu0 %v5393_v45 }
 0x351   :  { %v5727_v54 = vpop.eup %5726 }
 0x352   :  { %v5729_v57 = vpop.eup %5728  ;;  %v1172_v60 = vmul.f32 %v5727_v54, %v6807_v47 }
 0x353   :  { %v1023_v0 = vmul.f32 %v5729_v57, %v6791_v40  ;;  %v5731_v40 = vpop.eup %5730 }
 0x354   :  { %v1176_v49 = vpack.c.bf16 %v1172_v60, %v1172_v60  ;;  %v1173_v47 = vmul.f32 %v5731_v40, %v6805_v30  ;;  %1369 = vmatpush.bf16.msrb.mxu0 %v5392_v14  ;;  %v5412_v14 = vld [vmem:[#allocation13 + $0x78] sm:$0xff] }
 0x355   :  { %v1027_v10 = vpack.c.bf16 %v1023_v0, %v1023_v0  ;;  %1649 = vmatpush.bf16.msra.mxu2 %v5412_v14 }
 0x356   :  { %v1182_v5 = vunpack.c.l.b16 %v1176_v49  ;;  %v1177_v25 = vpack.c.bf16 %v1173_v47, %v1173_v47 }
 0x357   :  { %v1056_v11 = vunpack.c.l.b16 %v1027_v10 }
 0x358   :  { %v1183_v9 = vpack.c.b16 %v1182_v5, %v1181_v4  ;;  %v1206_v53 = vunpack.c.l.b16 %v1177_v25  ;;  %1370 = vmatpush.bf16.msrb.mxu0 %v5391_v6 }
 0x359   :  { %v1058_v12 = vpack.c.b16 %v1057_v35, %v1056_v11 }
 0x35a   :  { %4939 = vmatmul.msk.bf16.vlgmr.msrb.gmra.mxu2 %vm674_vm1, %v1183_v9 }
 0x35c   :  { %1371 = vmatpush.bf16.msrb.mxu0 %v5390_v32 }
 0x35d   :  { %v1060_v63 = vpop.permute.xlu0 %1059 }
 0x35e   :  { %1072 = vmatpush.bf16.msrb.mxu3 %v1060_v63 }
 0x35f   :  { %v1210_v13 = vpop.permute.xlu1 %1209 }
 0x360   :  { %1372 = vmatpush.bf16.msrb.mxu0 %v5389_v46 }
 0x361   :  { %4936 = vmatmul.msk.bf16.vlgmr.msrb.gmra.mxu3 %vm674_vm1, %v1058_v12 }
 0x362   :  { %1222 = vmatpush.bf16.msra.mxu3 %v1210_v13 }
 0x387   :  { %v6844_v24 = vpop.f32.mrf.mxu3 }
 0x388   :  { %v1166_v43 = vpop.xlane.xlu0 %1165 }
 0x389   :  { %5732 = vrcp.f32 %v1166_v43 }
 0x38f   :  { %v5733_v15 = vpop.eup %5732  ;;  %v6846_v30 = vpop.f32.mrf.mxu3 }
 0x390   :  { %v1174_v44 = vmul.f32 %v5733_v15, %v6824_v18 }
 0x392   :  { %v1178_v19 = vpack.c.bf16 %v1174_v44, %v1174_v44 }
 0x393   :  { %v899_v20 = vpop.f32.mrf.mxu2 }
 0x394   :  { %v1207_v51 = vunpack.c.l.b16 %v1178_v19 }
 0x396   :  { %v1208_v21 = vpack.c.b16 %v1207_v51, %v1206_v53  ;;  %v325_v51 = vlaneseq }
 0x398   :  { %4940 = vmatmul.msk.bf16.vlgmr.msra.gmra.mxu3 %vm674_vm1, %v1208_v21  ;;  %v326_v21 = vand.u32 127, %v325_v51 }
 0x39a   :  { %vm327_vm5 = vcmp.lt.s32.totalorder %v326_v21, 32 }
 0x39b   :  { %v901_v22 = vpop.f32.mrf.mxu2 }
 0x39c   :  { %v5536_v23 = vpack.i.bf16 %v901_v22, %v899_v20  ;;  %v5659_v22 = vld [vmem:[#allocation11] ss:$0 sm:$0xff] }
 0x39e   :  { %5537 = vrot.lane.b32.xlu2 %v5536_v23, %s6430_s1  ;;  %v5966_v23 = vld [vmem:[#allocation2] sm:$0xff]  }
 0x3ca   :  { %v924_v26 = vpop.f32.mrf.mxu3 }
 0x3cd   :  { %v1049_v18 = vpop.f32.mrf.mxu2 }
 0x3d2   :  { %v926_v27 = vpop.f32.mrf.mxu3 }
 0x3d3   :  { %v5551_v28 = vpack.i.bf16 %v926_v27, %v924_v26 }
 0x3d5   :  { %v1051_v29 = vpop.f32.mrf.mxu2  ;;  %5552 = vrot.lane.b32.xlu0 %v5551_v28, %s6430_s1  ;;  %v5480_v28 = vunpack.c.h.bf16 %v5966_v23 }
 0x3d6   :  { %v5541_v31 = vpack.i.bf16 %v1051_v29, %v1049_v18 }
 0x3d8   :  { %5542 = vrot.lane.b32.xlu1 %v5541_v31, %s6412_s24 }
 0x3dd   :  { %v1199_v33 = vpop.f32.mrf.mxu2 }
 0x3e4   :  { %v1074_v50 = vpop.f32.mrf.mxu3 }
 0x3e5   :  { %v1201_v34 = vpop.f32.mrf.mxu2 }
 0x3e6   :  { %v5546_v59 = vpack.i.bf16 %v1201_v34, %v1199_v33  ;;  %v5967_v34 = vld [vmem:[#allocation2 + $0x8] sm:$0xff]  }
 0x3e8   :  { %5547 = vrot.lane.b32.xlu1 %v5546_v59, %s6431_s14  ;;  %v5483_v59 = vunpack.c.l.bf16 %v5967_v34 }
 0x3ec   :  { %v1076_v56 = vpop.f32.mrf.mxu3 }
 0x3ed   :  { %v5556_v2 = vpack.i.bf16 %v1076_v56, %v1074_v50 }
 0x3ef   :  { %5557 = vrot.lane.b32.xlu2 %v5556_v2, %s6412_s24 }
 0x3f8   :  { %v5538_v48 = vpop.permute.xlu2 %5537 }
 0x3f9   :  { %v5540_v36 = vunpack.i.h.bf16 %v5538_v48  ;;  %v5539_v52 = vunpack.i.l.bf16 %v5538_v48 }
 0x3fb   :  { %v1278_v57 = vsel %vm619_vm0, %v748_v17, %v5540_v36  ;;  %v1277_v58 = vsel %vm619_vm0, %v746_v55, %v5539_v52  ;;  %v5479_v55 = vunpack.c.l.bf16 %v5966_v23 }
 0x41b   :  { %v1224_v39 = vpop.f32.mrf.mxu3 }
 0x423   :  { %v1226_v62 = vpop.f32.mrf.mxu3 }
 0x424   :  { %v5561_v41 = vpack.i.bf16 %v1226_v62, %v1224_v39  ;;  %v5484_v39 = vunpack.c.h.bf16 %v5967_v34 }
 0x426   :  { %5562 = vrot.lane.b32.xlu1 %v5561_v41, %s6431_s14 }
 0x447   :  { %v5553_v9 = vpop.permute.xlu0 %5552 }
 0x448   :  { %v5555_v10 = vunpack.i.h.bf16 %v5553_v9  ;;  %v5554_v35 = vunpack.i.l.bf16 %v5553_v9 }
 0x449   :  { %v5558_v11 = vpop.permute.xlu2 %5557 }
 0x44a   :  { %v5543_v3 = vpop.permute.xlu1 %5542  ;;  %v5560_v63 = vunpack.i.h.bf16 %v5558_v11  ;;  %v5559_v12 = vunpack.i.l.bf16 %v5558_v11  ;;  %v1280_v13 = vsel %vm619_vm0, %v6846_v30, %v5555_v10  ;;  %v1279_v43 = vsel %vm619_vm0, %v6844_v24, %v5554_v35 }
 0x44b   :  { %v5545_v38 = vunpack.i.h.bf16 %v5543_v3  ;;  %v5544_v42 = vunpack.i.l.bf16 %v5543_v3  ;;  %v6432_v30 = vmov 0.0  }
 0x44c   :  { %v1283_v25 = vsel %vm674_vm1, %v1279_v43, %v5559_v12  ;;  %v1284_v44 = vsel %vm674_vm1, %v1280_v13, %v5560_v63  ;;  %v6875_v26 = vsel %vm327_vm5, 1.0, %v6432_v30  ;;  %v6902_v43 = vld [vmem:[#allocation5 + $0x8] sm:$0xff]   ;;  %vm1812_vm5 = vcmask 31744  }
 0x44d   :  { %v1282_v49 = vsel %vm674_vm1, %v1278_v57, %v5545_v38  ;;  %v1281_v0 = vsel %vm674_vm1, %v1277_v58, %v5544_v42  ;;  %v5411_v57 = vld [vmem:[#allocation13 + $0x70] sm:$0xff]  ;;  %v5410_v58 = vld [vmem:[#allocation13 + $0x68] sm:$0xff] }
 0x44e   :  { %1650 = vmatpush.bf16.msra.mxu2 %v5411_v57 }
 0x452   :  { %1651 = vmatpush.bf16.msra.mxu2 %v5410_v58 }
 0x45a   :  { %v5548_v54 = vpop.permute.xlu1 %5547 }
 0x45b   :  { %v5550_v60 = vunpack.i.h.bf16 %v5548_v54  ;;  %v5549_v61 = vunpack.i.l.bf16 %v5548_v54 }
 0x45d   :  { %v1286_v4 = vsel %vm1285_vm2, %v1281_v0, %v5549_v61  ;;  %v1287_v5 = vsel %vm1285_vm2, %v1282_v49, %v5550_v60  ;;  %v5409_v60 = vld [vmem:[#allocation13 + $0x60] sm:$0xff]  ;;  %v5408_v61 = vld [vmem:[#allocation13 + $0x58] sm:$0xff]  ;;  %v5407_v49 = vld [vmem:[#allocation13 + $0x50] sm:$0xff] }
 0x45e   :  { %v4974_v8 = vpack.c.bf16 %v1287_v5, %v1286_v4  ;;  %1652 = vmatpush.bf16.msra.mxu2 %v5409_v60  ;;  %v5406_v0 = vld [vmem:[#allocation13 + $0x48] sm:$0xff]  ;;  %v5405_v4 = vld [vmem:[#allocation13 + $0x40] sm:$0xff] }
 0x45f   :  { %v6891_v5 = vld [vmem:[#allocation5] sm:$0xff]  }
 0x460   :  { %4975 = vmatmul.msk.bf16.vlgmr.msrb.gmra.mxu0 %vm6859_vm4, %v4974_v8 }
 0x462   :  { %1653 = vmatpush.bf16.msra.mxu2 %v5408_v61  ;;  %v6927_v61 = vld [vmem:[#allocation14 + $0x1] ss:$0 sm:$0xff] }
 0x466   :  { %1654 = vmatpush.bf16.msra.mxu2 %v5407_v49 }
 0x46a   :  { %1655 = vmatpush.bf16.msra.mxu2 %v5406_v0 }
 0x46e   :  { %1656 = vmatpush.bf16.msra.mxu2 %v5405_v4 }
 0x471   :  { %1657 = vmatmul.bf16.vlgmr.msra.gmra.mxu2 %v6891_v5 }
 0x481   :  { %1662 = vmatmul.bf16.gmra.mxu2 %v6902_v43 }
 0x498   :  { %v5563_v40 = vpop.permute.xlu1 %5562 }
 0x499   :  { %v5565_v47 = vunpack.i.h.bf16 %v5563_v40  ;;  %v5564_v15 = vunpack.i.l.bf16 %v5563_v40 }
 0x49b   :  { %v1288_v19 = vsel %vm1285_vm2, %v1283_v25, %v5564_v15  ;;  %v1289_v20 = vsel %vm1285_vm2, %v1284_v44, %v5565_v47  ;;  %v5404_v47 = vld [vmem:[#allocation13 + $0x38] sm:$0xff]  ;;  %v5403_v15 = vld [vmem:[#allocation13 + $0x30] sm:$0xff]  ;;  %v5402_v25 = vld [vmem:[#allocation13 + $0x28] sm:$0xff] }
 0x49c   :  { %v4977_v53 = vpack.c.bf16 %v1289_v20, %v1288_v19  ;;  %1556 = vmatpush.bf16.msrb.mxu1 %v5404_v47  ;;  %v5401_v44 = vld [vmem:[#allocation13 + $0x20] sm:$0xff]  ;;  %v5400_v19 = vld [vmem:[#allocation13 + $0x18] sm:$0xff]  ;;  %v5399_v20 = vld [vmem:[#allocation13 + $0x10] sm:$0xff] }
 0x49e   :  { %4978 = vmatmul.msk.bf16.gmra.mxu0 %vm6859_vm4, %v4977_v53  ;;  %v5398_v53 = vld [vmem:[#allocation13 + $0x8] sm:$0xff] }
 0x4a0   :  { %1557 = vmatpush.bf16.msrb.mxu1 %v5403_v15 }
 0x4a4   :  { %1558 = vmatpush.bf16.msrb.mxu1 %v5402_v25 }
 0x4a8   :  { %1559 = vmatpush.bf16.msrb.mxu1 %v5401_v44 }
 0x4ac   :  { %1560 = vmatpush.bf16.msrb.mxu1 %v5400_v19 }
 0x4b0   :  { %1561 = vmatpush.bf16.msrb.mxu1 %v5399_v20 }
 0x4b4   :  { %1562 = vmatpush.bf16.msrb.mxu1 %v5398_v53 }
 0x4dd   :  { %v1374_v17 = vpop.f32.mrf.mxu0 }
 0x4de   :  { %v1375_v24 = vadd.f32 %v5659_v22, %v1374_v17 }
 0x4e0   :  { %v1384_v18 = vadd.f32 %v5479_v55, %v1375_v24  ;;  %v6907_v55 = vld [vmem:[#allocation5 + $0x10] sm:$0xff]  }
 0x4e1   :  { %1667 = vmatmul.bf16.gmra.mxu2 %v6907_v55 }
 0x4e2   :  { %v1388_v27 = vmul.f32 %v6875_v26, %v1384_v18 }
 0x4e4   :  { %1392 = vadd.xlane.f32.xlu2 %v1388_v27 }
 0x4e5   :  { %v1376_v29 = vpop.f32.mrf.mxu0 }
 0x4e6   :  { %v1377_v31 = vadd.f32 %v5659_v22, %v1376_v29 }
 0x4e8   :  { %v1385_v33 = vadd.f32 %v5480_v28, %v1377_v31 }
 0x4ea   :  { %v1389_v50 = vmul.f32 %v6875_v26, %v1385_v33 }
 0x4ec   :  { %1394 = vadd.xlane.f32.xlu1 %v1389_v50 }
 0x4f4   :  { %v1658_v58 = vpop.f32.mrf.mxu2 }
 0x4f5   :  { %v1659_v49 = vadd.f32 %v6927_v61, %v1658_v58 }
 0x51b   :  { %v1379_v56 = vpop.f32.mrf.mxu0 }
 0x51c   :  { %v1380_v2 = vadd.f32 %v5659_v22, %v1379_v56 }
 0x51e   :  { %v1386_v37 = vadd.f32 %v5483_v59, %v1380_v2  ;;  %v6910_v59 = vld [vmem:[#allocation5 + $0x18] sm:$0xff]  }
 0x51f   :  { %1672 = vmatmul.bf16.gmra.mxu2 %v6910_v59 }
 0x520   :  { %v1390_v1 = vmul.f32 %v6875_v26, %v1386_v37 }
 0x522   :  { %1396 = vadd.xlane.f32.xlu0 %v1390_v1 }
 0x523   :  { %v1381_v62 = vpop.f32.mrf.mxu0 }
 0x524   :  { %v1382_v41 = vadd.f32 %v5659_v22, %v1381_v62  ;;  %v5397_v22 = vld [vmem:[#allocation13] sm:$0xff] }
 0x525   :  { %1563 = vmatpush.bf16.msrb.mxu1 %v5397_v22 }
 0x526   :  { %v1387_v16 = vadd.f32 %v5484_v39, %v1382_v41 }
 0x528   :  { %v1391_v45 = vmul.f32 %v6875_v26, %v1387_v16 }
 0x52a   :  { %1398 = vadd.xlane.f32.xlu2 %v1391_v45 }
 0x557   :  { %v1393_v6 = vpop.xlane.xlu2 %1392 }
 0x558   :  { %v1400_v32 = vmul.f32 0.03125, %v1393_v6 }
 0x55a   :  { %v1404_v46 = vsub.f32 %v1388_v27, %v1400_v32 }
 0x55c   :  { %v6882_v3 = vmul.f32 %v6875_v26, %v1404_v46 }
 0x55e   :  { %v1412_v48 = vmul.f32 %v6882_v3, %v6882_v3 }
 0x55f   :  { %v1395_v36 = vpop.xlane.xlu1 %1394 }
 0x560   :  { %v1401_v52 = vmul.f32 0.03125, %v1395_v36  ;;  %1416 = vadd.xlane.f32.xlu1 %v1412_v48 }
 0x562   :  { %v1405_v38 = vsub.f32 %v1389_v50, %v1401_v52 }
 0x564   :  { %v6887_v42 = vmul.f32 %v6875_v26, %v1405_v38 }
 0x566   :  { %v1413_v54 = vmul.f32 %v6887_v42, %v6887_v42 }
 0x568   :  { %1418 = vadd.xlane.f32.xlu2 %v1413_v54 }
 0x595   :  { %v1397_v7 = vpop.xlane.xlu0 %1396 }
 0x596   :  { %v1402_v8 = vmul.f32 0.03125, %v1397_v7 }
 0x598   :  { %v1406_v9 = vsub.f32 %v1390_v1, %v1402_v8  ;;  %v323_v1 = vld [vmem:[%s7943_s18] sm:$0xf] }
 0x599   :  { %v1476_v41 = vperm.slane %v323_v1, 0 }
 0x59a   :  { %v6895_v10 = vmul.f32 %v6875_v26, %v1406_v9  ;;  %v1789_v9 = vpack.c.bf16 %v1659_v49, %v1659_v49 }
 0x59c   :  { %v1414_v35 = vmul.f32 %v6895_v10, %v6895_v10 }
 0x59d   :  { %v1399_v11 = vpop.xlane.xlu2 %1398 }
 0x59e   :  { %v1403_v63 = vmul.f32 0.03125, %v1399_v11  ;;  %1420 = vadd.xlane.f32.xlu0 %v1414_v35  ;;  %v1660_v35 = vpop.f32.mrf.mxu2 }
 0x5a0   :  { %v1407_v12 = vsub.f32 %v1391_v45, %v1403_v63  ;;  %v324_v45 = vld [vmem:[%s7944_s19] sm:$0xf]  ;;  %v1661_v63 = vadd.f32 %v6927_v61, %v1660_v35 }
 0x5a1   :  { %v1481_v46 = vperm.slane %v324_v45, 0 }
 0x5a2   :  { %v6900_v13 = vmul.f32 %v6875_v26, %v1407_v12  ;;  %v1790_v47 = vpack.c.bf16 %v1661_v63, %v1661_v63 }
 0x5a4   :  { %v1415_v40 = vmul.f32 %v6900_v13, %v6900_v13  ;;  %v1807_v19 = vunpack.c.l.b16 %v1790_v47 }
 0x5a6   :  { %1422 = vadd.xlane.f32.xlu1 %v1415_v40  ;;  %v1806_v40 = vunpack.c.l.b16 %v1789_v9 }
 0x5a8   :  { %v6931_v53 = vpack.c.b16 %v1807_v19, %v1806_v40  ;;  %v5419_v19 = vld [vmem:[#allocation13 + $0xb0] sm:$0xff] }
 0x5b2   :  { %1996 = vrot.lane.b32.xlu0 %v6931_v53, %s6433_s6 }
 0x5d3   :  { %v1417_v51 = vpop.xlane.xlu1 %1416 }
 0x5d4   :  { %v1424_v21 = vmul.f32 0.03125, %v1417_v51  ;;  %v1663_v51 = vpop.f32.mrf.mxu2 }
 0x5d6   :  { %v1428_v23 = vadd.f32 1e-05, %v1424_v21 }
 0x5d8   :  { %5734 = vrsqrt.f32 %v1428_v23  ;;  %vm1438_vm7 = vweird.f32 %v1428_v23 }
 0x5db   :  { %v1419_v17 = vpop.xlane.xlu2 %1418 }
 0x5dc   :  { %v1425_v24 = vmul.f32 0.03125, %v1419_v17  ;;  %v1664_v17 = vadd.f32 %v6927_v61, %v1663_v51  ;;  %v5417_v51 = vld [vmem:[#allocation13 + $0xa0] sm:$0xff] }
 0x5de   :  { %v5735_v30 = vpop.eup %5734  ;;  %v1429_v18 = vadd.f32 1e-05, %v1425_v24 }
 0x5df   :  { %v1433_v27 = vmul.f32 %v5735_v30, %v1428_v23  ;;  %vm1439_vm6 = vweird.f32 %v5735_v30 }
 0x5e0   :  { %5736 = vrsqrt.f32 %v1429_v18  ;;  %vm1440_vm8 = vmor %vm1438_vm7, %vm1439_vm6  ;;  %vm1448_vm10 = vweird.f32 %v1429_v18 }
 0x5e1   :  { %v1434_v28 = vmul.f32 %v5735_v30, %v1433_v27  ;;  %v1791_v27 = vpack.c.bf16 %v1664_v17, %v1664_v17  ;;  %vm7232_vm6 = vmpackc.low %vm674_vm1, %vm674_vm1 }
 0x5e3   :  { %v1435_v29 = vmul.f32 0.5, %v1434_v28 }
 0x5e5   :  { %v1436_v31 = vsub.f32 1.5, %v1435_v29 }
 0x5e6   :  { %v5737_v33 = vpop.eup %5736 }
 0x5e7   :  { %v1437_v50 = vmul.f32 %v5735_v30, %v1436_v31  ;;  %v1443_v34 = vmul.f32 %v5737_v33, %v1429_v18  ;;  %vm1449_vm9 = vweird.f32 %v5737_v33  ;;  %v1665_v31 = vpop.f32.mrf.mxu2 }
 0x5e8   :  { %vm1450_vm11 = vmor %vm1448_vm10, %vm1449_vm9 }
 0x5e9   :  { %v1444_v56 = vmul.f32 %v5737_v33, %v1443_v34  ;;  %v1441_v2 = vsel %vm1440_vm8, %v5735_v30, %v1437_v50  ;;  %v1808_v34 = vunpack.c.l.b16 %v1791_v27 }
 0x5ea   :  { %v1472_v62 = vmul.f32 %v1441_v2, %v6882_v3 }
 0x5eb   :  { %v1445_v37 = vmul.f32 0.5, %v1444_v56 }
 0x5ec   :  { %v1477_v32 = vmul.f32 %v1476_v41, %v1472_v62  ;;  %v1817_v62 = vsel %vm1812_vm5, %v6931_v53, 0 }
 0x5ed   :  { %v1446_v39 = vsub.f32 1.5, %v1445_v37 }
 0x5ee   :  { %v6921_v36 = vadd.f32 %v1481_v46, %v1477_v32  ;;  %v5661_v32 = vld [vmem:[#allocation14] ss:$0 sm:$0xff] }
 0x5ef   :  { %v1447_v16 = vmul.f32 %v5737_v33, %v1446_v39 }
 0x5f1   :  { %v1451_v14 = vsel %vm1450_vm11, %v5737_v33, %v1447_v16  ;;  %v1666_v33 = vadd.f32 %v6927_v61, %v1665_v31 }
 0x5f2   :  { %v1473_v6 = vmul.f32 %v1451_v14, %v6887_v42 }
 0x5f3   :  { %v1792_v56 = vpack.c.bf16 %v1666_v33, %v1666_v33 }
 0x5f4   :  { %v1478_v48 = vmul.f32 %v1476_v41, %v1473_v6 }
 0x5f5   :  { %v1809_v1 = vunpack.c.l.b16 %v1792_v56 }
 0x5f6   :  { %v6923_v52 = vadd.f32 %v1481_v46, %v1478_v48 }
 0x5f7   :  { %v6945_v39 = vpack.c.b16 %v1809_v1, %v1808_v34 }
 0x5f8   :  { %v1486_v3 = vpack.c.bf16 %v6923_v52, %v6921_v36 }
 0x5fa   :  { %1564 = vmatmul.bf16.vlgmr.msrb.gmra.mxu1 %v1486_v3 }
 0x611   :  { %v1421_v38 = vpop.xlane.xlu0 %1420 }
 0x612   :  { %v1426_v54 = vmul.f32 0.03125, %v1421_v38 }
 0x614   :  { %v1430_v57 = vadd.f32 1e-05, %v1426_v54 }
 0x616   :  { %5738 = vrsqrt.f32 %v1430_v57  ;;  %vm1458_vm13 = vweird.f32 %v1430_v57 }
 0x619   :  { %v1423_v60 = vpop.xlane.xlu1 %1422 }
 0x61a   :  { %v1427_v42 = vmul.f32 0.03125, %v1423_v60 }
 0x61c   :  { %v5739_v0 = vpop.eup %5738  ;;  %v1431_v4 = vadd.f32 1e-05, %v1427_v42 }
 0x61d   :  { %v1453_v7 = vmul.f32 %v5739_v0, %v1430_v57  ;;  %vm1459_vm12 = vweird.f32 %v5739_v0 }
 0x61e   :  { %5740 = vrsqrt.f32 %v1431_v4  ;;  %vm1460_vm14 = vmor %vm1458_vm13, %vm1459_vm12  ;;  %vm1468_vm2 = vweird.f32 %v1431_v4 }
 0x61f   :  { %v1454_v8 = vmul.f32 %v5739_v0, %v1453_v7 }
 0x621   :  { %v1455_v11 = vmul.f32 0.5, %v1454_v8 }
 0x623   :  { %v1456_v12 = vsub.f32 1.5, %v1455_v11 }
 0x624   :  { %v5741_v15 = vpop.eup %5740 }
 0x625   :  { %v1457_v25 = vmul.f32 %v5739_v0, %v1456_v12  ;;  %v1463_v44 = vmul.f32 %v5741_v15, %v1431_v4  ;;  %vm1469_vm15 = vweird.f32 %v5741_v15 }
 0x626   :  { %vm1470_vm4 = vmor %vm1468_vm2, %vm1469_vm15 }
 0x627   :  { %v1464_v20 = vmul.f32 %v5741_v15, %v1463_v44  ;;  %v1461_v22 = vsel %vm1460_vm14, %v5739_v0, %v1457_v25  ;;  %v5420_v44 = vld [vmem:[#allocation13 + $0xb8] sm:$0xff] }
 0x628   :  { %v1474_v24 = vmul.f32 %v1461_v22, %v6895_v10  ;;  %1748 = vmatpush.bf16.msrb.mxu3 %v5420_v44  ;;  %v5415_v22 = vld [vmem:[#allocation13 + $0x90] sm:$0xff] }
 0x629   :  { %v1465_v21 = vmul.f32 0.5, %v1464_v20  ;;  %v5418_v20 = vld [vmem:[#allocation13 + $0xa8] sm:$0xff] }
 0x62a   :  { %v1479_v29 = vmul.f32 %v1476_v41, %v1474_v24  ;;  %v5413_v24 = vld [vmem:[#allocation13 + $0x80] sm:$0xff] }
 0x62b   :  { %v1466_v23 = vsub.f32 1.5, %v1465_v21  ;;  %v5416_v21 = vld [vmem:[#allocation13 + $0x98] sm:$0xff] }
 0x62c   :  { %v6939_v2 = vadd.f32 %v1481_v46, %v1479_v29  ;;  %1749 = vmatpush.bf16.msrb.mxu3 %v5419_v19 }
 0x62d   :  { %v1467_v30 = vmul.f32 %v5741_v15, %v1466_v23  ;;  %v5414_v23 = vld [vmem:[#allocation13 + $0x88] sm:$0xff] }
 0x62f   :  { %v1471_v18 = vsel %vm1470_vm4, %v5741_v15, %v1467_v30 }
 0x630   :  { %v1475_v28 = vmul.f32 %v1471_v18, %v6900_v13  ;;  %v1820_v13 = vsel %vm1812_vm5, %v6945_v39, 0  ;;  %1750 = vmatpush.bf16.msrb.mxu3 %v5418_v20 }
 0x631   :  { %1828 = vmatpush.bf16.xpose.msra.mxu0 %v1820_v13 }
 0x632   :  { %v1480_v50 = vmul.f32 %v1476_v41, %v1475_v28  ;;  %v1668_v41 = vpop.f32.mrf.mxu2 }
 0x634   :  { %v6941_v37 = vadd.f32 %v1481_v46, %v1480_v50  ;;  %v1669_v46 = vadd.f32 %v6927_v61, %v1668_v41  ;;  %1751 = vmatpush.bf16.msrb.mxu3 %v5417_v51 }
 0x636   :  { %v1487_v10 = vpack.c.bf16 %v6941_v37, %v6939_v2  ;;  %v1793_v60 = vpack.c.bf16 %v1669_v46, %v1669_v46 }
 0x638   :  { %1569 = vmatmul.bf16.gmra.mxu1 %v1487_v10  ;;  %v1845_v35 = vunpack.c.l.b16 %v1793_v60  ;;  %1752 = vmatpush.bf16.msrb.mxu3 %v5416_v21 }
 0x639   :  { %1829 = vmatpush.bf16.xpose.msra.mxu0 %v1817_v62 }
 0x63a   :  { %v1670_v16 = vpop.f32.mrf.mxu2 }
 0x63b   :  { %v1671_v48 = vadd.f32 %v6927_v61, %v1670_v16 }
 0x63c   :  { %1753 = vmatpush.bf16.msrb.mxu3 %v5415_v22 }
 0x63d   :  { %v1794_v42 = vpack.c.bf16 %v1671_v48, %v1671_v48 }
 0x63f   :  { %v1846_v11 = vunpack.c.l.b16 %v1794_v42 }
 0x640   :  { %1754 = vmatpush.bf16.msrb.mxu3 %v5414_v23 }
 0x642   :  { %v1673_v45 = vpop.f32.mrf.mxu2 }
 0x643   :  { %v1674_v6 = vadd.f32 %v6927_v61, %v1673_v45 }
 0x644   :  { %1755 = vmatpush.bf16.msrb.mxu3 %v5413_v24 }
 0x645   :  { %v1795_v3 = vpack.c.bf16 %v1674_v6, %v1674_v6  ;;  %v6991_v6 = vld [vmem:[#allocation14 + $0x2] ss:$0 sm:$0xff] }
 0x647   :  { %v1847_v49 = vunpack.c.l.b16 %v1795_v3  ;;  %1756 = vmatmul.bf16.vlgmr.msrb.gmra.mxu3 %v6891_v5 }
 0x64a   :  { %v1675_v54 = vpop.f32.mrf.mxu2 }
 0x64b   :  { %v1676_v57 = vadd.f32 %v6927_v61, %v1675_v54  ;;  %v6961_v61 = vpack.c.b16 %v1846_v11, %v1845_v35  ;;  %v1997_v35 = vpop.permute.xlu0 %1996 }
 0x64c   :  { %v2004_v22 = vsel %vm1812_vm5, %v1997_v35, 0 }
 0x64d   :  { %v1796_v0 = vpack.c.bf16 %v1676_v57, %v1676_v57  ;;  %v1855_v25 = vsel %vm1812_vm5, %v6961_v61, 0 }
 0x64f   :  { %v1848_v8 = vunpack.c.l.b16 %v1796_v0 }
 0x651   :  { %v6955_v63 = vpack.c.b16 %v1848_v8, %v1847_v49 }
 0x653   :  { %v1858_v47 = vsel %vm1812_vm5, %v6955_v63, 0 }
 0x654   :  { %1866 = vmatpush.bf16.xpose.msra.mxu1 %v1858_v47 }
 0x657   :  { %1761 = vmatmul.bf16.gmra.mxu3 %v6902_v43 }
 0x65c   :  { %1867 = vmatpush.bf16.xpose.msra.mxu1 %v1855_v25 }
 0x667   :  { %1766 = vmatmul.bf16.gmra.mxu3 %v6907_v55 }
 0x677   :  { %v1565_v14 = vpop.f32.mrf.mxu1  ;;  %1771 = vmatmul.bf16.gmra.mxu3 %v6910_v59 }
 0x678   :  { %v1566_v38 = vadd.f32 %v5661_v32, %v1565_v14 }
 0x67a   :  { %v1785_v4 = vpack.c.bf16 %v1566_v38, %v1566_v38 }
 0x67c   :  { %v1799_v12 = vunpack.c.l.b16 %v1785_v4 }
 0x67f   :  { %v1567_v58 = vpop.f32.mrf.mxu1 }
 0x680   :  { %v1568_v7 = vadd.f32 %v5661_v32, %v1567_v58 }
 0x682   :  { %v1786_v9 = vpack.c.bf16 %v1568_v7, %v1568_v7 }
 0x684   :  { %v1800_v40 = vunpack.c.l.b16 %v1786_v9 }
 0x686   :  { %v6959_v15 = vpack.c.b16 %v1800_v40, %v1799_v12 }
 0x688   :  { %1994 = vrot.lane.b32.xlu1 %v6959_v15, %s6433_s6  ;;  %5075 = vmatmul.msk.bf16.vlgmr.msra.gmra.mxu0 %vm1812_vm5, %v6959_v15 }
 0x6b5   :  { %v1570_v17 = vpop.f32.mrf.mxu1 }
 0x6b6   :  { %v1571_v30 = vadd.f32 %v5661_v32, %v1570_v17 }
 0x6b8   :  { %v1787_v27 = vpack.c.bf16 %v1571_v30, %v1571_v30 }
 0x6ba   :  { %v1838_v31 = vunpack.c.l.b16 %v1787_v27 }
 0x6bd   :  { %v1572_v18 = vpop.f32.mrf.mxu1 }
 0x6be   :  { %v1573_v28 = vadd.f32 %v5661_v32, %v1572_v18 }
 0x6c0   :  { %v1788_v29 = vpack.c.bf16 %v1573_v28, %v1573_v28 }
 0x6c2   :  { %v1839_v33 = vunpack.c.l.b16 %v1788_v29 }
 0x6c4   :  { %v6970_v50 = vpack.c.b16 %v1839_v33, %v1838_v31 }
 0x6c6   :  { %5076 = vmatmul.msk.bf16.vlgmr.msra.gmra.mxu1 %vm1812_vm5, %v6970_v50 }
 0x6ca   :  { %v1757_v43 = vpop.f32.mrf.mxu3 }
 0x6cb   :  { %v1758_v48 = vadd.f32 %v6991_v6, %v1757_v43 }
 0x6cd   :  { %v1777_v57 = vpack.c.bf16 %v1758_v48, %v1758_v48 }
 0x6cf   :  { %v1935_v0 = vunpack.c.l.b16 %v1777_v57 }
 0x6d2   :  { %v1759_v41 = vpop.f32.mrf.mxu3 }
 0x6d3   :  { %v1760_v3 = vadd.f32 %v6991_v6, %v1759_v41 }
 0x6d5   :  { %v1778_v58 = vpack.c.bf16 %v1760_v3, %v1760_v3 }
 0x6d7   :  { %v1936_v4 = vunpack.c.l.b16 %v1778_v58 }
 0x6d9   :  { %v6999_v9 = vpack.c.b16 %v1936_v4, %v1935_v0 }
 0x6da   :  { %v1762_v32 = vpop.f32.mrf.mxu3 }
 0x6db   :  { %v1763_v46 = vadd.f32 %v6991_v6, %v1762_v32 }
 0x6dd   :  { %v1779_v38 = vpack.c.bf16 %v1763_v46, %v1763_v46 }
 0x6df   :  { %v1937_v42 = vunpack.c.l.b16 %v1779_v38 }
 0x6e2   :  { %v1764_v54 = vpop.f32.mrf.mxu3 }
 0x6e3   :  { %v1765_v60 = vadd.f32 %v6991_v6, %v1764_v54 }
 0x6e5   :  { %v1780_v49 = vpack.c.bf16 %v1765_v60, %v1765_v60 }
 0x6e7   :  { %v1938_v7 = vunpack.c.l.b16 %v1780_v49 }
 0x6e9   :  { %v6997_v8 = vpack.c.b16 %v1938_v7, %v1937_v42 }
 0x6ea   :  { %v1767_v28 = vpop.f32.mrf.mxu3 }
 0x6eb   :  { %1952 = vmatpush.bf16.msrb.mxu0 %v6997_v8 }
 0x6ef   :  { %1953 = vmatpush.bf16.msrb.mxu0 %v6999_v9 }
 0x6f2   :  { %v1769_v33 = vpop.f32.mrf.mxu3 }
 0x6fa   :  { %v7034_v24 = vpop.permute.xlu1 %1994 }
 0x705   :  { %v1831_v34 = vpop.f32.mrf.mxu0 }
 0x706   :  { %v1874_v56 = vmul.f32 0.5, %v1831_v34 }
 0x708   :  { %v1878_v1 = vsel %vm1290_vm3, %v1874_v56, -inf }
 0x709   :  { %1879 = vmax.xlane.f32.xlu2 %v1878_v1 }
 0x70d   :  { %v1833_v5 = vpop.f32.mrf.mxu0 }
 0x70e   :  { %v1875_v10 = vmul.f32 0.5, %v1833_v5  ;;  %v1768_v5 = vadd.f32 %v6991_v6, %v1767_v28 }
 0x710   :  { %v1881_v13 = vsel %vm1290_vm3, %v1875_v10, -inf }
 0x711   :  { %1882 = vmax.xlane.f32.xlu0 %v1881_v13 }
 0x721   :  { %1998 = vrot.lane.b32.xlu2 %v6945_v39, %s6433_s6 }
 0x725   :  { %2164 = vrot.lane.b32.xlu0 %v6945_v39, %s6428_s30 }
 0x743   :  { %v1869_v55 = vpop.f32.mrf.mxu1 }
 0x744   :  { %v6983_v62 = vmul.f32 0.5, %v1869_v55  ;;  %v1781_v55 = vpack.c.bf16 %v1768_v5, %v1768_v5 }
 0x746   :  { %v1884_v59 = vsel %vm1290_vm3, %v6983_v62, -inf }
 0x747   :  { %1885 = vmax.xlane.f32.xlu1 %v1884_v59 }
 0x74b   :  { %v1871_v16 = vpop.f32.mrf.mxu1 }
 0x74c   :  { %v6987_v45 = vmul.f32 0.5, %v1871_v16 }
 0x74e   :  { %v1887_v14 = vsel %vm1290_vm3, %v6987_v45, -inf }
 0x74f   :  { %1888 = vmax.xlane.f32.xlu2 %v1887_v14 }
 0x767   :  { %2162 = vrot.lane.b32.xlu2 %v6931_v53, %s6428_s30 }
 0x76f   :  { %2160 = vrot.lane.b32.xlu2 %v6959_v15, %s6428_s30 }
 0x777   :  { %2025 = vrot.lane.b32.xlu2 %v6961_v61, %s6433_s6 }
 0x77c   :  { %v1880_v11 = vpop.xlane.xlu2 %1879 }
 0x77d   :  { %v1890_v12 = vsub.f32 %v1874_v56, %v1880_v11  ;;  %v1772_v56 = vpop.f32.mrf.mxu3 }
 0x77e   :  { %v1773_v1 = vadd.f32 %v6991_v6, %v1772_v56 }
 0x77f   :  { %v1894_v40 = vmul.f32 1.442695, %v1890_v12  ;;  %2193 = vrot.lane.b32.xlu2 %v6955_v63, %s6428_s30 }
 0x780   :  { %v1783_v13 = vpack.c.bf16 %v1773_v1, %v1773_v1 }
 0x781   :  { %5742 = vpow2.f32 %v1894_v40 }
 0x782   :  { %v1971_v41 = vunpack.c.l.b16 %v1783_v13 }
 0x784   :  { %v1999_v47 = vpop.permute.xlu2 %1998  ;;  %v1883_v25 = vpop.xlane.xlu0 %1882 }
 0x785   :  { %v2007_v44 = vsel %vm1812_vm5, %v1999_v47, 0  ;;  %v1891_v19 = vsub.f32 %v1875_v10, %v1883_v25  ;;  %v1770_v10 = vadd.f32 %v6991_v6, %v1769_v33  ;;  %v1774_v43 = vpop.f32.mrf.mxu3 }
 0x786   :  { %2015 = vmatpush.bf16.xpose.msra.mxu0 %v2007_v44  ;;  %v1775_v59 = vadd.f32 %v6991_v6, %v1774_v43 }
 0x787   :  { %v7012_v20 = vpop.eup %5742  ;;  %v1896_v51 = vmul.f32 1.442695, %v1891_v19  ;;  %2189 = vrot.lane.b32.xlu2 %v6970_v50, %s6428_s30 }
 0x788   :  { %v1902_v21 = vsel %vm1290_vm3, %v7012_v20, 0.0  ;;  %v1784_v16 = vpack.c.bf16 %v1775_v59, %v1775_v59 }
 0x789   :  { %5744 = vpow2.f32 %v1896_v51  ;;  %1903 = vadd.xlane.f32.xlu0 %v1902_v21 }
 0x78a   :  { %v1972_v32 = vunpack.c.l.b16 %v1784_v16 }
 0x78c   :  { %v7054_v46 = vpack.c.b16 %v1972_v32, %v1971_v41 }
 0x78e   :  { %2016 = vmatpush.bf16.xpose.msra.mxu0 %v2004_v22  ;;  %1986 = vmatpush.bf16.msrb.mxu1 %v7054_v46 }
 0x78f   :  { %v5745_v23 = vpop.eup %5744  ;;  %2355 = vrot.lane.b32.xlu2 %v6970_v50, %s6434_s3 }
 0x790   :  { %v1905_v17 = vsel %vm1290_vm3, %v5745_v23, 0.0 }
 0x791   :  { %1906 = vadd.xlane.f32.xlu1 %v1905_v17 }
 0x797   :  { %2275 = vrot.lane.b32.xlu2 %v6999_v9, %s6428_s30  ;;  %v2165_v3 = vpop.permute.xlu0 %2164 }
 0x798   :  { %v2173_v12 = vsel %vm1812_vm5, %v2165_v3, 0 }
 0x79d   :  { %2027 = vrot.lane.b32.xlu0 %v6955_v63, %s6433_s6 }
 0x7a5   :  { %2330 = vrot.lane.b32.xlu0 %v6945_v39, %s6434_s3 }
 0x7aa   :  { %2328 = vrot.lane.b32.xlu1 %v6931_v53, %s6434_s3 }
 0x7ad   :  { %2023 = vrot.lane.b32.xlu0 %v6970_v50, %s6433_s6 }
 0x7b5   :  { %2191 = vrot.lane.b32.xlu0 %v6961_v61, %s6428_s30 }
 0x7ba   :  { %v1886_v30 = vpop.xlane.xlu1 %1885 }
 0x7bb   :  { %v1892_v18 = vsub.f32 %v6983_v62, %v1886_v30  ;;  %v1782_v62 = vpack.c.bf16 %v1770_v10, %v1770_v10 }
 0x7bd   :  { %2357 = vrot.lane.b32.xlu0 %v6961_v61, %s6434_s3  ;;  %v1898_v39 = vmul.f32 1.442695, %v1892_v18  ;;  %v1970_v14 = vunpack.c.l.b16 %v1782_v62 }
 0x7bf   :  { %5746 = vpow2.f32 %v1898_v39 }
 0x7c2   :  { %v1889_v27 = vpop.xlane.xlu2 %1888 }
 0x7c3   :  { %v1893_v53 = vsub.f32 %v6987_v45, %v1889_v27  ;;  %v1969_v45 = vunpack.c.l.b16 %v1781_v55 }
 0x7c5   :  { %2109 = vrot.lane.b32.xlu0 %v6999_v9, %s6433_s6  ;;  %v1900_v29 = vmul.f32 1.442695, %v1893_v53  ;;  %v7042_v31 = vpop.eup %5746  ;;  %v7056_v48 = vpack.c.b16 %v1970_v14, %v1969_v45 }
 0x7c6   :  { %v1908_v61 = vsel %vm1290_vm3, %v7042_v31, 0.0 }
 0x7c7   :  { %5748 = vpow2.f32 %v1900_v29  ;;  %1987 = vmatpush.bf16.msrb.mxu1 %v7056_v48 }
 0x7ca   :  { %v2163_v6 = vpop.permute.xlu2 %2162 }
 0x7cb   :  { %v2170_v25 = vsel %vm1812_vm5, %v2163_v6, 0 }
 0x7cd   :  { %v7046_v50 = vpop.eup %5748 }
 0x7ce   :  { %v1911_v34 = vsel %vm1290_vm3, %v7046_v50, 0.0 }
 0x7d2   :  { %v2161_v42 = vpop.permute.xlu2 %2160 }
 0x7d4   :  { %1909 = vadd.xlane.f32.xlu1 %v1908_v61 }
 0x7da   :  { %v2026_v40 = vpop.permute.xlu2 %2025 }
 0x7db   :  { %v2033_v47 = vsel %vm1812_vm5, %v2026_v40, 0 }
 0x7dc   :  { %1912 = vadd.xlane.f32.xlu1 %v1911_v34 }
 0x7e2   :  { %v2194_v29 = vpop.permute.xlu2 %2193 }
 0x7e3   :  { %v2202_v61 = vsel %vm1812_vm5, %v2194_v29, 0 }
 0x7ea   :  { %v2190_v5 = vpop.permute.xlu2 %2189 }
 0x7f2   :  { %v2356_v62 = vpop.permute.xlu2 %2355 }
 0x7f5   :  { %2326 = vrot.lane.b32.xlu1 %v6959_v15, %s6434_s3 }
 0x7fa   :  { %v2276_v41 = vpop.permute.xlu2 %2275 }
 0x7fc   :  { %v1904_v38 = vpop.xlane.xlu0 %1903 }
 0x7fd   :  { %2359 = vrot.lane.b32.xlu1 %v6955_v63, %s6434_s3  ;;  %5750 = vrcp.f32 %v1904_v38 }
 0x803   :  { %v5751_v57 = vpop.eup %5750 }
 0x804   :  { %v1907_v54 = vpop.xlane.xlu1 %1906  ;;  %v1918_v58 = vmul.f32 %v5751_v57, %v7012_v20 }
 0x805   :  { %5752 = vrcp.f32 %v1907_v54  ;;  %2111 = vrot.lane.b32.xlu1 %v6997_v8, %s6433_s6 }
 0x806   :  { %v1922_v49 = vpack.c.bf16 %v1918_v58, %v1918_v58 }
 0x808   :  { %v1928_v63 = vunpack.c.l.b16 %v1922_v49 }
 0x80b   :  { %v5753_v60 = vpop.eup %5752 }
 0x80c   :  { %v1919_v0 = vmul.f32 %v5753_v60, %v5745_v23 }
 0x80d   :  { %2277 = vrot.lane.b32.xlu1 %v6997_v8, %s6428_s30 }
 0x80e   :  { %v1923_v15 = vpack.c.bf16 %v1919_v0, %v1919_v0 }
 0x80f   :  { %v2028_v4 = vpop.permute.xlu0 %2027 }
 0x810   :  { %v1929_v7 = vunpack.c.l.b16 %v1923_v15  ;;  %v2036_v35 = vsel %vm1812_vm5, %v2028_v4, 0 }
 0x811   :  { %2044 = vmatpush.bf16.xpose.msra.mxu1 %v2036_v35 }
 0x812   :  { %v1930_v11 = vpack.c.b16 %v1929_v7, %v1928_v63 }
 0x814   :  { %5077 = vmatmul.msk.bf16.vlgmr.msrb.gmra.mxu0 %vm1290_vm3, %v1930_v11 }
 0x815   :  { %2181 = vmatpush.bf16.xpose.msrb.mxu0 %v2173_v12 }
 0x817   :  { %v2331_v44 = vpop.permute.xlu0 %2330 }
 0x818   :  { %v2339_v19 = vsel %vm1812_vm5, %v2331_v44, 0 }
 0x819   :  { %2045 = vmatpush.bf16.xpose.msra.mxu1 %v2033_v47 }
 0x81c   :  { %v2329_v20 = vpop.permute.xlu1 %2328 }
 0x81d   :  { %2182 = vmatpush.bf16.xpose.msrb.mxu0 %v2170_v25  ;;  %v2336_v51 = vsel %vm1812_vm5, %v2329_v20, 0 }
 0x824   :  { %5079 = vmatmul.msk.bf16.vlgmr.msra.gmra.mxu0 %vm1812_vm5, %v7034_v24  ;;  %v2024_v24 = vpop.permute.xlu0 %2023 }
 0x825   :  { %2347 = vmatpush.bf16.xpose.msra.mxu0 %v2339_v19 }
 0x82c   :  { %v2192_v34 = vpop.permute.xlu0 %2191 }
 0x82d   :  { %2348 = vmatpush.bf16.xpose.msra.mxu0 %v2336_v51  ;;  %v2199_v1 = vsel %vm1812_vm5, %v2192_v34, 0 }
 0x834   :  { %5083 = vmatmul.msk.bf16.vlgmr.msrb.gmra.mxu0 %vm1812_vm5, %v2161_v42  ;;  %v2358_v10 = vpop.permute.xlu0 %2357 }
 0x835   :  { %v2365_v43 = vsel %vm1812_vm5, %v2358_v10, 0 }
 0x83c   :  { %v2110_v55 = vpop.permute.xlu0 %2109 }
 0x847   :  { %v1910_v21 = vpop.xlane.xlu1 %1909 }
 0x848   :  { %5754 = vrcp.f32 %v1910_v21 }
 0x84e   :  { %v5755_v23 = vpop.eup %5754 }
 0x84f   :  { %v1913_v22 = vpop.xlane.xlu1 %1912  ;;  %v1920_v17 = vmul.f32 %v5755_v23, %v7042_v31 }
 0x850   :  { %5756 = vrcp.f32 %v1913_v22 }
 0x851   :  { %v1924_v18 = vpack.c.bf16 %v1920_v17, %v1920_v17 }
 0x853   :  { %v1962_v53 = vunpack.c.l.b16 %v1924_v18 }
 0x856   :  { %v5757_v30 = vpop.eup %5756 }
 0x857   :  { %v1921_v39 = vmul.f32 %v5757_v30, %v7046_v50 }
 0x859   :  { %v1925_v27 = vpack.c.bf16 %v1921_v39, %v1921_v39 }
 0x85b   :  { %v1963_v28 = vunpack.c.l.b16 %v1925_v27 }
 0x85d   :  { %v1964_v33 = vpack.c.b16 %v1963_v28, %v1962_v53 }
 0x85f   :  { %5078 = vmatmul.msk.bf16.vlgmr.msrb.gmra.mxu1 %vm1290_vm3, %v1964_v33 }
 0x860   :  { %2210 = vmatpush.bf16.xpose.msrb.mxu1 %v2202_v61 }
 0x867   :  { %v2327_v56 = vpop.permute.xlu1 %2326 }
 0x868   :  { %2211 = vmatpush.bf16.xpose.msrb.mxu1 %v2199_v1  ;;  %5087 = vmatmul.msk.bf16.vlgmr.msra.gmra.mxu0 %vm1812_vm5, %v2327_v56 }
 0x86f   :  { %v2360_v31 = vpop.permute.xlu1 %2359  ;;  %5080 = vmatmul.msk.bf16.vlgmr.msra.gmra.mxu1 %vm1812_vm5, %v2024_v24 }
 0x870   :  { %v2368_v50 = vsel %vm1812_vm5, %v2360_v31, 0 }
 0x871   :  { %2376 = vmatpush.bf16.xpose.msra.mxu1 %v2368_v50 }
 0x877   :  { %v2112_v13 = vpop.permute.xlu1 %2111 }
 0x878   :  { %2124 = vmatpush.bf16.msrb.mxu2 %v2112_v13 }
 0x879   :  { %2377 = vmatpush.bf16.xpose.msra.mxu1 %v2365_v43 }
 0x87c   :  { %2125 = vmatpush.bf16.msrb.mxu2 %v2110_v55 }
 0x87f   :  { %v2278_v59 = vpop.permute.xlu1 %2277  ;;  %5084 = vmatmul.msk.bf16.vlgmr.msrb.gmra.mxu1 %vm1812_vm5, %v2190_v5 }
 0x880   :  { %2290 = vmatpush.bf16.msra.mxu2 %v2278_v59 }
 0x884   :  { %2291 = vmatpush.bf16.msra.mxu2 %v2276_v41 }
 0x88f   :  { %5088 = vmatmul.msk.bf16.vlgmr.msra.gmra.mxu1 %vm1812_vm5, %v2356_v62 }
 0x891   :  { %v7090_v16 = vpop.f32.mrf.mxu0 }
 0x899   :  { %v7092_v45 = vpop.f32.mrf.mxu0 }
 0x8a1   :  { %v2018_v14 = vpop.f32.mrf.mxu0 }
 0x8a2   :  { %v2052_v32 = vmul.f32 0.5, %v2018_v14 }
 0x8a4   :  { %v2056_v3 = vsel %vm1290_vm3, %v2052_v32, -inf }
 0x8a5   :  { %2057 = vmax.xlane.f32.xlu1 %v2056_v3 }
 0x8a9   :  { %v2020_v38 = vpop.f32.mrf.mxu0 }
 0x8aa   :  { %v7095_v6 = vmul.f32 0.5, %v2020_v38 }
 0x8ac   :  { %v2059_v54 = vsel %vm1290_vm3, %v7095_v6, -inf }
 0x8ad   :  { %2060 = vmax.xlane.f32.xlu0 %v2059_v54 }
 0x8b1   :  { %v2184_v57 = vpop.f32.mrf.mxu0 }
 0x8b2   :  { %v7099_v58 = vmul.f32 0.5, %v2184_v57 }
 0x8b4   :  { %v2222_v60 = vsel %vm1290_vm3, %v7099_v58, -inf }
 0x8b5   :  { %2223 = vmax.xlane.f32.xlu2 %v2222_v60 }
 0x8b9   :  { %v2186_v42 = vpop.f32.mrf.mxu0 }
 0x8ba   :  { %v7103_v49 = vmul.f32 0.5, %v2186_v42 }
 0x8bc   :  { %v2225_v0 = vsel %vm1290_vm3, %v7103_v49, -inf }
 0x8bd   :  { %2226 = vmax.xlane.f32.xlu1 %v2225_v0 }
 0x8dc   :  { %v7107_v15 = vpop.f32.mrf.mxu1 }
 0x8e4   :  { %v7109_v4 = vpop.f32.mrf.mxu1 }
 0x8e5   :  { %v2350_v63 = vpop.f32.mrf.mxu0 }
 0x8e6   :  { %v7111_v7 = vmul.f32 0.5, %v2350_v63 }
 0x8e8   :  { %v2388_v35 = vsel %vm1290_vm3, %v7111_v7, -inf }
 0x8e9   :  { %2389 = vmax.xlane.f32.xlu1 %v2388_v35 }
 0x8ec   :  { %v2047_v11 = vpop.f32.mrf.mxu1 }
 0x8ed   :  { %v2054_v12 = vmul.f32 0.5, %v2047_v11  ;;  %v2352_v47 = vpop.f32.mrf.mxu0 }
 0x8ee   :  { %v2385_v25 = vmul.f32 0.5, %v2352_v47 }
 0x8ef   :  { %v2062_v40 = vsel %vm1290_vm3, %v2054_v12, -inf }
 0x8f0   :  { %2063 = vmax.xlane.f32.xlu0 %v2062_v40  ;;  %v2391_v20 = vsel %vm1290_vm3, %v2385_v25, -inf }
 0x8f4   :  { %v2049_v44 = vpop.f32.mrf.mxu1 }
 0x8f5   :  { %v2055_v19 = vmul.f32 0.5, %v2049_v44 }
 0x8f7   :  { %v2065_v51 = vsel %vm1290_vm3, %v2055_v19, -inf }
 0x8f8   :  { %2392 = vmax.xlane.f32.xlu0 %v2391_v20  ;;  %2066 = vmax.xlane.f32.xlu2 %v2065_v51 }
 0x8fc   :  { %v2213_v21 = vpop.f32.mrf.mxu1 }
 0x8fd   :  { %v2220_v22 = vmul.f32 0.5, %v2213_v21 }
 0x8ff   :  { %v2228_v23 = vsel %vm1290_vm3, %v2220_v22, -inf }
 0x900   :  { %2229 = vmax.xlane.f32.xlu2 %v2228_v23 }
 0x904   :  { %v2215_v17 = vpop.f32.mrf.mxu1 }
 0x905   :  { %v2221_v30 = vmul.f32 0.5, %v2215_v17 }
 0x907   :  { %v2231_v18 = vsel %vm1290_vm3, %v2221_v30, -inf }
 0x908   :  { %2232 = vmax.xlane.f32.xlu1 %v2231_v18 }
 0x90c   :  { %2443 = vrot.lane.b32.xlu0 %v6997_v8, %s6434_s3  ;;  %v2379_v24 = vpop.f32.mrf.mxu1 }
 0x90d   :  { %v7126_v28 = vmul.f32 0.5, %v2379_v24 }
 0x90f   :  { %v2394_v29 = vsel %vm1290_vm3, %v7126_v28, -inf }
 0x914   :  { %v2381_v33 = vpop.f32.mrf.mxu1 }
 0x915   :  { %v7132_v8 = vmul.f32 0.5, %v2381_v33 }
 0x917   :  { %v2397_v56 = vsel %vm1290_vm3, %v7132_v8, -inf }
 0x918   :  { %2137 = vrot.lane.b32.xlu2 %v7056_v48, %s6433_s6  ;;  %v2058_v39 = vpop.xlane.xlu1 %2057 }
 0x919   :  { %v2068_v27 = vsub.f32 %v2052_v32, %v2058_v39 }
 0x91b   :  { %v2072_v53 = vmul.f32 1.442695, %v2068_v27 }
 0x91d   :  { %5758 = vpow2.f32 %v2072_v53 }
 0x920   :  { %v2061_v1 = vpop.xlane.xlu0 %2060 }
 0x921   :  { %2139 = vrot.lane.b32.xlu1 %v7054_v46, %s6433_s6  ;;  %v2069_v59 = vsub.f32 %v7095_v6, %v2061_v1 }
 0x923   :  { %v7130_v61 = vpop.eup %5758  ;;  %v2074_v32 = vmul.f32 1.442695, %v2069_v59 }
 0x924   :  { %v2080_v34 = vsel %vm1290_vm3, %v7130_v61, 0.0 }
 0x928   :  { %v2224_v31 = vpop.xlane.xlu2 %2223 }
 0x929   :  { %v2234_v6 = vsub.f32 %v7099_v58, %v2224_v31 }
 0x92b   :  { %v2238_v11 = vmul.f32 1.442695, %v2234_v6 }
 0x930   :  { %v2227_v10 = vpop.xlane.xlu1 %2226 }
 0x931   :  { %v2235_v58 = vsub.f32 %v7103_v49, %v2227_v10 }
 0x933   :  { %v2240_v21 = vmul.f32 1.442695, %v2235_v58 }
 0x936   :  { %2395 = vmax.xlane.f32.xlu0 %v2394_v29 }
 0x93e   :  { %2081 = vadd.xlane.f32.xlu0 %v2080_v34 }
 0x941   :  { %2398 = vmax.xlane.f32.xlu2 %v2397_v56 }
 0x952   :  { %2441 = vrot.lane.b32.xlu0 %v6999_v9, %s6434_s3 }
 0x959   :  { %2305 = vrot.lane.b32.xlu2 %v7054_v46, %s6428_s30 }
 0x95c   :  { %v2390_v9 = vpop.xlane.xlu1 %2389 }
 0x95d   :  { %v2400_v17 = vsub.f32 %v7111_v7, %v2390_v9 }
 0x95f   :  { %v2404_v18 = vmul.f32 1.442695, %v2400_v17 }
 0x963   :  { %v2064_v50 = vpop.xlane.xlu0 %2063 }
 0x964   :  { %v2070_v5 = vsub.f32 %v2054_v12, %v2064_v50 }
 0x966   :  { %v2076_v55 = vmul.f32 1.442695, %v2070_v5 }
 0x96b   :  { %v2067_v13 = vpop.xlane.xlu2 %2066  ;;  %v2393_v41 = vpop.xlane.xlu0 %2392 }
 0x96c   :  { %v2071_v43 = vsub.f32 %v2055_v19, %v2067_v13  ;;  %v2401_v14 = vsub.f32 %v2385_v25, %v2393_v41 }
 0x96e   :  { %v2078_v62 = vmul.f32 1.442695, %v2071_v43  ;;  %v2406_v57 = vmul.f32 1.442695, %v2401_v14 }
 0x970   :  { %5760 = vpow2.f32 %v2078_v62 }
 0x971   :  { %5762 = vpow2.f32 %v2076_v55 }
 0x972   :  { %5764 = vpow2.f32 %v2074_v32 }
 0x973   :  { %v2230_v3 = vpop.xlane.xlu2 %2229 }
 0x974   :  { %v2236_v38 = vsub.f32 %v2220_v22, %v2230_v3 }
 0x976   :  { %v7143_v54 = vpop.eup %5760  ;;  %v2242_v60 = vmul.f32 1.442695, %v2236_v38 }
 0x977   :  { %v2089_v42 = vsel %vm1290_vm3, %v7143_v54, 0.0  ;;  %v7147_v0 = vpop.eup %5762 }
 0x978   :  { %5766 = vpow2.f32 %v2242_v60  ;;  %2090 = vadd.xlane.f32.xlu1 %v2089_v42  ;;  %v2086_v35 = vsel %vm1290_vm3, %v7147_v0, 0.0  ;;  %v7152_v40 = vpop.eup %5764 }
 0x979   :  { %5768 = vpow2.f32 %v2406_v57  ;;  %v2083_v20 = vsel %vm1290_vm3, %v7152_v40, 0.0 }
 0x97a   :  { %5770 = vpow2.f32 %v2238_v11 }
 0x97b   :  { %v2233_v63 = vpop.xlane.xlu1 %2232  ;;  %v2138_v7 = vpop.permute.xlu2 %2137 }
 0x97c   :  { %v2237_v12 = vsub.f32 %v2221_v30, %v2233_v63  ;;  %2087 = vadd.xlane.f32.xlu0 %v2086_v35 }
 0x97e   :  { %v7154_v47 = vpop.eup %5766  ;;  %v2244_v25 = vmul.f32 1.442695, %v2237_v12  ;;  %v2444_v31 = vpop.permute.xlu0 %2443 }
 0x97f   :  { %v2252_v44 = vsel %vm1290_vm3, %v7154_v47, 0.0  ;;  %v7158_v19 = vpop.eup %5768 }
 0x980   :  { %2253 = vadd.xlane.f32.xlu1 %v2252_v44  ;;  %5772 = vpow2.f32 %v2244_v25  ;;  %v2415_v51 = vsel %vm1290_vm3, %v7158_v19, 0.0  ;;  %v7165_v22 = vpop.eup %5770 }
 0x981   :  { %5774 = vpow2.f32 %v2240_v21  ;;  %v2246_v49 = vsel %vm1290_vm3, %v7165_v22, 0.0 }
 0x982   :  { %2084 = vadd.xlane.f32.xlu2 %v2083_v20  ;;  %5776 = vpow2.f32 %v2404_v18 }
 0x984   :  { %2416 = vadd.xlane.f32.xlu0 %v2415_v51 }
 0x986   :  { %v7167_v23 = vpop.eup %5772 }
 0x987   :  { %v2255_v30 = vsel %vm1290_vm3, %v7167_v23, 0.0  ;;  %v7174_v39 = vpop.eup %5774 }
 0x988   :  { %v2249_v27 = vsel %vm1290_vm3, %v7174_v39, 0.0  ;;  %v7178_v53 = vpop.eup %5776 }
 0x989   :  { %v2412_v29 = vsel %vm1290_vm3, %v7178_v53, 0.0 }
 0x98a   :  { %2247 = vadd.xlane.f32.xlu2 %v2246_v49 }
 0x98c   :  { %2256 = vadd.xlane.f32.xlu0 %v2255_v30 }
 0x992   :  { %2250 = vadd.xlane.f32.xlu2 %v2249_v27 }
 0x993   :  { %v2140_v24 = vpop.permute.xlu1 %2139 }
 0x994   :  { %2152 = vmatpush.bf16.msra.mxu3 %v2140_v24 }
 0x998   :  { %2153 = vmatpush.bf16.msra.mxu3 %v2138_v7 }
 0x99a   :  { %2413 = vadd.xlane.f32.xlu2 %v2412_v29 }
 0x9a0   :  { %2471 = vrot.lane.b32.xlu0 %v7054_v46, %s6434_s3 }
 0x9a9   :  { %v2396_v10 = vpop.xlane.xlu0 %2395 }
 0x9aa   :  { %v2402_v46 = vsub.f32 %v7126_v28, %v2396_v10 }
 0x9ac   :  { %v2408_v13 = vmul.f32 1.442695, %v2402_v46 }
 0x9b1   :  { %v2082_v55 = vpop.xlane.xlu0 %2081 }
 0x9b2   :  { %2303 = vrot.lane.b32.xlu2 %v7056_v48, %s6428_s30 }
 0x9b4   :  { %v2399_v33 = vpop.xlane.xlu2 %2398 }
 0x9b5   :  { %v2403_v34 = vsub.f32 %v7132_v8, %v2399_v33 }
 0x9b7   :  { %v2410_v56 = vmul.f32 1.442695, %v2403_v34 }
 0x9b9   :  { %5778 = vpow2.f32 %v2410_v56 }
 0x9ba   :  { %5780 = vpow2.f32 %v2408_v13 }
 0x9bc   :  { %v2306_v1 = vpop.permute.xlu2 %2305 }
 0x9bd   :  { %2318 = vmatpush.bf16.msrb.mxu3 %v2306_v1 }
 0x9bf   :  { %v7187_v50 = vpop.eup %5778 }
 0x9c0   :  { %v2421_v5 = vsel %vm1290_vm3, %v7187_v50, 0.0  ;;  %v7192_v43 = vpop.eup %5780 }
 0x9c1   :  { %2422 = vadd.xlane.f32.xlu1 %v2421_v5  ;;  %v2418_v8 = vsel %vm1290_vm3, %v7192_v43, 0.0 }
 0x9c4   :  { %v2442_v62 = vpop.permute.xlu0 %2441 }
 0x9da   :  { %2469 = vrot.lane.b32.xlu1 %v7056_v48, %s6434_s3 }
 0x9db   :  { %2419 = vadd.xlane.f32.xlu2 %v2418_v8 }
 0x9eb   :  { %v2091_v59 = vpop.xlane.xlu1 %2090 }
 0x9ec   :  { %5782 = vrcp.f32 %v2091_v59 }
 0x9ed   :  { %5784 = vrcp.f32 %v2082_v55 }
 0x9ef   :  { %v2088_v41 = vpop.xlane.xlu0 %2087 }
 0x9f0   :  { %5786 = vrcp.f32 %v2088_v41 }
 0x9f2   :  { %v5783_v14 = vpop.eup %5782 }
 0x9f3   :  { %v2099_v28 = vmul.f32 %v5783_v14, %v7143_v54  ;;  %v5785_v32 = vpop.eup %5784  ;;  %v2254_v51 = vpop.xlane.xlu1 %2253 }
 0x9f4   :  { %v2096_v60 = vmul.f32 %v5785_v32, %v7130_v61 }
 0x9f5   :  { %v2085_v9 = vpop.xlane.xlu2 %2084  ;;  %v2103_v38 = vpack.c.bf16 %v2099_v28, %v2099_v28 }
 0x9f6   :  { %v5787_v3 = vpop.eup %5786  ;;  %5788 = vrcp.f32 %v2085_v9  ;;  %v2100_v11 = vpack.c.bf16 %v2096_v60, %v2096_v60 }
 0x9f7   :  { %v2098_v48 = vmul.f32 %v5787_v3, %v7147_v0  ;;  %v2417_v57 = vpop.xlane.xlu0 %2416  ;;  %v2135_v6 = vunpack.c.l.b16 %v2103_v38 }
 0x9f8   :  { %v2106_v20 = vunpack.c.l.b16 %v2100_v11 }
 0x9f9   :  { %v2102_v42 = vpack.c.bf16 %v2098_v48, %v2098_v48 }
 0x9fb   :  { %v2134_v63 = vunpack.c.l.b16 %v2102_v42 }
 0x9fc   :  { %v5789_v35 = vpop.eup %5788 }
 0x9fd   :  { %v2136_v12 = vpack.c.b16 %v2135_v6, %v2134_v63  ;;  %v2097_v25 = vmul.f32 %v5789_v35, %v7152_v40  ;;  %v2248_v44 = vpop.xlane.xlu2 %2247 }
 0x9fe   :  { %5790 = vrcp.f32 %v2248_v44 }
 0x9ff   :  { %v2101_v54 = vpack.c.bf16 %v2097_v25, %v2097_v25  ;;  %5082 = vmatmul.msk.bf16.vlgmr.msra.gmra.mxu3 %vm1290_vm3, %v2136_v12  ;;  %v2257_v58 = vpop.xlane.xlu0 %2256 }
 0xa00   :  { %5792 = vrcp.f32 %v2257_v58 }
 0xa01   :  { %v2107_v0 = vunpack.c.l.b16 %v2101_v54  ;;  %5794 = vrcp.f32 %v2254_v51 }
 0xa03   :  { %v2108_v21 = vpack.c.b16 %v2107_v0, %v2106_v20 }
 0xa04   :  { %v5791_v17 = vpop.eup %5790 }
 0xa05   :  { %v2251_v61 = vpop.xlane.xlu2 %2250  ;;  %5081 = vmatmul.msk.bf16.vlgmr.msrb.gmra.mxu2 %vm1290_vm3, %v2108_v21  ;;  %v2262_v40 = vmul.f32 %v5791_v17, %v7165_v22 }
 0xa06   :  { %5796 = vrcp.f32 %v2251_v61  ;;  %2456 = vmatpush.bf16.msrb.mxu2 %v2444_v31  ;;  %v5793_v49 = vpop.eup %5792 }
 0xa07   :  { %v5795_v30 = vpop.eup %5794  ;;  %v2265_v18 = vmul.f32 %v5793_v49, %v7167_v23  ;;  %v2266_v7 = vpack.c.bf16 %v2262_v40, %v2262_v40 }
 0xa08   :  { %v2264_v24 = vmul.f32 %v5795_v30, %v7154_v47  ;;  %v5428_v30 = vld [vmem:[#allocation16 + $0x38] sm:$0xff] }
 0xa09   :  { %v2269_v34 = vpack.c.bf16 %v2265_v18, %v2265_v18  ;;  %v2272_v31 = vunpack.c.l.b16 %v2266_v7  ;;  %2627 = vmatpush.bf16.msrb.mxu0 %v5428_v30  ;;  %v5426_v7 = vld [vmem:[#allocation16 + $0x28] sm:$0xff] }
 0xa0a   :  { %2457 = vmatpush.bf16.msrb.mxu2 %v2442_v62  ;;  %v2268_v1 = vpack.c.bf16 %v2264_v24, %v2264_v24  ;;  %v5427_v24 = vld [vmem:[#allocation16 + $0x30] sm:$0xff] }
 0xa0b   :  { %v2301_v10 = vunpack.c.l.b16 %v2269_v34  ;;  %v5423_v34 = vld [vmem:[#allocation16 + $0x10] sm:$0xff] }
 0xa0c   :  { %v5797_v27 = vpop.eup %5796  ;;  %v2300_v13 = vunpack.c.l.b16 %v2268_v1  ;;  %v5421_v1 = vld [vmem:[#allocation16] sm:$0xff] }
 0xa0d   :  { %v2263_v29 = vmul.f32 %v5797_v27, %v7174_v39  ;;  %v2414_v33 = vpop.xlane.xlu2 %2413  ;;  %2628 = vmatpush.bf16.msrb.mxu0 %v5427_v24 }
 0xa0e   :  { %5798 = vrcp.f32 %v2414_v33  ;;  %v2302_v55 = vpack.c.b16 %v2301_v10, %v2300_v13  ;;  %v5424_v33 = vld [vmem:[#allocation16 + $0x18] sm:$0xff] }
 0xa0f   :  { %v2267_v56 = vpack.c.bf16 %v2263_v29, %v2263_v29  ;;  %5800 = vrcp.f32 %v2417_v57  ;;  %v5425_v29 = vld [vmem:[#allocation16 + $0x20] sm:$0xff] }
 0xa11   :  { %v2273_v5 = vunpack.c.l.b16 %v2267_v56  ;;  %2629 = vmatpush.bf16.msrb.mxu0 %v5426_v7  ;;  %v5422_v56 = vld [vmem:[#allocation16 + $0x8] sm:$0xff] }
 0xa12   :  { %v2472_v47 = vpop.permute.xlu0 %2471 }
 0xa13   :  { %v2274_v22 = vpack.c.b16 %v2273_v5, %v2272_v31 }
 0xa14   :  { %v5799_v46 = vpop.eup %5798 }
 0xa15   :  { %v2304_v8 = vpop.permute.xlu2 %2303  ;;  %5085 = vmatmul.msk.bf16.vlgmr.msra.gmra.mxu2 %vm1290_vm3, %v2274_v22  ;;  %v5801_v23 = vpop.eup %5800  ;;  %v2428_v39 = vmul.f32 %v5799_v46, %v7178_v53  ;;  %2630 = vmatpush.bf16.msrb.mxu0 %v5425_v29 }
 0xa16   :  { %2319 = vmatpush.bf16.msrb.mxu3 %v2304_v8  ;;  %v2429_v62 = vmul.f32 %v5801_v23, %v7158_v19 }
 0xa17   :  { %v2432_v59 = vpack.c.bf16 %v2428_v39, %v2428_v39 }
 0xa18   :  { %v2433_v41 = vpack.c.bf16 %v2429_v62, %v2429_v62 }
 0xa19   :  { %5086 = vmatmul.msk.bf16.vlgmr.msrb.gmra.mxu3 %vm1290_vm3, %v2302_v55  ;;  %v2438_v14 = vunpack.c.l.b16 %v2432_v59  ;;  %2631 = vmatpush.bf16.msrb.mxu0 %v5424_v33 }
 0xa1a   :  { %2484 = vmatpush.bf16.msra.mxu3 %v2472_v47  ;;  %v2439_v28 = vunpack.c.l.b16 %v2433_v41 }
 0xa1c   :  { %v2440_v32 = vpack.c.b16 %v2439_v28, %v2438_v14 }
 0xa1d   :  { %2632 = vmatpush.bf16.msrb.mxu0 %v5423_v34 }
 0xa21   :  { %2633 = vmatpush.bf16.msrb.mxu0 %v5422_v56 }
 0xa25   :  { %5089 = vmatmul.msk.bf16.vlgmr.msrb.gmra.mxu2 %vm1290_vm3, %v2440_v32  ;;  %2634 = vmatpush.bf16.msrb.mxu0 %v5421_v1 }
 0xa34   :  { %v2423_v9 = vpop.xlane.xlu1 %2422 }
 0xa35   :  { %5802 = vrcp.f32 %v2423_v9 }
 0xa3b   :  { %v5803_v48 = vpop.eup %5802 }
 0xa3c   :  { %v2431_v53 = vmul.f32 %v5803_v48, %v7187_v50 }
 0xa3e   :  { %v2435_v19 = vpack.c.bf16 %v2431_v53, %v2431_v53 }
 0xa40   :  { %v2467_v6 = vunpack.c.l.b16 %v2435_v19 }
 0xa4c   :  { %v2470_v3 = vpop.permute.xlu1 %2469 }
 0xa4d   :  { %2485 = vmatpush.bf16.msra.mxu3 %v2470_v3 }
 0xa4e   :  { %v2420_v38 = vpop.xlane.xlu2 %2419 }
 0xa4f   :  { %5804 = vrcp.f32 %v2420_v38 }
 0xa55   :  { %v5805_v57 = vpop.eup %5804 }
 0xa56   :  { %v2430_v60 = vmul.f32 %v5805_v57, %v7192_v43 }
 0xa58   :  { %v2434_v42 = vpack.c.bf16 %v2430_v60, %v2430_v60 }
 0xa5a   :  { %v2466_v63 = vunpack.c.l.b16 %v2434_v42 }
 0xa5c   :  { %v2468_v35 = vpack.c.b16 %v2467_v6, %v2466_v63 }
 0xa5e   :  { %5090 = vmatmul.msk.bf16.vlgmr.msra.gmra.mxu3 %vm1290_vm3, %v2468_v35  ;;  %vm2548_vm3 = vcmask 97280  }
 0xa82   :  { %v2155_v12 = vpop.f32.mrf.mxu3 }
 0xa88   :  { %v2127_v11 = vpop.f32.mrf.mxu2 }
 0xa8a   :  { %v2157_v54 = vpop.f32.mrf.mxu3 }
 0xa8b   :  { %v5581_v20 = vpack.i.bf16 %v2157_v54, %v2155_v12 }
 0xa90   :  { %v2129_v25 = vpop.f32.mrf.mxu2 }
 0xa91   :  { %v5566_v44 = vpack.i.bf16 %v2129_v25, %v2127_v11  ;;  %v5663_v25 = vld [vmem:[#allocation17] ss:$0 sm:$0xff] }
 0xa93   :  { %5567 = vrot.lane.b32.xlu0 %v5566_v44, %s7963_s23 }
 0xa98   :  { %v2293_v58 = vpop.f32.mrf.mxu2 }
 0xa9b   :  { %5582 = vrot.lane.b32.xlu0 %v5581_v20, %s7963_s23 }
 0xa9c   :  { %v2321_v0 = vpop.f32.mrf.mxu3 }
 0xaa0   :  { %v2295_v50 = vpop.f32.mrf.mxu2 }
 0xaa1   :  { %v5571_v51 = vpack.i.bf16 %v2295_v50, %v2293_v58 }
 0xaa3   :  { %5572 = vrot.lane.b32.xlu2 %v5571_v51, %s6430_s1 }
 0xaa4   :  { %v2323_v17 = vpop.f32.mrf.mxu3 }
 0xaa5   :  { %v5586_v49 = vpack.i.bf16 %v2323_v17, %v2321_v0 }
 0xaa8   :  { %v2459_v43 = vpop.f32.mrf.mxu2 }
 0xab0   :  { %v2461_v21 = vpop.f32.mrf.mxu2 }
 0xab1   :  { %v5576_v61 = vpack.i.bf16 %v2461_v21, %v2459_v43 }
 0xab3   :  { %5577 = vrot.lane.b32.xlu1 %v5576_v61, %s6435_s2 }
 0xabb   :  { %5587 = vrot.lane.b32.xlu1 %v5586_v49, %s6430_s1 }
 0xae1   :  { %v2487_v40 = vpop.f32.mrf.mxu3 }
 0xae9   :  { %v2489_v18 = vpop.f32.mrf.mxu3 }
 0xaea   :  { %v5591_v27 = vpack.i.bf16 %v2489_v18, %v2487_v40 }
 0xaec   :  { %5592 = vrot.lane.b32.xlu0 %v5591_v27, %s6435_s2 }
 0xafd   :  { %v5573_v22 = vpop.permute.xlu2 %5572 }
 0xafe   :  { %v5575_v8 = vunpack.i.h.bf16 %v5573_v22  ;;  %v5574_v23 = vunpack.i.l.bf16 %v5573_v22 }
 0xb05   :  { %v5568_v31 = vpop.permute.xlu0 %5567 }
 0xb06   :  { %v5570_v5 = vunpack.i.h.bf16 %v5568_v31  ;;  %v5569_v10 = vunpack.i.l.bf16 %v5568_v31 }
 0xb08   :  { %v2541_v46 = vsel %vm1812_vm5, %v7092_v45, %v5570_v5  ;;  %v2540_v13 = vsel %vm1812_vm5, %v7090_v16, %v5569_v10  ;;  %v5975_v45 = vld [vmem:[#allocation5 + $0x8] sm:$0xff]  }
 0xb09   :  { %v2544_v62 = vsel %vm619_vm0, %v2540_v13, %v5574_v23  ;;  %v2545_v59 = vsel %vm619_vm0, %v2541_v46, %v5575_v8  ;;  %v5436_v23 = vld [vmem:[#allocation23 + $0x38] sm:$0xff] }
 0xb0a   :  { %2818 = vmatpush.bf16.msrb.mxu1 %v5436_v23 }
 0xb0d   :  { %v5583_v28 = vpop.permute.xlu0 %5582 }
 0xb0e   :  { %v5585_v9 = vunpack.i.h.bf16 %v5583_v28  ;;  %v5584_v3 = vunpack.i.l.bf16 %v5583_v28 }
 0xb10   :  { %v2543_v57 = vsel %vm1812_vm5, %v7109_v4, %v5585_v9  ;;  %v2542_v19 = vsel %vm1812_vm5, %v7107_v15, %v5584_v3 }
 0xb25   :  { %v5578_v47 = vpop.permute.xlu1 %5577 }
 0xb26   :  { %v5580_v55 = vunpack.i.h.bf16 %v5578_v47  ;;  %v5579_v39 = vunpack.i.l.bf16 %v5578_v47  ;;  %v5435_v47 = vld [vmem:[#allocation23 + $0x30] sm:$0xff] }
 0xb27   :  { %2819 = vmatpush.bf16.msrb.mxu1 %v5435_v47 }
 0xb28   :  { %v2549_v41 = vsel %vm2548_vm3, %v2544_v62, %v5579_v39  ;;  %v2550_v14 = vsel %vm2548_vm3, %v2545_v59, %v5580_v55  ;;  %v5434_v55 = vld [vmem:[#allocation23 + $0x28] sm:$0xff]  ;;  %v5433_v39 = vld [vmem:[#allocation23 + $0x20] sm:$0xff]  ;;  %v5432_v62 = vld [vmem:[#allocation23 + $0x18] sm:$0xff] }
 0xb29   :  { %v5124_v16 = vpack.c.bf16 %v2550_v14, %v2549_v41  ;;  %v5431_v59 = vld [vmem:[#allocation23 + $0x10] sm:$0xff]  ;;  %v5430_v14 = vld [vmem:[#allocation23 + $0x8] sm:$0xff] }
 0xb2b   :  { %5125 = vmatmul.msk.bf16.vlgmr.msrb.gmra.mxu0 %vm7232_vm6, %v5124_v16  ;;  %2820 = vmatpush.bf16.msrb.mxu1 %v5434_v55 }
 0xb2d   :  { %v5588_v32 = vpop.permute.xlu1 %5587 }
 0xb2e   :  { %v5590_v38 = vunpack.i.h.bf16 %v5588_v32  ;;  %v5589_v48 = vunpack.i.l.bf16 %v5588_v32  ;;  %v5429_v32 = vld [vmem:[#allocation23] sm:$0xff] }
 0xb2f   :  { %2821 = vmatpush.bf16.msrb.mxu1 %v5433_v39 }
 0xb30   :  { %v2546_v6 = vsel %vm619_vm0, %v2542_v19, %v5589_v48  ;;  %v2547_v63 = vsel %vm619_vm0, %v2543_v57, %v5590_v38 }
 0xb33   :  { %2822 = vmatpush.bf16.msrb.mxu1 %v5432_v62 }
 0xb37   :  { %2823 = vmatpush.bf16.msrb.mxu1 %v5431_v59 }
 0xb3b   :  { %2824 = vmatpush.bf16.msrb.mxu1 %v5430_v14 }
 0xb3f   :  { %2825 = vmatpush.bf16.msrb.mxu1 %v5429_v32  ;;  %v5440_v32 = vld [vmem:[#allocation25 + $0x18] sm:$0xff] }
 0xb5e   :  { %v5593_v53 = vpop.permute.xlu0 %5592 }
 0xb5f   :  { %v5595_v60 = vunpack.i.h.bf16 %v5593_v53  ;;  %v5594_v42 = vunpack.i.l.bf16 %v5593_v53 }
 0xb61   :  { %v2551_v35 = vsel %vm2548_vm3, %v2546_v6, %v5594_v42  ;;  %v2552_v11 = vsel %vm2548_vm3, %v2547_v63, %v5595_v60 }
 0xb62   :  { %v5127_v12 = vpack.c.bf16 %v2552_v11, %v2551_v35 }
 0xb64   :  { %5128 = vmatmul.msk.bf16.gmra.mxu0 %vm7232_vm6, %v5127_v12 }
 0xba8   :  { %v2636_v44 = vpop.f32.mrf.mxu0 }
 0xba9   :  { %v2637_v4 = vadd.f32 %v5663_v25, %v2636_v44  ;;  %v7279_v44 = vld [vmem:[%s7943_s18] sm:$0xf] }
 0xbab   :  { %v2646_v54 = vadd.f32 %v2637_v4, %v6921_v36  ;;  %v2738_v4 = vperm.slane %v7279_v44, 1 }
 0xbad   :  { %v2650_v15 = vmul.f32 %v6875_v26, %v2646_v54 }
 0xbaf   :  { %2654 = vadd.xlane.f32.xlu1 %v2650_v15 }
 0xbb0   :  { %v2638_v58 = vpop.f32.mrf.mxu0 }
 0xbb1   :  { %v2639_v20 = vadd.f32 %v5663_v25, %v2638_v58 }
 0xbb3   :  { %v2647_v50 = vadd.f32 %v2639_v20, %v6923_v52 }
 0xbb5   :  { %v2651_v51 = vmul.f32 %v6875_v26, %v2647_v50  ;;  %v7286_v50 = vld [vmem:[%s7944_s19] sm:$0xf] }
 0xbb7   :  { %2656 = vadd.xlane.f32.xlu0 %v2651_v51 }
 0xbe1   :  { %v2641_v43 = vpop.f32.mrf.mxu0 }
 0xbe2   :  { %v2642_v0 = vadd.f32 %v5663_v25, %v2641_v43 }
 0xbe4   :  { %v2648_v21 = vadd.f32 %v2642_v0, %v6939_v2 }
 0xbe6   :  { %v2652_v61 = vmul.f32 %v6875_v26, %v2648_v21 }
 0xbe8   :  { %2658 = vadd.xlane.f32.xlu2 %v2652_v61 }
 0xbe9   :  { %v2643_v17 = vpop.f32.mrf.mxu0 }
 0xbea   :  { %v2644_v49 = vadd.f32 %v5663_v25, %v2643_v17 }
 0xbec   :  { %v2649_v36 = vadd.f32 %v2644_v49, %v6941_v37 }
 0xbee   :  { %v2653_v40 = vmul.f32 %v6875_v26, %v2649_v36 }
 0xbf0   :  { %2660 = vadd.xlane.f32.xlu1 %v2653_v40 }
 0xc22   :  { %v2655_v30 = vpop.xlane.xlu1 %2654 }
 0xc23   :  { %v2662_v18 = vmul.f32 0.03125, %v2655_v30  ;;  %v5444_v30 = vld [vmem:[#allocation25 + $0x38] sm:$0xff] }
 0xc24   :  { %2911 = vmatpush.bf16.msra.mxu2 %v5444_v30 }
 0xc25   :  { %v2666_v52 = vsub.f32 %v2650_v15, %v2662_v18 }
 0xc27   :  { %v7257_v27 = vmul.f32 %v6875_v26, %v2666_v52 }
 0xc29   :  { %v2674_v24 = vmul.f32 %v7257_v27, %v7257_v27 }
 0xc2a   :  { %v2657_v2 = vpop.xlane.xlu0 %2656 }
 0xc2b   :  { %v2663_v7 = vmul.f32 0.03125, %v2657_v2  ;;  %2678 = vadd.xlane.f32.xlu0 %v2674_v24 }
 0xc2d   :  { %v2667_v29 = vsub.f32 %v2651_v51, %v2663_v7  ;;  %v2743_v51 = vperm.slane %v7286_v50, 1 }
 0xc2f   :  { %v7262_v33 = vmul.f32 %v6875_v26, %v2667_v29  ;;  %v5442_v29 = vld [vmem:[#allocation25 + $0x28] sm:$0xff] }
 0xc31   :  { %v2675_v37 = vmul.f32 %v7262_v33, %v7262_v33 }
 0xc33   :  { %2680 = vadd.xlane.f32.xlu2 %v2675_v37 }
 0xc5b   :  { %v2659_v34 = vpop.xlane.xlu2 %2658 }
 0xc5c   :  { %v2664_v56 = vmul.f32 0.03125, %v2659_v34  ;;  %v5441_v34 = vld [vmem:[#allocation25 + $0x20] sm:$0xff] }
 0xc5e   :  { %v2668_v1 = vsub.f32 %v2652_v61, %v2664_v56 }
 0xc60   :  { %v7267_v31 = vmul.f32 %v6875_v26, %v2668_v1 }
 0xc62   :  { %v2676_v5 = vmul.f32 %v7267_v31, %v7267_v31 }
 0xc63   :  { %v2661_v10 = vpop.xlane.xlu1 %2660 }
 0xc64   :  { %v2665_v22 = vmul.f32 0.03125, %v2661_v10  ;;  %2682 = vadd.xlane.f32.xlu1 %v2676_v5 }
 0xc66   :  { %v2669_v46 = vsub.f32 %v2653_v40, %v2665_v22 }
 0xc68   :  { %v7272_v13 = vmul.f32 %v6875_v26, %v2669_v46 }
 0xc6a   :  { %v2677_v8 = vmul.f32 %v7272_v13, %v7272_v13 }
 0xc6c   :  { %2684 = vadd.xlane.f32.xlu0 %v2677_v8 }
 0xc9e   :  { %v2679_v41 = vpop.xlane.xlu0 %2678 }
 0xc9f   :  { %v2686_v16 = vmul.f32 0.03125, %v2679_v41 }
 0xca1   :  { %v2690_v28 = vadd.f32 1e-05, %v2686_v16 }
 0xca3   :  { %5806 = vrsqrt.f32 %v2690_v28  ;;  %vm2700_vm8 = vweird.f32 %v2690_v28 }
 0xca6   :  { %v2681_v9 = vpop.xlane.xlu2 %2680 }
 0xca7   :  { %v2687_v3 = vmul.f32 0.03125, %v2681_v9  ;;  %v5439_v9 = vld [vmem:[#allocation25 + $0x10] sm:$0xff] }
 0xca9   :  { %v5807_v38 = vpop.eup %5806  ;;  %v2691_v48 = vadd.f32 1e-05, %v2687_v3  ;;  %v5438_v3 = vld [vmem:[#allocation25 + $0x8] sm:$0xff] }
 0xcaa   :  { %v2695_v53 = vmul.f32 %v5807_v38, %v2690_v28  ;;  %vm2701_vm7 = vweird.f32 %v5807_v38 }
 0xcab   :  { %5808 = vrsqrt.f32 %v2691_v48  ;;  %vm2702_vm9 = vmor %vm2700_vm8, %vm2701_vm7  ;;  %vm2710_vm11 = vweird.f32 %v2691_v48 }
 0xcac   :  { %v2696_v57 = vmul.f32 %v5807_v38, %v2695_v53 }
 0xcae   :  { %v2697_v19 = vmul.f32 0.5, %v2696_v57 }
 0xcb0   :  { %v2698_v60 = vsub.f32 1.5, %v2697_v19 }
 0xcb1   :  { %v5809_v42 = vpop.eup %5808 }
 0xcb2   :  { %v2699_v6 = vmul.f32 %v5807_v38, %v2698_v60  ;;  %v2705_v63 = vmul.f32 %v5809_v42, %v2691_v48  ;;  %vm2711_vm10 = vweird.f32 %v5809_v42  ;;  %v5664_v48 = vld [vmem:[%s7940_s15] ss:$0 sm:$0xff] }
 0xcb3   :  { %vm2712_vm12 = vmor %vm2710_vm11, %vm2711_vm10 }
 0xcb4   :  { %v2706_v35 = vmul.f32 %v5809_v42, %v2705_v63  ;;  %v2703_v11 = vsel %vm2702_vm9, %v5807_v38, %v2699_v6  ;;  %v5437_v38 = vld [vmem:[#allocation25] sm:$0xff] }
 0xcb5   :  { %v2734_v54 = vmul.f32 %v2703_v11, %v7257_v27  ;;  %v5443_v27 = vld [vmem:[#allocation25 + $0x30] sm:$0xff] }
 0xcb6   :  { %v2707_v12 = vmul.f32 0.5, %v2706_v35  ;;  %2912 = vmatpush.bf16.msra.mxu2 %v5443_v27 }
 0xcb7   :  { %v2739_v20 = vmul.f32 %v2738_v4, %v2734_v54  ;;  %v5665_v54 = vld [vmem:[%s7942_s17] ss:$0 sm:$0xff] }
 0xcb8   :  { %v2708_v25 = vsub.f32 1.5, %v2707_v12 }
 0xcb9   :  { %v7292_v61 = vadd.f32 %v2743_v51, %v2739_v20 }
 0xcba   :  { %v2709_v15 = vmul.f32 %v5809_v42, %v2708_v25  ;;  %2913 = vmatpush.bf16.msra.mxu2 %v5442_v29 }
 0xcbc   :  { %v2713_v58 = vsel %vm2712_vm12, %v5809_v42, %v2709_v15 }
 0xcbd   :  { %v2735_v43 = vmul.f32 %v2713_v58, %v7262_v33 }
 0xcbe   :  { %2914 = vmatpush.bf16.msra.mxu2 %v5441_v34 }
 0xcbf   :  { %v2740_v0 = vmul.f32 %v2738_v4, %v2735_v43 }
 0xcc1   :  { %v7290_v21 = vadd.f32 %v2743_v51, %v2740_v0 }
 0xcc2   :  { %2915 = vmatpush.bf16.msra.mxu2 %v5440_v32 }
 0xcc3   :  { %v2748_v17 = vpack.c.bf16 %v7290_v21, %v7292_v61 }
 0xcc5   :  { %2826 = vmatmul.bf16.vlgmr.msrb.gmra.mxu1 %v2748_v17 }
 0xcc6   :  { %2916 = vmatpush.bf16.msra.mxu2 %v5439_v9  ;;  %v5445_v9 = vld [vmem:[#allocation19] sm:$0xff] }
 0xcca   :  { %2917 = vmatpush.bf16.msra.mxu2 %v5438_v3 }
 0xcce   :  { %2918 = vmatpush.bf16.msra.mxu2 %v5437_v38 }
 0xcd7   :  { %v2683_v49 = vpop.xlane.xlu1 %2682 }
 0xcd8   :  { %v2688_v36 = vmul.f32 0.03125, %v2683_v49 }
 0xcda   :  { %v2692_v40 = vadd.f32 1e-05, %v2688_v36 }
 0xcdc   :  { %5810 = vrsqrt.f32 %v2692_v40  ;;  %vm2720_vm14 = vweird.f32 %v2692_v40 }
 0xcdf   :  { %v2685_v18 = vpop.xlane.xlu0 %2684 }
 0xce0   :  { %v2689_v52 = vmul.f32 0.03125, %v2685_v18 }
 0xce2   :  { %v5811_v24 = vpop.eup %5810  ;;  %v2693_v2 = vadd.f32 1e-05, %v2689_v52 }
 0xce3   :  { %v2715_v7 = vmul.f32 %v5811_v24, %v2692_v40  ;;  %vm2721_vm13 = vweird.f32 %v5811_v24 }
 0xce4   :  { %5812 = vrsqrt.f32 %v2693_v2  ;;  %vm2722_vm15 = vmor %vm2720_vm14, %vm2721_vm13  ;;  %vm2730_vm4 = vweird.f32 %v2693_v2 }
 0xce5   :  { %v2716_v33 = vmul.f32 %v5811_v24, %v2715_v7 }
 0xce7   :  { %v2717_v37 = vmul.f32 0.5, %v2716_v33 }
 0xce9   :  { %v2718_v56 = vsub.f32 1.5, %v2717_v37 }
 0xcea   :  { %v5813_v1 = vpop.eup %5812 }
 0xceb   :  { %v2719_v5 = vmul.f32 %v5811_v24, %v2718_v56  ;;  %v2725_v10 = vmul.f32 %v5813_v1, %v2693_v2  ;;  %vm2731_vm2 = vweird.f32 %v5813_v1 }
 0xcec   :  { %vm2732_vm7 = vmor %vm2730_vm4, %vm2731_vm2 }
 0xced   :  { %v2726_v22 = vmul.f32 %v5813_v1, %v2725_v10  ;;  %v2723_v46 = vsel %vm2722_vm15, %v5811_v24, %v2719_v5  ;;  %v5452_v10 = vld [vmem:[#allocation19 + $0x38] sm:$0xff] }
 0xcee   :  { %v2736_v47 = vmul.f32 %v2723_v46, %v7267_v31  ;;  %3100 = vmatpush.bf16.msrb.mxu3 %v5452_v10  ;;  %v5450_v46 = vld [vmem:[#allocation19 + $0x28] sm:$0xff] }
 0xcef   :  { %v2727_v8 = vmul.f32 0.5, %v2726_v22  ;;  %v5451_v22 = vld [vmem:[#allocation19 + $0x30] sm:$0xff] }
 0xcf0   :  { %v2741_v59 = vmul.f32 %v2738_v4, %v2736_v47 }
 0xcf1   :  { %v2728_v23 = vsub.f32 1.5, %v2727_v8  ;;  %v5449_v8 = vld [vmem:[#allocation19 + $0x20] sm:$0xff] }
 0xcf2   :  { %v2746_v14 = vadd.f32 %v2743_v51, %v2741_v59  ;;  %3101 = vmatpush.bf16.msrb.mxu3 %v5451_v22 }
 0xcf3   :  { %v2729_v55 = vmul.f32 %v5813_v1, %v2728_v23  ;;  %v5448_v23 = vld [vmem:[#allocation19 + $0x18] sm:$0xff] }
 0xcf5   :  { %v2733_v39 = vsel %vm2732_vm7, %v5813_v1, %v2729_v55 }
 0xcf6   :  { %v2737_v62 = vmul.f32 %v2733_v39, %v7272_v13  ;;  %3102 = vmatpush.bf16.msrb.mxu3 %v5450_v46 }
 0xcf8   :  { %v2742_v41 = vmul.f32 %v2738_v4, %v2737_v62  ;;  %v5447_v62 = vld [vmem:[#allocation19 + $0x10] sm:$0xff] }
 0xcfa   :  { %v2747_v16 = vadd.f32 %v2743_v51, %v2742_v41  ;;  %3103 = vmatpush.bf16.msrb.mxu3 %v5449_v8 }
 0xcfc   :  { %v2749_v28 = vpack.c.bf16 %v2747_v16, %v2746_v14 }
 0xcfe   :  { %2831 = vmatmul.bf16.gmra.mxu1 %v2749_v28  ;;  %3104 = vmatpush.bf16.msrb.mxu3 %v5448_v23 }
 0xd02   :  { %3105 = vmatpush.bf16.msrb.mxu3 %v5447_v62 }
 0xd42   :  { %v2827_v31 = vpop.f32.mrf.mxu1 }
 0xd43   :  { %v2828_v13 = vadd.f32 %v5664_v48, %v2827_v31  ;;  %v5970_v31 = vld [vmem:[#allocation5] sm:$0xff]  }
 0xd45   :  { %v2837_v19 = vmax.f32 %v2828_v13, 0.0  ;;  %v5460_v13 = vld [vmem:[#allocation19 + $0x78] sm:$0xff] }
 0xd46   :  { %3201 = vmatpush.bf16.msra.mxu0 %v5460_v13 }
 0xd4a   :  { %v2829_v53 = vpop.f32.mrf.mxu1 }
 0xd4b   :  { %v2830_v57 = vadd.f32 %v5664_v48, %v2829_v53  ;;  %v5468_v53 = vld [vmem:[#allocation19 + $0xb8] sm:$0xff] }
 0xd4c   :  { %3290 = vmatpush.bf16.msra.mxu1 %v5468_v53 }
 0xd4d   :  { %v2838_v60 = vmax.f32 %v2830_v57, 0.0  ;;  %v5459_v57 = vld [vmem:[#allocation19 + $0x70] sm:$0xff] }
 0xd4e   :  { %3202 = vmatpush.bf16.msra.mxu0 %v5459_v57 }
 0xd4f   :  { %v2841_v42 = vpack.c.bf16 %v2838_v60, %v2837_v19  ;;  %v5467_v19 = vld [vmem:[#allocation19 + $0xb0] sm:$0xff]  ;;  %v5972_v60 = vld [vmem:[#allocation5 + $0x10] sm:$0xff]  }
 0xd50   :  { %3291 = vmatpush.bf16.msra.mxu1 %v5467_v19 }
 0xd51   :  { %2919 = vmatmul.bf16.vlgmr.msra.gmra.mxu2 %v2841_v42  ;;  %v5458_v42 = vld [vmem:[#allocation19 + $0x68] sm:$0xff] }
 0xd52   :  { %3203 = vmatpush.bf16.msra.mxu0 %v5458_v42  ;;  %v7335_v42 = vld [vmem:[#allocation20] ss:$0 sm:$0xff] }
 0xd7b   :  { %v2832_v6 = vpop.f32.mrf.mxu1 }
 0xd7c   :  { %v2833_v63 = vadd.f32 %v5664_v48, %v2832_v6  ;;  %v5466_v6 = vld [vmem:[#allocation19 + $0xa8] sm:$0xff] }
 0xd7d   :  { %3292 = vmatpush.bf16.msra.mxu1 %v5466_v6 }
 0xd7e   :  { %v2839_v12 = vmax.f32 %v2833_v63, 0.0  ;;  %v5457_v63 = vld [vmem:[#allocation19 + $0x60] sm:$0xff] }
 0xd7f   :  { %3204 = vmatpush.bf16.msra.mxu0 %v5457_v63 }
 0xd83   :  { %v2834_v35 = vpop.f32.mrf.mxu1 }
 0xd84   :  { %v2835_v11 = vadd.f32 %v5664_v48, %v2834_v35  ;;  %v5971_v48 = vld [vmem:[#allocation5 + $0x8] sm:$0xff]  }
 0xd85   :  { %v5465_v35 = vld [vmem:[#allocation19 + $0xa0] sm:$0xff] }
 0xd86   :  { %v2840_v25 = vmax.f32 %v2835_v11, 0.0  ;;  %3293 = vmatpush.bf16.msra.mxu1 %v5465_v35  ;;  %v5456_v11 = vld [vmem:[#allocation19 + $0x58] sm:$0xff] }
 0xd87   :  { %3205 = vmatpush.bf16.msra.mxu0 %v5456_v11 }
 0xd88   :  { %v2842_v4 = vpack.c.bf16 %v2840_v25, %v2839_v12  ;;  %v5464_v12 = vld [vmem:[#allocation19 + $0x98] sm:$0xff]  ;;  %v5455_v25 = vld [vmem:[#allocation19 + $0x50] sm:$0xff] }
 0xd8a   :  { %2924 = vmatmul.bf16.gmra.mxu2 %v2842_v4  ;;  %3294 = vmatpush.bf16.msra.mxu1 %v5464_v12  ;;  %v5463_v4 = vld [vmem:[#allocation19 + $0x90] sm:$0xff] }
 0xd8b   :  { %3206 = vmatpush.bf16.msra.mxu0 %v5455_v25 }
 0xd8e   :  { %3295 = vmatpush.bf16.msra.mxu1 %v5463_v4 }
 0xdd4   :  { %v2920_v15 = vpop.f32.mrf.mxu2 }
 0xdd5   :  { %v2921_v58 = vadd.f32 %v5665_v54, %v2920_v15 }
 0xdd7   :  { %v2930_v20 = vadd.f32 %v2921_v58, %v7292_v61  ;;  %v5454_v58 = vld [vmem:[#allocation19 + $0x48] sm:$0xff] }
 0xdd8   :  { %3207 = vmatpush.bf16.msra.mxu0 %v5454_v58 }
 0xdd9   :  { %v2934_v51 = vmul.f32 %v6875_v26, %v2930_v20  ;;  %v5462_v20 = vld [vmem:[#allocation19 + $0x88] sm:$0xff] }
 0xdda   :  { %3296 = vmatpush.bf16.msra.mxu1 %v5462_v20 }
 0xddb   :  { %2938 = vadd.xlane.f32.xlu2 %v2934_v51 }
 0xddc   :  { %v2922_v43 = vpop.f32.mrf.mxu2 }
 0xddd   :  { %v2923_v0 = vadd.f32 %v5665_v54, %v2922_v43  ;;  %v5453_v43 = vld [vmem:[#allocation19 + $0x40] sm:$0xff] }
 0xdde   :  { %3208 = vmatpush.bf16.msra.mxu0 %v5453_v43 }
 0xddf   :  { %v2931_v17 = vadd.f32 %v2923_v0, %v7290_v21  ;;  %v5461_v0 = vld [vmem:[#allocation19 + $0x80] sm:$0xff] }
 0xde0   :  { %3297 = vmatpush.bf16.msra.mxu1 %v5461_v0 }
 0xde1   :  { %v2935_v49 = vmul.f32 %v6875_v26, %v2931_v17 }
 0xde3   :  { %2940 = vadd.xlane.f32.xlu1 %v2935_v49 }
 0xe0d   :  { %v2925_v36 = vpop.f32.mrf.mxu2 }
 0xe0e   :  { %v2926_v40 = vadd.f32 %v5665_v54, %v2925_v36 }
 0xe10   :  { %v2932_v30 = vadd.f32 %v2926_v40, %v2746_v14  ;;  %v5446_v14 = vld [vmem:[#allocation19 + $0x8] sm:$0xff] }
 0xe11   :  { %3106 = vmatpush.bf16.msrb.mxu3 %v5446_v14 }
 0xe12   :  { %v2936_v18 = vmul.f32 %v6875_v26, %v2932_v30 }
 0xe14   :  { %2942 = vadd.xlane.f32.xlu0 %v2936_v18 }
 0xe15   :  { %v2927_v52 = vpop.f32.mrf.mxu2  ;;  %3107 = vmatpush.bf16.msrb.mxu3 %v5445_v9 }
 0xe16   :  { %v2928_v27 = vadd.f32 %v5665_v54, %v2927_v52  ;;  %v5973_v54 = vld [vmem:[#allocation5 + $0x18] sm:$0xff]  }
 0xe18   :  { %v2933_v24 = vadd.f32 %v2928_v27, %v2747_v16  ;;  %3108 = vmatmul.bf16.vlgmr.msrb.gmra.mxu3 %v5970_v31 }
 0xe1a   :  { %v2937_v61 = vmul.f32 %v6875_v26, %v2933_v24 }
 0xe1c   :  { %2944 = vadd.xlane.f32.xlu2 %v2937_v61 }
 0xe28   :  { %3113 = vmatmul.bf16.gmra.mxu3 %v5971_v48 }
 0xe38   :  { %3118 = vmatmul.bf16.gmra.mxu3 %v5972_v60 }
 0xe48   :  { %3123 = vmatmul.bf16.gmra.mxu3 %v5973_v54 }
 0xe4e   :  { %v2939_v2 = vpop.xlane.xlu2 %2938 }
 0xe4f   :  { %v2946_v7 = vmul.f32 0.03125, %v2939_v2 }
 0xe51   :  { %v2950_v29 = vsub.f32 %v2934_v51, %v2946_v7 }
 0xe53   :  { %v7311_v21 = vmul.f32 %v6875_v26, %v2950_v29  ;;  %v3022_v29 = vperm.slane %v7279_v44, 2 }
 0xe55   :  { %v2958_v33 = vmul.f32 %v7311_v21, %v7311_v21 }
 0xe56   :  { %v2941_v37 = vpop.xlane.xlu1 %2940 }
 0xe57   :  { %v2947_v34 = vmul.f32 0.03125, %v2941_v37  ;;  %2962 = vadd.xlane.f32.xlu1 %v2958_v33 }
 0xe59   :  { %v2951_v56 = vsub.f32 %v2935_v49, %v2947_v34  ;;  %v3027_v34 = vperm.slane %v7286_v50, 2 }
 0xe5b   :  { %v7316_v1 = vmul.f32 %v6875_v26, %v2951_v56 }
 0xe5d   :  { %v2959_v5 = vmul.f32 %v7316_v1, %v7316_v1 }
 0xe5f   :  { %2964 = vadd.xlane.f32.xlu0 %v2959_v5 }
 0xe87   :  { %v2943_v47 = vpop.xlane.xlu0 %2942 }
 0xe88   :  { %v2948_v55 = vmul.f32 0.03125, %v2943_v47 }
 0xe8a   :  { %v2952_v39 = vsub.f32 %v2936_v18, %v2948_v55 }
 0xe8c   :  { %v7321_v59 = vmul.f32 %v6875_v26, %v2952_v39 }
 0xe8e   :  { %v2960_v41 = vmul.f32 %v7321_v59, %v7321_v59 }
 0xe8f   :  { %v2945_v16 = vpop.xlane.xlu2 %2944 }
 0xe90   :  { %v2949_v28 = vmul.f32 0.03125, %v2945_v16  ;;  %2966 = vadd.xlane.f32.xlu2 %v2960_v41 }
 0xe92   :  { %v2953_v32 = vsub.f32 %v2937_v61, %v2949_v28 }
 0xe94   :  { %v7326_v3 = vmul.f32 %v6875_v26, %v2953_v32 }
 0xe96   :  { %v2961_v38 = vmul.f32 %v7326_v3, %v7326_v3 }
 0xe98   :  { %2968 = vadd.xlane.f32.xlu1 %v2961_v38 }
 0xe9b   :  { %v3109_v63 = vpop.f32.mrf.mxu3 }
 0xe9c   :  { %v3110_v25 = vadd.f32 %v7335_v42, %v3109_v63 }
 0xeca   :  { %v2963_v15 = vpop.xlane.xlu1 %2962 }
 0xecb   :  { %v2970_v51 = vmul.f32 0.03125, %v2963_v15  ;;  %v3313_v15 = vpack.c.bf16 %v3110_v25, %v3110_v25 }
 0xecd   :  { %v2974_v17 = vadd.f32 1e-05, %v2970_v51  ;;  %v3329_v43 = vunpack.c.l.b16 %v3313_v15 }
 0xecf   :  { %5814 = vrsqrt.f32 %v2974_v17  ;;  %vm2984_vm9 = vweird.f32 %v2974_v17 }
 0xed2   :  { %v2965_v49 = vpop.xlane.xlu0 %2964 }
 0xed3   :  { %v2971_v36 = vmul.f32 0.03125, %v2965_v49 }
 0xed5   :  { %v5815_v40 = vpop.eup %5814  ;;  %v2975_v30 = vadd.f32 1e-05, %v2971_v36 }
 0xed6   :  { %v2979_v18 = vmul.f32 %v5815_v40, %v2974_v17  ;;  %vm2985_vm8 = vweird.f32 %v5815_v40 }
 0xed7   :  { %5816 = vrsqrt.f32 %v2975_v30  ;;  %vm2986_vm10 = vmor %vm2984_vm9, %vm2985_vm8  ;;  %vm2994_vm12 = vweird.f32 %v2975_v30 }
 0xed8   :  { %v2980_v52 = vmul.f32 %v5815_v40, %v2979_v18 }
 0xeda   :  { %v2981_v27 = vmul.f32 0.5, %v2980_v52 }
 0xedc   :  { %v2982_v24 = vsub.f32 1.5, %v2981_v27 }
 0xedd   :  { %v5817_v61 = vpop.eup %5816 }
 0xede   :  { %v2983_v2 = vmul.f32 %v5815_v40, %v2982_v24  ;;  %v2989_v7 = vmul.f32 %v5817_v61, %v2975_v30  ;;  %vm2995_vm11 = vweird.f32 %v5817_v61 }
 0xedf   :  { %vm2996_vm13 = vmor %vm2994_vm12, %vm2995_vm11 }
 0xee0   :  { %v2987_v33 = vsel %vm2986_vm10, %v5815_v40, %v2983_v2  ;;  %v2990_v37 = vmul.f32 %v5817_v61, %v2989_v7 }
 0xee1   :  { %v3018_v56 = vmul.f32 %v2987_v33, %v7311_v21 }
 0xee2   :  { %v2991_v5 = vmul.f32 0.5, %v2990_v37 }
 0xee3   :  { %v3023_v10 = vmul.f32 %v3022_v29, %v3018_v56  ;;  %v5667_v56 = vld [vmem:[#allocation20 + $0x1] ss:$0 sm:$0xff] }
 0xee4   :  { %v2992_v22 = vsub.f32 1.5, %v2991_v5  ;;  %v5668_v5 = vld [vmem:[#allocation20 + $0x2] ss:$0 sm:$0xff] }
 0xee5   :  { %v3028_v46 = vadd.f32 %v3027_v34, %v3023_v10 }
 0xee6   :  { %v2993_v8 = vmul.f32 %v5817_v61, %v2992_v22 }
 0xee7   :  { %4772 = vst [vmem:[#allocation26] sm:$0xff] %v3028_v46 }
 0xee8   :  { %v2997_v23 = vsel %vm2996_vm13, %v5817_v61, %v2993_v8 }
 0xee9   :  { %v3019_v47 = vmul.f32 %v2997_v23, %v7316_v1 }
 0xeeb   :  { %v3024_v44 = vmul.f32 %v3022_v29, %v3019_v47 }
 0xeed   :  { %v3029_v55 = vadd.f32 %v3027_v34, %v3024_v44 }
 0xeef   :  { %v3129_v39 = vpack.c.bf16 %v3029_v55, %v3028_v46  ;;  %4773 = vst [vmem:[#allocation26 + $0x8] sm:$0xff] %v3029_v55 }
 0xef1   :  { %3209 = vmatmul.bf16.vlgmr.msra.gmra.mxu0 %v3129_v39  ;;  %3298 = vmatmul.bf16.vlgmr.msra.gmra.mxu1 %v3129_v39 }
 0xf03   :  { %v2967_v50 = vpop.xlane.xlu2 %2966 }
 0xf04   :  { %v2972_v21 = vmul.f32 0.03125, %v2967_v50 }
 0xf06   :  { %v2976_v62 = vadd.f32 1e-05, %v2972_v21 }
 0xf08   :  { %5818 = vrsqrt.f32 %v2976_v62  ;;  %vm3004_vm15 = vweird.f32 %v2976_v62 }
 0xf0b   :  { %v2969_v41 = vpop.xlane.xlu1 %2968 }
 0xf0c   :  { %v2973_v14 = vmul.f32 0.03125, %v2969_v41 }
 0xf0e   :  { %v5819_v16 = vpop.eup %5818  ;;  %v2977_v28 = vadd.f32 1e-05, %v2973_v14 }
 0xf0f   :  { %v2999_v32 = vmul.f32 %v5819_v16, %v2976_v62  ;;  %vm3005_vm14 = vweird.f32 %v5819_v16 }
 0xf10   :  { %5820 = vrsqrt.f32 %v2977_v28  ;;  %vm3006_vm2 = vmor %vm3004_vm15, %vm3005_vm14  ;;  %vm3014_vm7 = vweird.f32 %v2977_v28 }
 0xf11   :  { %v3000_v9 = vmul.f32 %v5819_v16, %v2999_v32 }
 0xf13   :  { %v3001_v38 = vmul.f32 0.5, %v3000_v9 }
 0xf15   :  { %v3002_v31 = vsub.f32 1.5, %v3001_v38 }
 0xf16   :  { %v5821_v1 = vpop.eup %5820 }
 0xf17   :  { %v3003_v48 = vmul.f32 %v5819_v16, %v3002_v31  ;;  %v3009_v13 = vmul.f32 %v5821_v1, %v2977_v28  ;;  %vm3015_vm4 = vweird.f32 %v5821_v1 }
 0xf18   :  { %vm3016_vm8 = vmor %vm3014_vm7, %vm3015_vm4 }
 0xf19   :  { %v3007_v53 = vsel %vm3006_vm2, %v5819_v16, %v3003_v48  ;;  %v3010_v57 = vmul.f32 %v5821_v1, %v3009_v13 }
 0xf1a   :  { %v3020_v19 = vmul.f32 %v3007_v53, %v7321_v59  ;;  %v3111_v59 = vpop.f32.mrf.mxu3 }
 0xf1b   :  { %v3011_v60 = vmul.f32 0.5, %v3010_v57  ;;  %v3112_v20 = vadd.f32 %v7335_v42, %v3111_v59 }
 0xf1c   :  { %v3025_v6 = vmul.f32 %v3022_v29, %v3020_v19 }
 0xf1d   :  { %v3012_v35 = vsub.f32 1.5, %v3011_v60  ;;  %v3314_v0 = vpack.c.bf16 %v3112_v20, %v3112_v20 }
 0xf1e   :  { %v3030_v11 = vadd.f32 %v3027_v34, %v3025_v6 }
 0xf1f   :  { %v3013_v12 = vmul.f32 %v5821_v1, %v3012_v35  ;;  %v3330_v49 = vunpack.c.l.b16 %v3314_v0 }
 0xf20   :  { %4774 = vst [vmem:[#allocation26 + $0x10] sm:$0xff] %v3030_v11 }
 0xf21   :  { %v3017_v4 = vsel %vm3016_vm8, %v5821_v1, %v3013_v12  ;;  %v7340_v36 = vpack.c.b16 %v3330_v49, %v3329_v43 }
 0xf22   :  { %v3021_v54 = vmul.f32 %v3017_v4, %v7326_v3  ;;  %v3114_v40 = vpop.f32.mrf.mxu3 }
 0xf23   :  { %3597 = vrot.lane.b32.xlu2 %v7340_v36, %s6433_s6  ;;  %v3115_v3 = vadd.f32 %v7335_v42, %v3114_v40 }
 0xf24   :  { %v3026_v58 = vmul.f32 %v3022_v29, %v3021_v54 }
 0xf25   :  { %v3315_v30 = vpack.c.bf16 %v3115_v3, %v3115_v3 }
 0xf26   :  { %v3031_v51 = vadd.f32 %v3027_v34, %v3026_v58 }
 0xf27   :  { %v3331_v27 = vunpack.c.l.b16 %v3315_v30 }
 0xf28   :  { %v3130_v17 = vpack.c.bf16 %v3031_v51, %v3030_v11  ;;  %4775 = vst [vmem:[#allocation26 + $0x18] sm:$0xff] %v3031_v51 }
 0xf29   :  { %4796 = dma.vmem_to_hbm [thread:$0]  %s4789_s12, 512, %s4791_s11, [#allocation4], %s6437_s28, %s6437_s28, %s6430_s1  }
 0xf2a   :  { %3214 = vmatmul.bf16.gmra.mxu0 %v3130_v17  ;;  %3303 = vmatmul.bf16.gmra.mxu1 %v3130_v17  ;;  %v3116_v18 = vpop.f32.mrf.mxu3 }
 0xf2b   :  { %v3117_v52 = vadd.f32 %v7335_v42, %v3116_v18 }
 0xf2d   :  { %v3316_v24 = vpack.c.bf16 %v3117_v52, %v3117_v52 }
 0xf2f   :  { %v3332_v61 = vunpack.c.l.b16 %v3316_v24 }
 0xf31   :  { %v7346_v2 = vpack.c.b16 %v3332_v61, %v3331_v27 }
 0xf32   :  { %v3119_v7 = vpop.f32.mrf.mxu3 }
 0xf33   :  { %3599 = vrot.lane.b32.xlu1 %v7346_v2, %s6433_s6  ;;  %v3120_v19 = vadd.f32 %v7335_v42, %v3119_v7 }
 0xf35   :  { %v3317_v6 = vpack.c.bf16 %v3120_v19, %v3120_v19 }
 0xf37   :  { %v3372_v35 = vunpack.c.l.b16 %v3317_v6 }
 0xf3a   :  { %v3121_v29 = vpop.f32.mrf.mxu3 }
 0xf3b   :  { %3845 = vrot.lane.b32.xlu1 %v7340_v36, %s6428_s30  ;;  %v3122_v60 = vadd.f32 %v7335_v42, %v3121_v29 }
 0xf3d   :  { %v3318_v63 = vpack.c.bf16 %v3122_v60, %v3122_v60 }
 0xf3f   :  { %v3373_v11 = vunpack.c.l.b16 %v3318_v63 }
 0xf41   :  { %v3376_v12 = vpack.c.b16 %v3373_v11, %v3372_v35 }
 0xf42   :  { %v3124_v33 = vpop.f32.mrf.mxu3 }
 0xf43   :  { %v3125_v8 = vadd.f32 %v7335_v42, %v3124_v33 }
 0xf45   :  { %v3319_v14 = vpack.c.bf16 %v3125_v8, %v3125_v8 }
 0xf47   :  { %v3374_v48 = vunpack.c.l.b16 %v3319_v14 }
 0xf4a   :  { %v3126_v46 = vpop.f32.mrf.mxu3 }
 0xf4b   :  { %v3127_v44 = vadd.f32 %v7335_v42, %v3126_v46 }
 0xf4d   :  { %v3320_v16 = vpack.c.bf16 %v3127_v44, %v3127_v44 }
 0xf4f   :  { %v3375_v13 = vunpack.c.l.b16 %v3320_v16 }
 0xf51   :  { %v3377_v57 = vpack.c.b16 %v3375_v13, %v3374_v48 }
 0xf6e   :  { %v3210_v37 = vpop.f32.mrf.mxu0  ;;  %v3299_v34 = vpop.f32.mrf.mxu1 }
 0xf6f   :  { %v3211_v10 = vadd.f32 %v5667_v56, %v3210_v37  ;;  %v3300_v22 = vadd.f32 %v5668_v5, %v3299_v34 }
 0xf71   :  { %v3321_v55 = vpack.c.bf16 %v3211_v10, %v3211_v10  ;;  %v3309_v39 = vpack.c.bf16 %v3300_v22, %v3300_v22 }
 0xf73   :  { %v3337_v28 = vunpack.c.l.b16 %v3321_v55  ;;  %v3527_v32 = vunpack.c.l.b16 %v3309_v39 }
 0xf76   :  { %v3212_v23 = vpop.f32.mrf.mxu0  ;;  %v3301_v47 = vpop.f32.mrf.mxu1 }
 0xf77   :  { %v3213_v50 = vadd.f32 %v5667_v56, %v3212_v23  ;;  %v3302_v21 = vadd.f32 %v5668_v5, %v3301_v47 }
 0xf79   :  { %v3322_v62 = vpack.c.bf16 %v3213_v50, %v3213_v50  ;;  %v3310_v41 = vpack.c.bf16 %v3302_v21, %v3302_v21 }
 0xf7b   :  { %v3338_v9 = vunpack.c.l.b16 %v3322_v62  ;;  %v3528_v38 = vunpack.c.l.b16 %v3310_v41 }
 0xf7d   :  { %v3339_v31 = vpack.c.b16 %v3338_v9, %v3337_v28  ;;  %v7354_v1 = vpack.c.b16 %v3528_v38, %v3527_v32  ;;  %v3598_v24 = vpop.permute.xlu2 %3597 }
 0xf7f   :  { %3544 = vmatpush.bf16.msrb.mxu1 %v7354_v1  ;;  %3849 = vrot.lane.b32.xlu2 %v3339_v31, %s6428_s30  ;;  %v3347_v53 = vsel %vm1812_vm5, %v3339_v31, 0 }
 0xf80   :  { %3601 = vrot.lane.b32.xlu0 %v3339_v31, %s6433_s6  ;;  %3356 = vmatpush.bf16.xpose.msrb.mxu2 %v3347_v53 }
 0xf87   :  { %3633 = vrot.lane.b32.xlu2 %v3377_v57, %s6433_s6  ;;  %5289 = vmatmul.msk.bf16.vlgmr.msrb.gmra.mxu2 %vm1812_vm5, %v7340_v36 }
 0xf8f   :  { %4097 = vrot.lane.b32.xlu2 %v3339_v31, %s6434_s3 }
 0xf97   :  { %3881 = vrot.lane.b32.xlu2 %v3377_v57, %s6428_s30  ;;  %5290 = vmatmul.msk.bf16.gmra.mxu2 %vm1812_vm5, %v7346_v2 }
 0xf9f   :  { %4127 = vrot.lane.b32.xlu2 %v3376_v12, %s6434_s3 }
 0xfa5   :  { %v3600_v10 = vpop.permute.xlu1 %3599 }
 0xfa7   :  { %3779 = vrot.lane.b32.xlu2 %v7354_v1, %s6433_s6  ;;  %v3215_v25 = vpop.f32.mrf.mxu0  ;;  %v3304_v4 = vpop.f32.mrf.mxu1 }
 0xfa8   :  { %v3216_v42 = vadd.f32 %v5667_v56, %v3215_v25  ;;  %v3305_v54 = vadd.f32 %v5668_v5, %v3304_v4 }
 0xfaa   :  { %v3323_v59 = vpack.c.bf16 %v3216_v42, %v3216_v42  ;;  %v3311_v20 = vpack.c.bf16 %v3305_v54, %v3305_v54 }
 0xfac   :  { %v3380_v49 = vunpack.c.l.b16 %v3323_v59  ;;  %v3568_v40 = vunpack.c.l.b16 %v3311_v20 }
 0xfad   :  { %v3846_v39 = vpop.permute.xlu1 %3845 }
 0xfaf   :  { %v3217_v15 = vpop.f32.mrf.mxu0  ;;  %v3306_v58 = vpop.f32.mrf.mxu1 }
 0xfb0   :  { %v3218_v51 = vadd.f32 %v5667_v56, %v3217_v15  ;;  %v3307_v43 = vadd.f32 %v5668_v5, %v3306_v58 }
 0xfb2   :  { %v3324_v0 = vpack.c.bf16 %v3218_v51, %v3218_v51  ;;  %v3312_v17 = vpack.c.bf16 %v3307_v43, %v3307_v43 }
 0xfb4   :  { %v3381_v3 = vunpack.c.l.b16 %v3324_v0  ;;  %v3569_v30 = vunpack.c.l.b16 %v3312_v17 }
 0xfb6   :  { %v3382_v18 = vpack.c.b16 %v3381_v3, %v3380_v49  ;;  %v7372_v52 = vpack.c.b16 %v3569_v30, %v3568_v40 }
 0xfb8   :  { %3585 = vmatpush.bf16.msra.mxu2 %v7372_v52  ;;  %3883 = vrot.lane.b32.xlu1 %v3382_v18, %s6428_s30  ;;  %v3390_v27 = vsel %vm1812_vm5, %v3382_v18, 0 }
 0xfb9   :  { %3635 = vrot.lane.b32.xlu0 %v3382_v18, %s6433_s6  ;;  %3399 = vmatpush.bf16.xpose.msrb.mxu0 %v3390_v27 }
 0xfc0   :  { %4093 = vrot.lane.b32.xlu1 %v7340_v36, %s6434_s3  ;;  %5291 = vmatmul.msk.bf16.vlgmr.msrb.gmra.mxu0 %vm1812_vm5, %v3376_v12 }
 0xfc1   :  { %3631 = vrot.lane.b32.xlu0 %v3376_v12, %s6433_s6 }
 0xfc8   :  { %4131 = vrot.lane.b32.xlu1 %v3382_v18, %s6434_s3 }
 0xfc9   :  { %3847 = vrot.lane.b32.xlu0 %v7346_v2, %s6428_s30 }
 0xfd0   :  { %3817 = vrot.lane.b32.xlu1 %v7372_v52, %s6433_s6  ;;  %5292 = vmatmul.msk.bf16.gmra.mxu0 %vm1812_vm5, %v3377_v57 }
 0xfd1   :  { %3879 = vrot.lane.b32.xlu0 %v3376_v12, %s6428_s30 }
 0xfd9   :  { %4095 = vrot.lane.b32.xlu0 %v7346_v2, %s6434_s3  ;;  %v3850_v36 = vpop.permute.xlu2 %3849 }
 0xfda   :  { %v3858_v34 = vsel %vm1812_vm5, %v3850_v36, 0 }
 0xfe1   :  { %v3634_v61 = vpop.permute.xlu2 %3633  ;;  %4129 = vrot.lane.b32.xlu0 %v3377_v57, %s6434_s3 }
 0xfe9   :  { %v4098_v7 = vpop.permute.xlu2 %4097 }
 0xfea   :  { %v4106_v5 = vsel %vm1812_vm5, %v4098_v7, 0 }
 0xff1   :  { %v7392_v29 = vpop.permute.xlu2 %3881 }
 0xff2   :  { %v3602_v33 = vpop.permute.xlu0 %3601 }
 0xff3   :  { %v3610_v37 = vsel %vm1812_vm5, %v3602_v33, 0 }
 0xff4   :  { %3619 = vmatpush.bf16.xpose.msra.mxu3 %v3610_v37 }
 0xff9   :  { %v7396_v56 = vpop.permute.xlu2 %4127 }
 0xffb   :  { %5297 = vmatmul.msk.bf16.vlgmr.msra.gmra.mxu3 %vm1812_vm5, %v3598_v24 }
 0xffc   :  { %3867 = vmatpush.bf16.xpose.msrb.mxu3 %v3858_v34 }
0x1001   :  { %v3780_v2 = vpop.permute.xlu2 %3779 }
0x1002   :  { %3795 = vmatpush.bf16.msra.mxu1 %v3780_v2 }
0x1004   :  { %4115 = vmatpush.bf16.xpose.msra.mxu3 %v4106_v5 }
0x100a   :  { %v3358_v22 = vpop.f32.mrf.mxu2 }
0x100b   :  { %v7400_v46 = vmul.f32 0.5, %v3358_v22  ;;  %5298 = vmatmul.msk.bf16.gmra.mxu3 %vm1812_vm5, %v3600_v10 }
0x100d   :  { %v3419_v8 = vsel %vm674_vm1, %v7400_v46, -inf }
0x100e   :  { %3420 = vmax.xlane.f32.xlu1 %v3419_v8 }
0x1012   :  { %v3360_v23 = vpop.f32.mrf.mxu2 }
0x1013   :  { %v7405_v47 = vmul.f32 0.5, %v3360_v23 }
0x1015   :  { %v3422_v44 = vsel %vm674_vm1, %v7405_v47, -inf }
0x1016   :  { %3423 = vmax.xlane.f32.xlu2 %v3422_v44 }
0x101a   :  { %v3363_v55 = vpop.f32.mrf.mxu2 }
0x101b   :  { %v7409_v50 = vmul.f32 0.5, %v3363_v55  ;;  %5305 = vmatmul.msk.bf16.vlgmr.msrb.gmra.mxu3 %vm1812_vm5, %v3846_v39 }
0x101d   :  { %v3425_v21 = vsel %vm674_vm1, %v7409_v50, -inf }
0x101e   :  { %3426 = vmax.xlane.f32.xlu0 %v3425_v21 }
0x1022   :  { %v3365_v62 = vpop.f32.mrf.mxu2 }
0x1023   :  { %v7414_v41 = vmul.f32 0.5, %v3365_v62 }
0x1025   :  { %v3428_v14 = vsel %vm674_vm1, %v7414_v41, -inf }
0x1026   :  { %3429 = vmax.xlane.f32.xlu1 %v3428_v14 }
0x102a   :  { %v3884_v16 = vpop.permute.xlu1 %3883 }
0x102b   :  { %v3636_v28 = vpop.permute.xlu0 %3635  ;;  %v3892_v32 = vsel %vm1812_vm5, %v3884_v16, 0 }
0x102c   :  { %v3644_v9 = vsel %vm1812_vm5, %v3636_v28, 0 }
0x102d   :  { %3653 = vmatpush.bf16.xpose.msra.mxu0 %v3644_v9 }
0x1032   :  { %v4094_v38 = vpop.permute.xlu1 %4093 }
0x1033   :  { %v3632_v31 = vpop.permute.xlu0 %3631 }
0x1034   :  { %5299 = vmatmul.msk.bf16.vlgmr.msra.gmra.mxu0 %vm1812_vm5, %v3632_v31 }
0x1035   :  { %3901 = vmatpush.bf16.xpose.msrb.mxu0 %v3892_v32 }
0x103a   :  { %v4132_v48 = vpop.permute.xlu1 %4131 }
0x103b   :  { %v3848_v13 = vpop.permute.xlu0 %3847  ;;  %v4140_v53 = vsel %vm1812_vm5, %v4132_v48, 0 }
0x103c   :  { %5306 = vmatmul.msk.bf16.gmra.mxu3 %vm1812_vm5, %v3848_v13 }
0x103d   :  { %4149 = vmatpush.bf16.xpose.msra.mxu0 %v4140_v53  ;;  %v3401_v57 = vpop.f32.mrf.mxu0 }
0x103e   :  { %v7423_v19 = vmul.f32 0.5, %v3401_v57 }
0x1040   :  { %v3431_v60 = vsel %vm674_vm1, %v7423_v19, -inf }
0x1041   :  { %3432 = vmax.xlane.f32.xlu2 %v3431_v60 }
0x1042   :  { %v3818_v6 = vpop.permute.xlu1 %3817 }
0x1043   :  { %3833 = vmatpush.bf16.msrb.mxu2 %v3818_v6  ;;  %v3880_v42 = vpop.permute.xlu0 %3879 }
0x1044   :  { %5300 = vmatmul.msk.bf16.gmra.mxu0 %vm1812_vm5, %v3634_v61 }
0x1045   :  { %v3403_v63 = vpop.f32.mrf.mxu0 }
0x1046   :  { %v7428_v35 = vmul.f32 0.5, %v3403_v63 }
0x1048   :  { %v3434_v11 = vsel %vm674_vm1, %v7428_v35, -inf }
0x1049   :  { %3435 = vmax.xlane.f32.xlu0 %v3434_v11 }
0x104b   :  { %v4096_v59 = vpop.permute.xlu0 %4095 }
0x104c   :  { %5313 = vmatmul.msk.bf16.vlgmr.msra.gmra.mxu3 %vm1812_vm5, %v4094_v38 }
0x104d   :  { %v3406_v12 = vpop.f32.mrf.mxu0 }
0x104e   :  { %v7433_v25 = vmul.f32 0.5, %v3406_v12 }
0x1050   :  { %v3437_v4 = vsel %vm674_vm1, %v7433_v25, -inf }
0x1051   :  { %3438 = vmax.xlane.f32.xlu0 %v3437_v4 }
0x1053   :  { %v4130_v49 = vpop.permute.xlu0 %4129 }
0x1054   :  { %5307 = vmatmul.msk.bf16.vlgmr.msrb.gmra.mxu0 %vm1812_vm5, %v3880_v42 }
0x1055   :  { %v3408_v54 = vpop.f32.mrf.mxu0 }
0x1056   :  { %v7438_v15 = vmul.f32 0.5, %v3408_v54 }
0x1058   :  { %v3440_v58 = vsel %vm674_vm1, %v7438_v15, -inf }
0x1059   :  { %3441 = vmax.xlane.f32.xlu1 %v3440_v58 }
0x105c   :  { %5314 = vmatmul.msk.bf16.gmra.mxu3 %vm1812_vm5, %v4096_v59 }
0x1064   :  { %5308 = vmatmul.msk.bf16.gmra.mxu0 %vm1812_vm5, %v7392_v29 }
0x1074   :  { %5315 = vmatmul.msk.bf16.vlgmr.msra.gmra.mxu0 %vm1812_vm5, %v7396_v56 }
0x107e   :  { %v3621_v20 = vpop.f32.mrf.mxu3 }
0x107f   :  { %v7447_v51 = vmul.f32 0.5, %v3621_v20 }
0x1081   :  { %v3673_v43 = vsel %vm674_vm1, %v7447_v51, -inf  ;;  %v3421_v0 = vpop.xlane.xlu1 %3420 }
0x1082   :  { %3674 = vmax.xlane.f32.xlu1 %v3673_v43  ;;  %v3443_v17 = vsub.f32 %v7400_v46, %v3421_v0 }
0x1084   :  { %v3451_v40 = vmul.f32 1.442695, %v3443_v17  ;;  %5316 = vmatmul.msk.bf16.gmra.mxu0 %vm1812_vm5, %v4130_v49 }
0x1086   :  { %5822 = vpow2.f32 %v3451_v40  ;;  %v3623_v3 = vpop.f32.mrf.mxu3 }
0x1087   :  { %v7453_v30 = vmul.f32 0.5, %v3623_v3 }
0x1089   :  { %v3424_v18 = vpop.xlane.xlu2 %3423  ;;  %v3676_v27 = vsel %vm674_vm1, %v7453_v30, -inf }
0x108a   :  { %v3444_v24 = vsub.f32 %v7405_v47, %v3424_v18  ;;  %3677 = vmax.xlane.f32.xlu2 %v3676_v27 }
0x108c   :  { %v7458_v36 = vpop.eup %5822  ;;  %v3453_v61 = vmul.f32 1.442695, %v3444_v24 }
0x108d   :  { %v3467_v7 = vsel %vm674_vm1, %v7458_v36, 0.0 }
0x108e   :  { %v3626_v29 = vpop.f32.mrf.mxu3  ;;  %3468 = vadd.xlane.f32.xlu1 %v3467_v7  ;;  %5824 = vpow2.f32 %v3453_v61 }
0x108f   :  { %v7462_v33 = vmul.f32 0.5, %v3626_v29 }
0x1091   :  { %v3679_v37 = vsel %vm674_vm1, %v7462_v33, -inf  ;;  %v3427_v2 = vpop.xlane.xlu0 %3426 }
0x1092   :  { %3680 = vmax.xlane.f32.xlu2 %v3679_v37  ;;  %v3445_v46 = vsub.f32 %v7409_v50, %v3427_v2 }
0x1094   :  { %v7466_v34 = vpop.eup %5824  ;;  %v3455_v44 = vmul.f32 1.442695, %v3445_v46 }
0x1095   :  { %v3470_v56 = vsel %vm674_vm1, %v7466_v34, 0.0 }
0x1096   :  { %v3628_v5 = vpop.f32.mrf.mxu3 }
0x1097   :  { %v7476_v39 = vmul.f32 0.5, %v3628_v5 }
0x1099   :  { %v3430_v16 = vpop.xlane.xlu1 %3429  ;;  %v3682_v50 = vsel %vm674_vm1, %v7476_v39, -inf }
0x109a   :  { %3471 = vadd.xlane.f32.xlu2 %v3470_v56  ;;  %v3446_v31 = vsub.f32 %v7414_v41, %v3430_v16 }
0x109c   :  { %v3457_v6 = vmul.f32 1.442695, %v3446_v31 }
0x109e   :  { %v3869_v21 = vpop.f32.mrf.mxu3 }
0x109f   :  { %v7494_v63 = vmul.f32 0.5, %v3869_v21 }
0x10a1   :  { %v3921_v42 = vsel %vm674_vm1, %v7494_v63, -inf }
0x10b1   :  { %v3655_v10 = vpop.f32.mrf.mxu0 }
0x10b2   :  { %v7470_v22 = vmul.f32 0.5, %v3655_v10 }
0x10b4   :  { %v3433_v8 = vpop.xlane.xlu2 %3432  ;;  %v3685_v23 = vsel %vm674_vm1, %v7470_v22, -inf }
0x10b5   :  { %v3447_v47 = vsub.f32 %v7423_v19, %v3433_v8  ;;  %3686 = vmax.xlane.f32.xlu0 %v3685_v23  ;;  %v3871_v19 = vpop.f32.mrf.mxu3 }
0x10b6   :  { %v7514_v40 = vmul.f32 0.5, %v3871_v19 }
0x10b7   :  { %v3459_v55 = vmul.f32 1.442695, %v3447_v47 }
0x10b8   :  { %v3924_v29 = vsel %vm674_vm1, %v7514_v40, -inf }
0x10b9   :  { %5826 = vpow2.f32 %v3459_v55  ;;  %v3657_v62 = vpop.f32.mrf.mxu0 }
0x10ba   :  { %v7478_v14 = vmul.f32 0.5, %v3657_v62  ;;  %5828 = vpow2.f32 %v3455_v44 }
0x10bc   :  { %v3436_v28 = vpop.xlane.xlu0 %3435  ;;  %v3688_v32 = vsel %vm674_vm1, %v7478_v14, -inf }
0x10bd   :  { %v3448_v9 = vsub.f32 %v7428_v35, %v3436_v28  ;;  %3683 = vmax.xlane.f32.xlu0 %v3682_v50  ;;  %3689 = vmax.xlane.f32.xlu1 %v3688_v32 }
0x10bf   :  { %v7485_v38 = vpop.eup %5826  ;;  %v3461_v48 = vmul.f32 1.442695, %v3448_v9  ;;  %v3874_v59 = vpop.f32.mrf.mxu3 }
0x10c0   :  { %v3479_v13 = vsel %vm674_vm1, %v7485_v38, 0.0  ;;  %v7490_v53 = vpop.eup %5828 }
0x10c1   :  { %v3660_v57 = vpop.f32.mrf.mxu0  ;;  %3480 = vadd.xlane.f32.xlu2 %v3479_v13  ;;  %5830 = vpow2.f32 %v3461_v48  ;;  %v3473_v41 = vsel %vm674_vm1, %v7490_v53, 0.0 }
0x10c2   :  { %v7492_v60 = vmul.f32 0.5, %v3660_v57  ;;  %5832 = vpow2.f32 %v3457_v6 }
0x10c4   :  { %v3439_v35 = vpop.xlane.xlu0 %3438  ;;  %v3691_v11 = vsel %vm674_vm1, %v7492_v60, -inf }
0x10c5   :  { %v3449_v12 = vsub.f32 %v7433_v25, %v3439_v35  ;;  %3692 = vmax.xlane.f32.xlu0 %v3691_v11  ;;  %3474 = vadd.xlane.f32.xlu1 %v3473_v41 }
0x10c7   :  { %v3463_v4 = vmul.f32 1.442695, %v3449_v12  ;;  %v7503_v54 = vpop.eup %5830  ;;  %v3876_v61 = vpop.f32.mrf.mxu3 }
0x10c8   :  { %v3482_v43 = vsel %vm674_vm1, %v7503_v54, 0.0  ;;  %v7511_v17 = vpop.eup %5832  ;;  %v7542_v21 = vmul.f32 0.5, %v3876_v61 }
0x10c9   :  { %v3662_v58 = vpop.f32.mrf.mxu0  ;;  %3922 = vmax.xlane.f32.xlu2 %v3921_v42  ;;  %5834 = vpow2.f32 %v3463_v4  ;;  %v3476_v3 = vsel %vm674_vm1, %v7511_v17, 0.0 }
0x10ca   :  { %v7505_v20 = vmul.f32 0.5, %v3662_v58  ;;  %v3930_v50 = vsel %vm674_vm1, %v7542_v21, -inf }
0x10cc   :  { %v3694_v25 = vsel %vm674_vm1, %v7505_v20, -inf  ;;  %v3442_v0 = vpop.xlane.xlu1 %3441 }
0x10cd   :  { %3483 = vadd.xlane.f32.xlu0 %v3482_v43  ;;  %3695 = vmax.xlane.f32.xlu1 %v3694_v25  ;;  %v3450_v49 = vsub.f32 %v7438_v15, %v3442_v0  ;;  %v7526_v15 = vmul.f32 0.5, %v3874_v59 }
0x10cf   :  { %v7518_v18 = vpop.eup %5834  ;;  %v3465_v24 = vmul.f32 1.442695, %v3450_v49  ;;  %v3927_v46 = vsel %vm674_vm1, %v7526_v15, -inf  ;;  %v4117_v23 = vpop.f32.mrf.mxu3 }
0x10d0   :  { %v3485_v37 = vsel %vm674_vm1, %v7518_v18, 0.0  ;;  %v7546_v16 = vmul.f32 0.5, %v4117_v23 }
0x10d1   :  { %v3903_v27 = vpop.f32.mrf.mxu0  ;;  %3477 = vadd.xlane.f32.xlu2 %v3476_v3  ;;  %5836 = vpow2.f32 %v3465_v24 }
0x10d2   :  { %v7520_v7 = vmul.f32 0.5, %v3903_v27  ;;  %v4169_v31 = vsel %vm674_vm1, %v7546_v16, -inf }
0x10d4   :  { %v3933_v56 = vsel %vm674_vm1, %v7520_v7, -inf }
0x10d5   :  { %3925 = vmax.xlane.f32.xlu0 %v3924_v29  ;;  %3486 = vadd.xlane.f32.xlu1 %v3485_v37 }
0x10d7   :  { %v7536_v8 = vpop.eup %5836  ;;  %v4119_v28 = vpop.f32.mrf.mxu3 }
0x10d8   :  { %v3488_v47 = vsel %vm674_vm1, %v7536_v8, 0.0  ;;  %v7556_v13 = vmul.f32 0.5, %v4119_v28 }
0x10d9   :  { %v3905_v5 = vpop.f32.mrf.mxu0  ;;  %3934 = vmax.xlane.f32.xlu2 %v3933_v56 }
0x10da   :  { %v7530_v2 = vmul.f32 0.5, %v3905_v5  ;;  %v4172_v6 = vsel %vm674_vm1, %v7556_v13, -inf }
0x10dc   :  { %v3936_v10 = vsel %vm674_vm1, %v7530_v2, -inf }
0x10dd   :  { %3937 = vmax.xlane.f32.xlu0 %v3936_v10  ;;  %3928 = vmax.xlane.f32.xlu1 %v3927_v46 }
0x10df   :  { %v4122_v19 = vpop.f32.mrf.mxu3 }
0x10e1   :  { %v3908_v44 = vpop.f32.mrf.mxu0  ;;  %3489 = vadd.xlane.f32.xlu2 %v3488_v47 }
0x10e2   :  { %v7540_v55 = vmul.f32 0.5, %v3908_v44 }
0x10e4   :  { %v3939_v62 = vsel %vm674_vm1, %v7540_v55, -inf }
0x10e5   :  { %3940 = vmax.xlane.f32.xlu0 %v3939_v62 }
0x10e7   :  { %v4124_v12 = vpop.f32.mrf.mxu3 }
0x10e8   :  { %v7569_v25 = vmul.f32 0.5, %v4124_v12 }
0x10e9   :  { %v3910_v32 = vpop.f32.mrf.mxu0  ;;  %3931 = vmax.xlane.f32.xlu2 %v3930_v50 }
0x10ea   :  { %v7550_v9 = vmul.f32 0.5, %v3910_v32  ;;  %v4178_v3 = vsel %vm674_vm1, %v7569_v25, -inf }
0x10ec   :  { %v3942_v48 = vsel %vm674_vm1, %v7550_v9, -inf }
0x10ed   :  { %4170 = vmax.xlane.f32.xlu0 %v4169_v31  ;;  %3943 = vmax.xlane.f32.xlu1 %v3942_v48 }
0x10f1   :  { %v4151_v57 = vpop.f32.mrf.mxu0 }
0x10f2   :  { %v7560_v35 = vmul.f32 0.5, %v4151_v57 }
0x10f4   :  { %v4181_v42 = vsel %vm674_vm1, %v7560_v35, -inf }
0x10f5   :  { %4173 = vmax.xlane.f32.xlu1 %v4172_v6  ;;  %v3675_v58 = vpop.xlane.xlu1 %3674 }
0x10f6   :  { %v3697_v37 = vsub.f32 %v7447_v51, %v3675_v58 }
0x10f8   :  { %v3705_v23 = vmul.f32 1.442695, %v3697_v37 }
0x10f9   :  { %v4153_v11 = vpop.f32.mrf.mxu0 }
0x10fa   :  { %v7562_v41 = vmul.f32 0.5, %v4153_v11 }
0x10fc   :  { %v4184_v4 = vsel %vm674_vm1, %v7562_v41, -inf }
0x10fd   :  { %v3678_v59 = vpop.xlane.xlu2 %3677  ;;  %4185 = vmax.xlane.f32.xlu0 %v4184_v4  ;;  %4182 = vmax.xlane.f32.xlu1 %v4181_v42 }
0x10fe   :  { %v3698_v43 = vsub.f32 %v7453_v30, %v3678_v59 }
0x1100   :  { %v3707_v0 = vmul.f32 1.442695, %v3698_v43 }
0x1101   :  { %4027 = vrot.lane.b32.xlu2 %v7354_v1, %s6428_s30  ;;  %v4156_v49 = vpop.f32.mrf.mxu0  ;;  %v3469_v27 = vpop.xlane.xlu1 %3468 }
0x1102   :  { %5838 = vpow2.f32 %v3707_v0  ;;  %v7577_v29 = vmul.f32 0.5, %v4156_v49 }
0x1103   :  { %5840 = vrcp.f32 %v3469_v27 }
0x1104   :  { %v4187_v56 = vsel %vm674_vm1, %v7577_v29, -inf }
0x1105   :  { %v3681_v24 = vpop.xlane.xlu2 %3680  ;;  %4179 = vmax.xlane.f32.xlu0 %v4178_v3 }
0x1106   :  { %v3699_v42 = vsub.f32 %v7462_v33, %v3681_v24 }
0x1108   :  { %v7575_v61 = vpop.eup %5838  ;;  %v3709_v59 = vmul.f32 1.442695, %v3699_v42 }
0x1109   :  { %v3724_v30 = vsel %vm674_vm1, %v7575_v61, 0.0  ;;  %v4158_v5 = vpop.f32.mrf.mxu0  ;;  %v5841_v46 = vpop.eup %5840 }
0x110a   :  { %3725 = vadd.xlane.f32.xlu1 %v3724_v30  ;;  %v7584_v47 = vmul.f32 0.5, %v4158_v5  ;;  %v3499_v44 = vmul.f32 %v5841_v46, %v7458_v36  ;;  %v7595_v36 = vmul.f32 0.5, %v4122_v19 }
0x110c   :  { %v4190_v28 = vsel %vm674_vm1, %v7584_v47, -inf  ;;  %v3507_v50 = vpack.c.bf16 %v3499_v44, %v3499_v44 }
0x110d   :  { %v3472_v10 = vpop.xlane.xlu2 %3471  ;;  %4188 = vmax.xlane.f32.xlu0 %v4187_v56 }
0x110e   :  { %5842 = vrcp.f32 %v3472_v10  ;;  %v3519_v48 = vunpack.c.l.b16 %v3507_v50 }
0x110f   :  { %5844 = vpow2.f32 %v3705_v23 }
0x1114   :  { %v5843_v62 = vpop.eup %5842 }
0x1115   :  { %v3500_v51 = vmul.f32 %v5843_v62, %v7466_v34  ;;  %4191 = vmax.xlane.f32.xlu0 %v4190_v28  ;;  %v7590_v31 = vpop.eup %5844  ;;  %v4175_v34 = vsel %vm674_vm1, %v7595_v36, -inf }
0x1116   :  { %v3721_v11 = vsel %vm674_vm1, %v7590_v31, 0.0 }
0x1117   :  { %v3508_v32 = vpack.c.bf16 %v3500_v51, %v3500_v51 }
0x1119   :  { %v3520_v57 = vunpack.c.l.b16 %v3508_v32 }
0x111b   :  { %v3523_v6 = vpack.c.b16 %v3520_v57, %v3519_v48 }
0x111d   :  { %3722 = vadd.xlane.f32.xlu0 %v3721_v11  ;;  %5293 = vmatmul.msk.bf16.vlgmr.msrb.gmra.mxu1 %vm674_vm1, %v3523_v6 }
0x1128   :  { %v3687_v12 = vpop.xlane.xlu0 %3686 }
0x1129   :  { %v3701_v4 = vsub.f32 %v7470_v22, %v3687_v12 }
0x112a   :  { %4176 = vmax.xlane.f32.xlu2 %v4175_v34 }
0x112b   :  { %v3713_v58 = vmul.f32 1.442695, %v3701_v4 }
0x112d   :  { %5846 = vpow2.f32 %v3713_v58 }
0x112e   :  { %5848 = vpow2.f32 %v3709_v59 }
0x1130   :  { %v3684_v43 = vpop.xlane.xlu0 %3683  ;;  %v3690_v0 = vpop.xlane.xlu1 %3689 }
0x1131   :  { %v3702_v49 = vsub.f32 %v7478_v14, %v3690_v0  ;;  %v3700_v27 = vsub.f32 %v7476_v39, %v3684_v43 }
0x1133   :  { %v7602_v3 = vpop.eup %5846  ;;  %v3715_v19 = vmul.f32 1.442695, %v3702_v49  ;;  %v3711_v33 = vmul.f32 1.442695, %v3700_v27 }
0x1134   :  { %v3481_v22 = vpop.xlane.xlu2 %3480  ;;  %v3733_v30 = vsel %vm674_vm1, %v7602_v3, 0.0  ;;  %v7607_v56 = vpop.eup %5848 }
0x1135   :  { %3734 = vadd.xlane.f32.xlu0 %v3733_v30  ;;  %5850 = vpow2.f32 %v3715_v19  ;;  %v3727_v39 = vsel %vm674_vm1, %v7607_v56, 0.0 }
0x1136   :  { %5852 = vrcp.f32 %v3481_v22 }
0x1137   :  { %5854 = vpow2.f32 %v3711_v33 }
0x1138   :  { %v3693_v24 = vpop.xlane.xlu0 %3692  ;;  %v3475_v37 = vpop.xlane.xlu1 %3474 }
0x1139   :  { %v3703_v5 = vsub.f32 %v7492_v60, %v3693_v24 }
0x113b   :  { %v3717_v14 = vmul.f32 1.442695, %v3703_v5  ;;  %v7610_v10 = vpop.eup %5850 }
0x113c   :  { %v3923_v46 = vpop.xlane.xlu2 %3922  ;;  %v3736_v44 = vsel %vm674_vm1, %v7610_v10, 0.0  ;;  %v5853_v50 = vpop.eup %5852 }
0x113d   :  { %5856 = vpow2.f32 %v3717_v14  ;;  %v3945_v23 = vsub.f32 %v7494_v63, %v3923_v46  ;;  %3728 = vadd.xlane.f32.xlu0 %v3727_v39  ;;  %3737 = vadd.xlane.f32.xlu1 %v3736_v44  ;;  %v7618_v32 = vpop.eup %5854  ;;  %v3503_v63 = vmul.f32 %v5853_v50, %v7485_v38 }
0x113e   :  { %5858 = vrcp.f32 %v3475_v37  ;;  %v3730_v4 = vsel %vm674_vm1, %v7618_v32, 0.0 }
0x113f   :  { %v3953_v62 = vmul.f32 1.442695, %v3945_v23  ;;  %v3511_v34 = vpack.c.bf16 %v3503_v63, %v3503_v63 }
0x1140   :  { %v3484_v60 = vpop.xlane.xlu0 %3483  ;;  %v3696_v28 = vpop.xlane.xlu1 %3695 }
0x1141   :  { %v3704_v51 = vsub.f32 %v7505_v20, %v3696_v28  ;;  %5860 = vrcp.f32 %v3484_v60  ;;  %v3560_v30 = vunpack.c.l.b16 %v3511_v34 }
0x1142   :  { %5862 = vpow2.f32 %v3953_v62 }
0x1143   :  { %v7620_v48 = vpop.eup %5856  ;;  %v3719_v57 = vmul.f32 1.442695, %v3704_v51 }
0x1144   :  { %v3478_v6 = vpop.xlane.xlu2 %3477  ;;  %v3739_v11 = vsel %vm674_vm1, %v7620_v48, 0.0  ;;  %v5859_v12 = vpop.eup %5858 }
0x1145   :  { %5864 = vpow2.f32 %v3719_v57  ;;  %3740 = vadd.xlane.f32.xlu0 %v3739_v11  ;;  %3731 = vadd.xlane.f32.xlu1 %v3730_v4  ;;  %v3501_v42 = vmul.f32 %v5859_v12, %v7490_v53 }
0x1146   :  { %5866 = vrcp.f32 %v3478_v6 }
0x1147   :  { %v5861_v20 = vpop.eup %5860  ;;  %v3509_v33 = vpack.c.bf16 %v3501_v42, %v3501_v42 }
0x1148   :  { %v3926_v58 = vpop.xlane.xlu0 %3925  ;;  %v3487_v59 = vpop.xlane.xlu1 %3486  ;;  %v3504_v38 = vmul.f32 %v5861_v20, %v7503_v54 }
0x1149   :  { %v7628_v43 = vpop.eup %5862  ;;  %v3946_v0 = vsub.f32 %v7514_v40, %v3926_v58  ;;  %v3521_v62 = vunpack.c.l.b16 %v3509_v33 }
0x114a   :  { %v3512_v19 = vpack.c.bf16 %v3504_v38, %v3504_v38  ;;  %v3969_v37 = vsel %vm674_vm1, %v7628_v43, 0.0 }
0x114b   :  { %v7632_v49 = vpop.eup %5864  ;;  %v3955_v27 = vmul.f32 1.442695, %v3946_v0 }
0x114c   :  { %v5867_v22 = vpop.eup %5866  ;;  %v3935_v24 = vpop.xlane.xlu2 %3934  ;;  %v3742_v53 = vsel %vm674_vm1, %v7632_v49, 0.0  ;;  %v3561_v5 = vunpack.c.l.b16 %v3512_v19 }
0x114d   :  { %v3502_v14 = vmul.f32 %v5867_v22, %v7511_v17  ;;  %5868 = vpow2.f32 %v3955_v27  ;;  %v3949_v54 = vsub.f32 %v7520_v7, %v3935_v24  ;;  %3743 = vadd.xlane.f32.xlu0 %v3742_v53  ;;  %3970 = vadd.xlane.f32.xlu1 %v3969_v37 }
0x114e   :  { %v3564_v40 = vpack.c.b16 %v3561_v5, %v3560_v30  ;;  %5870 = vrcp.f32 %v3487_v59 }
0x114f   :  { %v3510_v46 = vpack.c.bf16 %v3502_v14, %v3502_v14  ;;  %v3961_v39 = vmul.f32 1.442695, %v3949_v54 }
0x1150   :  { %v3938_v23 = vpop.xlane.xlu0 %3937  ;;  %v3929_v44 = vpop.xlane.xlu1 %3928  ;;  %5295 = vmatmul.msk.bf16.vlgmr.msra.gmra.mxu2 %vm674_vm1, %v3564_v40 }
0x1151   :  { %v3522_v60 = vunpack.c.l.b16 %v3510_v46  ;;  %5872 = vpow2.f32 %v3961_v39  ;;  %v3947_v28 = vsub.f32 %v7526_v15, %v3929_v44  ;;  %v3950_v7 = vsub.f32 %v7530_v2, %v3938_v23 }
0x1153   :  { %v7642_v50 = vpop.eup %5868  ;;  %v3957_v17 = vmul.f32 1.442695, %v3947_v28  ;;  %v3524_v51 = vpack.c.b16 %v3522_v60, %v3521_v62  ;;  %v3963_v12 = vmul.f32 1.442695, %v3950_v7 }
0x1154   :  { %v3490_v57 = vpop.xlane.xlu2 %3489  ;;  %v3972_v63 = vsel %vm674_vm1, %v7642_v50, 0.0  ;;  %v5871_v6 = vpop.eup %5870 }
0x1155   :  { %5294 = vmatmul.msk.bf16.gmra.mxu1 %vm674_vm1, %v3524_v51  ;;  %3973 = vadd.xlane.f32.xlu0 %v3972_v63  ;;  %5874 = vpow2.f32 %v3957_v17  ;;  %v3505_v2 = vmul.f32 %v5871_v6, %v7518_v18 }
0x1156   :  { %5876 = vrcp.f32 %v3490_v57 }
0x1157   :  { %v7648_v11 = vpop.eup %5872  ;;  %5878 = vpow2.f32 %v3963_v12  ;;  %v3513_v0 = vpack.c.bf16 %v3505_v2, %v3505_v2 }
0x1158   :  { %v3941_v15 = vpop.xlane.xlu0 %3940  ;;  %v3981_v4 = vsel %vm674_vm1, %v7648_v11, 0.0 }
0x1159   :  { %3982 = vadd.xlane.f32.xlu2 %v3981_v4  ;;  %v3951_v34 = vsub.f32 %v7540_v55, %v3941_v15  ;;  %v3562_v55 = vunpack.c.l.b16 %v3513_v0 }
0x115b   :  { %v7653_v20 = vpop.eup %5874  ;;  %v3965_v30 = vmul.f32 1.442695, %v3951_v34 }
0x115c   :  { %v3932_v42 = vpop.xlane.xlu2 %3931  ;;  %v5877_v58 = vpop.eup %5876  ;;  %v3975_v38 = vsel %vm674_vm1, %v7653_v20, 0.0 }
0x115d   :  { %v3948_v59 = vsub.f32 %v7542_v21, %v3932_v42  ;;  %v3506_v19 = vmul.f32 %v5877_v58, %v7536_v8  ;;  %3976 = vadd.xlane.f32.xlu0 %v3975_v38  ;;  %v7660_v24 = vpop.eup %5878 }
0x115e   :  { %v3984_v14 = vsel %vm674_vm1, %v7660_v24, 0.0 }
0x115f   :  { %v3959_v27 = vmul.f32 1.442695, %v3948_v59  ;;  %v3514_v22 = vpack.c.bf16 %v3506_v19, %v3506_v19 }
0x1160   :  { %v3944_v18 = vpop.xlane.xlu1 %3943  ;;  %v4171_v33 = vpop.xlane.xlu0 %4170 }
0x1161   :  { %5880 = vpow2.f32 %v3959_v27  ;;  %v3563_v37 = vunpack.c.l.b16 %v3514_v22  ;;  %v4193_v21 = vsub.f32 %v7546_v16, %v4171_v33  ;;  %v3952_v28 = vsub.f32 %v7550_v9, %v3944_v18 }
0x1162   :  { %5882 = vpow2.f32 %v3965_v30 }
0x1163   :  { %v3565_v5 = vpack.c.b16 %v3563_v37, %v3562_v55  ;;  %v4201_v54 = vmul.f32 1.442695, %v4193_v21  ;;  %v3967_v51 = vmul.f32 1.442695, %v3952_v28 }
0x1164   :  { %v4028_v53 = vpop.permute.xlu2 %4027 }
0x1165   :  { %4043 = vmatpush.bf16.msrb.mxu1 %v4028_v53  ;;  %5296 = vmatmul.msk.bf16.gmra.mxu2 %vm674_vm1, %v3565_v5  ;;  %5884 = vpow2.f32 %v4201_v54 }
0x1166   :  { %3985 = vadd.xlane.f32.xlu0 %v3984_v14 }
0x1167   :  { %v7666_v8 = vpop.eup %5880 }
0x1168   :  { %v3978_v40 = vsel %vm674_vm1, %v7666_v8, 0.0  ;;  %v4174_v46 = vpop.xlane.xlu1 %4173  ;;  %v7670_v39 = vpop.eup %5882 }
0x1169   :  { %3979 = vadd.xlane.f32.xlu1 %v3978_v40  ;;  %v4194_v16 = vsub.f32 %v7556_v13, %v4174_v46  ;;  %v3987_v23 = vsel %vm674_vm1, %v7670_v39, 0.0 }
0x116b   :  { %v4203_v44 = vmul.f32 1.442695, %v4194_v16  ;;  %v7677_v60 = vpop.eup %5884 }
0x116c   :  { %v4217_v17 = vsel %vm674_vm1, %v7677_v60, 0.0 }
0x116d   :  { %5886 = vpow2.f32 %v4203_v44 }
0x116e   :  { %3988 = vadd.xlane.f32.xlu0 %v3987_v23  ;;  %5888 = vpow2.f32 %v3967_v51 }
0x1170   :  { %v4186_v62 = vpop.xlane.xlu0 %4185  ;;  %v4183_v57 = vpop.xlane.xlu1 %4182 }
0x1171   :  { %4275 = vrot.lane.b32.xlu2 %v7354_v1, %s6434_s3  ;;  %v4198_v5 = vsub.f32 %v7562_v41, %v4186_v62 }
0x1173   :  { %v7684_v7 = vpop.eup %5886  ;;  %v4211_v54 = vmul.f32 1.442695, %v4198_v5 }
0x1174   :  { %v4220_v1 = vsel %vm674_vm1, %v7684_v7, 0.0  ;;  %v7688_v9 = vpop.eup %5888 }
0x1175   :  { %v3990_v6 = vsel %vm674_vm1, %v7688_v9, 0.0 }
0x1176   :  { %4218 = vadd.xlane.f32.xlu0 %v4217_v17 }
0x1178   :  { %v4180_v13 = vpop.xlane.xlu0 %4179 }
0x1179   :  { %4313 = vrot.lane.b32.xlu2 %v7372_v52, %s6434_s3  ;;  %v4196_v0 = vsub.f32 %v7569_v25, %v4180_v13 }
0x117b   :  { %v4207_v30 = vmul.f32 1.442695, %v4196_v0 }
0x117d   :  { %v3726_v12 = vpop.xlane.xlu1 %3725 }
0x117e   :  { %4221 = vadd.xlane.f32.xlu0 %v4220_v1  ;;  %5890 = vrcp.f32 %v3726_v12 }
0x1180   :  { %v4189_v63 = vpop.xlane.xlu0 %4188 }
0x1181   :  { %v4199_v46 = vsub.f32 %v7577_v29, %v4189_v63 }
0x1182   :  { %4065 = vrot.lane.b32.xlu1 %v7372_v52, %s6428_s30 }
0x1183   :  { %v4213_v62 = vmul.f32 1.442695, %v4199_v46 }
0x1184   :  { %v5891_v34 = vpop.eup %5890 }
0x1185   :  { %v3754_v42 = vmul.f32 %v5891_v34, %v7575_v61  ;;  %v4197_v61 = vsub.f32 %v7560_v35, %v4183_v57 }
0x1186   :  { %3991 = vadd.xlane.f32.xlu0 %v3990_v6 }
0x1187   :  { %v3762_v38 = vpack.c.bf16 %v3754_v42, %v3754_v42  ;;  %v4209_v25 = vmul.f32 1.442695, %v4197_v61 }
0x1188   :  { %v4192_v15 = vpop.xlane.xlu0 %4191 }
0x1189   :  { %v4200_v4 = vsub.f32 %v7584_v47, %v4192_v15  ;;  %v3774_v27 = vunpack.c.l.b16 %v3762_v38 }
0x118b   :  { %v4215_v58 = vmul.f32 1.442695, %v4200_v4 }
0x1190   :  { %v3723_v2 = vpop.xlane.xlu0 %3722 }
0x1191   :  { %5892 = vrcp.f32 %v3723_v2 }
0x1192   :  { %5894 = vpow2.f32 %v4215_v58 }
0x1193   :  { %5896 = vpow2.f32 %v4207_v30 }
0x1197   :  { %v5893_v59 = vpop.eup %5892 }
0x1198   :  { %v3753_v52 = vmul.f32 %v5893_v59, %v7590_v31  ;;  %v7698_v33 = vpop.eup %5894 }
0x1199   :  { %v4238_v31 = vsel %vm674_vm1, %v7698_v33, 0.0  ;;  %v7705_v21 = vpop.eup %5896 }
0x119a   :  { %v3761_v19 = vpack.c.bf16 %v3753_v52, %v3753_v52  ;;  %v4226_v14 = vsel %vm674_vm1, %v7705_v21, 0.0 }
0x119c   :  { %v3773_v22 = vunpack.c.l.b16 %v3761_v19 }
0x119d   :  { %v4177_v18 = vpop.xlane.xlu2 %4176 }
0x119e   :  { %v3777_v47 = vpack.c.b16 %v3774_v27, %v3773_v22  ;;  %v4195_v55 = vsub.f32 %v7595_v36, %v4177_v18 }
0x11a0   :  { %v4205_v37 = vmul.f32 1.442695, %v4195_v55  ;;  %5301 = vmatmul.msk.bf16.vlgmr.msra.gmra.mxu1 %vm674_vm1, %v3777_v47 }
0x11a2   :  { %5898 = vpow2.f32 %v4205_v37  ;;  %4239 = vadd.xlane.f32.xlu2 %v4238_v31 }
0x11a3   :  { %5900 = vpow2.f32 %v4209_v25 }
0x11a8   :  { %v7707_v53 = vpop.eup %5898  ;;  %v3735_v36 = vpop.xlane.xlu0 %3734 }
0x11a9   :  { %v4223_v35 = vsel %vm674_vm1, %v7707_v53, 0.0  ;;  %5902 = vrcp.f32 %v3735_v36  ;;  %v7714_v40 = vpop.eup %5900 }
0x11aa   :  { %4224 = vadd.xlane.f32.xlu0 %v4223_v35  ;;  %5904 = vpow2.f32 %v4211_v54  ;;  %v4229_v41 = vsel %vm674_vm1, %v7714_v40, 0.0 }
0x11ac   :  { %4227 = vadd.xlane.f32.xlu1 %v4226_v14 }
0x11af   :  { %v5903_v44 = vpop.eup %5902 }
0x11b0   :  { %v3729_v16 = vpop.xlane.xlu0 %3728  ;;  %v3738_v23 = vpop.xlane.xlu1 %3737  ;;  %v3757_v28 = vmul.f32 %v5903_v44, %v7602_v3 }
0x11b1   :  { %5906 = vrcp.f32 %v3738_v23  ;;  %v7720_v17 = vpop.eup %5904 }
0x11b2   :  { %4230 = vadd.xlane.f32.xlu0 %v4229_v41  ;;  %5908 = vrcp.f32 %v3729_v16  ;;  %v3765_v1 = vpack.c.bf16 %v3757_v28, %v3757_v28  ;;  %v4232_v63 = vsel %vm674_vm1, %v7720_v17, 0.0 }
0x11b3   :  { %5910 = vpow2.f32 %v4213_v62 }
0x11b4   :  { %v3811_v15 = vunpack.c.l.b16 %v3765_v1 }
0x11b7   :  { %v5907_v51 = vpop.eup %5906 }
0x11b8   :  { %v3741_v13 = vpop.xlane.xlu0 %3740  ;;  %v3758_v29 = vmul.f32 %v5907_v51, %v7610_v10  ;;  %v3732_v57 = vpop.xlane.xlu1 %3731 }
0x11b9   :  { %v5909_v6 = vpop.eup %5908  ;;  %5912 = vrcp.f32 %v3732_v57 }
0x11ba   :  { %4233 = vadd.xlane.f32.xlu0 %v4232_v63  ;;  %v3766_v12 = vpack.c.bf16 %v3758_v29, %v3758_v29  ;;  %5914 = vrcp.f32 %v3741_v13  ;;  %v3755_v3 = vmul.f32 %v5909_v6, %v7607_v56  ;;  %v7726_v2 = vpop.eup %5910 }
0x11bb   :  { %v4235_v0 = vsel %vm674_vm1, %v7726_v2, 0.0 }
0x11bc   :  { %v3812_v4 = vunpack.c.l.b16 %v3766_v12  ;;  %v3763_v10 = vpack.c.bf16 %v3755_v3, %v3755_v3 }
0x11be   :  { %v3815_v34 = vpack.c.b16 %v3812_v4, %v3811_v15  ;;  %v3775_v27 = vunpack.c.l.b16 %v3763_v10 }
0x11bf   :  { %v5913_v42 = vpop.eup %5912 }
0x11c0   :  { %v3744_v58 = vpop.xlane.xlu0 %3743  ;;  %v5915_v59 = vpop.eup %5914  ;;  %v3756_v38 = vmul.f32 %v5913_v42, %v7618_v32  ;;  %5303 = vmatmul.msk.bf16.vlgmr.msrb.gmra.mxu2 %vm674_vm1, %v3815_v34 }
0x11c1   :  { %5916 = vrcp.f32 %v3744_v58  ;;  %v3971_v52 = vpop.xlane.xlu1 %3970  ;;  %v3759_v56 = vmul.f32 %v5915_v59, %v7620_v48 }
0x11c2   :  { %4236 = vadd.xlane.f32.xlu0 %v4235_v0  ;;  %v3764_v19 = vpack.c.bf16 %v3756_v38, %v3756_v38  ;;  %5918 = vrcp.f32 %v3971_v52 }
0x11c3   :  { %v3767_v47 = vpack.c.bf16 %v3759_v56, %v3759_v56 }
0x11c4   :  { %v3776_v22 = vunpack.c.l.b16 %v3764_v19 }
0x11c5   :  { %v3813_v31 = vunpack.c.l.b16 %v3767_v47 }
0x11c6   :  { %v3778_v18 = vpack.c.b16 %v3776_v22, %v3775_v27 }
0x11c7   :  { %v5917_v30 = vpop.eup %5916 }
0x11c8   :  { %v3760_v55 = vmul.f32 %v5917_v30, %v7632_v49  ;;  %v3974_v32 = vpop.xlane.xlu0 %3973  ;;  %v5919_v61 = vpop.eup %5918  ;;  %5302 = vmatmul.msk.bf16.gmra.mxu1 %vm674_vm1, %v3778_v18 }
0x11c9   :  { %5920 = vrcp.f32 %v3974_v32  ;;  %v4001_v5 = vmul.f32 %v5919_v61, %v7628_v43 }
0x11ca   :  { %v3768_v37 = vpack.c.bf16 %v3760_v55, %v3760_v55 }
0x11cb   :  { %v4009_v14 = vpack.c.bf16 %v4001_v5, %v4001_v5 }
0x11cc   :  { %v3814_v25 = vunpack.c.l.b16 %v3768_v37  ;;  %v3983_v36 = vpop.xlane.xlu2 %3982 }
0x11cd   :  { %v4021_v16 = vunpack.c.l.b16 %v4009_v14 }
0x11ce   :  { %v3816_v35 = vpack.c.b16 %v3814_v25, %v3813_v31 }
0x11cf   :  { %v5921_v48 = vpop.eup %5920 }
0x11d0   :  { %v4002_v54 = vmul.f32 %v5921_v48, %v7642_v50  ;;  %v3977_v46 = vpop.xlane.xlu0 %3976  ;;  %5304 = vmatmul.msk.bf16.gmra.mxu2 %vm674_vm1, %v3816_v35 }
0x11d1   :  { %5922 = vrcp.f32 %v3977_v46 }
0x11d2   :  { %v4010_v49 = vpack.c.bf16 %v4002_v54, %v4002_v54 }
0x11d4   :  { %v4022_v23 = vunpack.c.l.b16 %v4010_v49  ;;  %v4276_v41 = vpop.permute.xlu2 %4275 }
0x11d5   :  { %4291 = vmatpush.bf16.msra.mxu1 %v4276_v41 }
0x11d6   :  { %v4025_v44 = vpack.c.b16 %v4022_v23, %v4021_v16 }
0x11d7   :  { %v5923_v28 = vpop.eup %5922 }
0x11d8   :  { %5309 = vmatmul.msk.bf16.vlgmr.msrb.gmra.mxu1 %vm674_vm1, %v4025_v44  ;;  %v4003_v51 = vmul.f32 %v5923_v28, %v7653_v20 }
0x11d9   :  { %v3986_v62 = vpop.xlane.xlu0 %3985 }
0x11da   :  { %v4011_v1 = vpack.c.bf16 %v4003_v51, %v4003_v51 }
0x11dc   :  { %v3980_v43 = vpop.xlane.xlu1 %3979  ;;  %v4023_v12 = vunpack.c.l.b16 %v4011_v1  ;;  %v4314_v0 = vpop.permute.xlu2 %4313 }
0x11dd   :  { %5924 = vrcp.f32 %v3980_v43 }
0x11de   :  { %5926 = vrcp.f32 %v3986_v62 }
0x11df   :  { %5928 = vrcp.f32 %v3983_v36 }
0x11e1   :  { %v3989_v50 = vpop.xlane.xlu0 %3988 }
0x11e3   :  { %v5925_v13 = vpop.eup %5924 }
0x11e4   :  { %v4004_v29 = vmul.f32 %v5925_v13, %v7666_v8  ;;  %v5927_v57 = vpop.eup %5926 }
0x11e5   :  { %v5929_v6 = vpop.eup %5928  ;;  %v4006_v4 = vmul.f32 %v5927_v57, %v7660_v24 }
0x11e6   :  { %v4012_v63 = vpack.c.bf16 %v4004_v29, %v4004_v29  ;;  %v4005_v42 = vmul.f32 %v5929_v6, %v7648_v11  ;;  %v7746_v11 = vpop.f32.mrf.mxu1 }
0x11e7   :  { %v4014_v20 = vpack.c.bf16 %v4006_v4, %v4006_v4 }
0x11e8   :  { %v4024_v15 = vunpack.c.l.b16 %v4012_v63  ;;  %v4013_v58 = vpack.c.bf16 %v4005_v42, %v4005_v42 }
0x11e9   :  { %v4219_v3 = vpop.xlane.xlu0 %4218  ;;  %v4060_v38 = vunpack.c.l.b16 %v4014_v20 }
0x11ea   :  { %v4026_v34 = vpack.c.b16 %v4024_v15, %v4023_v12  ;;  %5930 = vrcp.f32 %v4219_v3  ;;  %v4059_v8 = vunpack.c.l.b16 %v4013_v58  ;;  %v7765_v3 = vpop.f32.mrf.mxu2 }
0x11ec   :  { %5310 = vmatmul.msk.bf16.gmra.mxu1 %vm674_vm1, %v4026_v34  ;;  %v4063_v24 = vpack.c.b16 %v4060_v38, %v4059_v8 }
0x11ee   :  { %v7752_v5 = vpop.f32.mrf.mxu1 }
0x11f0   :  { %v5931_v10 = vpop.eup %5930 }
0x11f1   :  { %v4222_v59 = vpop.xlane.xlu0 %4221  ;;  %v4249_v19 = vmul.f32 %v5931_v10, %v7677_v60 }
0x11f2   :  { %5932 = vrcp.f32 %v4222_v59  ;;  %v7769_v10 = vpop.f32.mrf.mxu2 }
0x11f3   :  { %5934 = vrcp.f32 %v3989_v50  ;;  %v4257_v27 = vpack.c.bf16 %v4249_v19, %v4249_v19 }
0x11f4   :  { %v4066_v52 = vpop.permute.xlu1 %4065 }
0x11f5   :  { %4081 = vmatpush.bf16.msra.mxu2 %v4066_v52  ;;  %v4269_v32 = vunpack.c.l.b16 %v4257_v27 }
0x11f6   :  { %v7755_v14 = vpop.f32.mrf.mxu1 }
0x11f8   :  { %v5933_v56 = vpop.eup %5932  ;;  %5311 = vmatmul.msk.bf16.vlgmr.msra.gmra.mxu2 %vm674_vm1, %v4063_v24 }
0x11f9   :  { %4329 = vmatpush.bf16.msrb.mxu2 %v4314_v0  ;;  %v4250_v22 = vmul.f32 %v5933_v56, %v7684_v7  ;;  %v3992_v30 = vpop.xlane.xlu0 %3991  ;;  %v5935_v18 = vpop.eup %5934 }
0x11fa   :  { %5936 = vrcp.f32 %v3992_v30  ;;  %v4007_v55 = vmul.f32 %v5935_v18, %v7670_v39  ;;  %v7772_v19 = vpop.f32.mrf.mxu2 }
0x11fb   :  { %v4258_v47 = vpack.c.bf16 %v4250_v22, %v4250_v22 }
0x11fc   :  { %v4015_v31 = vpack.c.bf16 %v4007_v55, %v4007_v55 }
0x11fd   :  { %v4270_v61 = vunpack.c.l.b16 %v4258_v47 }
0x11fe   :  { %v4061_v35 = vunpack.c.l.b16 %v4015_v31  ;;  %v7757_v39 = vpop.f32.mrf.mxu1 }
0x11ff   :  { %v4273_v60 = vpack.c.b16 %v4270_v61, %v4269_v32 }
0x1200   :  { %v5937_v37 = vpop.eup %5936 }
0x1201   :  { %v4008_v25 = vmul.f32 %v5937_v37, %v7688_v9  ;;  %5317 = vmatmul.msk.bf16.vlgmr.msra.gmra.mxu1 %vm674_vm1, %v4273_v60 }
0x1202   :  { %v7775_v30 = vpop.f32.mrf.mxu2 }
0x1203   :  { %v4016_v36 = vpack.c.bf16 %v4008_v25, %v4008_v25 }
0x1205   :  { %v4062_v7 = vunpack.c.l.b16 %v4016_v36 }
0x1207   :  { %v4064_v48 = vpack.c.b16 %v4062_v7, %v4061_v35 }
0x1209   :  { %5312 = vmatmul.msk.bf16.gmra.mxu2 %vm674_vm1, %v4064_v48 }
0x1215   :  { %v4240_v6 = vpop.xlane.xlu2 %4239 }
0x121d   :  { %v3797_v54 = vpop.f32.mrf.mxu1  ;;  %v4225_v46 = vpop.xlane.xlu0 %4224 }
0x121e   :  { %5938 = vrcp.f32 %v4225_v46 }
0x121f   :  { %v4228_v49 = vpop.xlane.xlu1 %4227 }
0x1220   :  { %5940 = vrcp.f32 %v4228_v49 }
0x1224   :  { %v5939_v9 = vpop.eup %5938 }
0x1225   :  { %v4251_v16 = vmul.f32 %v5939_v9, %v7707_v53  ;;  %v3799_v23 = vpop.f32.mrf.mxu1  ;;  %v4231_v41 = vpop.xlane.xlu0 %4230 }
0x1226   :  { %v5941_v44 = vpop.eup %5940  ;;  %v5596_v62 = vpack.i.bf16 %v3799_v23, %v3797_v54  ;;  %5942 = vrcp.f32 %v4231_v41 }
0x1227   :  { %v4259_v43 = vpack.c.bf16 %v4251_v16, %v4251_v16  ;;  %v4252_v28 = vmul.f32 %v5941_v44, %v7705_v21 }
0x1228   :  { %5597 = vrot.lane.b32.xlu0 %v5596_v62, %s7963_s23  ;;  %v5476_v62 = vld [vmem:[#allocation22 + $0x38] sm:$0xff] }
0x1229   :  { %v4260_v51 = vpack.c.bf16 %v4252_v28, %v4252_v28  ;;  %v4271_v50 = vunpack.c.l.b16 %v4259_v43  ;;  %4541 = vmatpush.bf16.msrb.mxu3 %v5476_v62  ;;  %v5475_v28 = vld [vmem:[#allocation22 + $0x30] sm:$0xff] }
0x122b   :  { %v4272_v13 = vunpack.c.l.b16 %v4260_v51  ;;  %v5474_v51 = vld [vmem:[#allocation22 + $0x28] sm:$0xff] }
0x122c   :  { %v5943_v57 = vpop.eup %5942 }
0x122d   :  { %v4234_v1 = vpop.xlane.xlu0 %4233  ;;  %v4274_v29 = vpack.c.b16 %v4272_v13, %v4271_v50  ;;  %v4253_v53 = vmul.f32 %v5943_v57, %v7714_v40  ;;  %4542 = vmatpush.bf16.msrb.mxu3 %v5475_v28  ;;  %v5473_v13 = vld [vmem:[#allocation22 + $0x20] sm:$0xff] }
0x122e   :  { %5944 = vrcp.f32 %v4234_v1 }
0x122f   :  { %5318 = vmatmul.msk.bf16.gmra.mxu1 %vm674_vm1, %v4274_v29  ;;  %v4261_v12 = vpack.c.bf16 %v4253_v53, %v4253_v53  ;;  %v5472_v29 = vld [vmem:[#allocation22 + $0x18] sm:$0xff]  ;;  %v5471_v53 = vld [vmem:[#allocation22 + $0x10] sm:$0xff] }
0x1231   :  { %v4307_v34 = vunpack.c.l.b16 %v4261_v12  ;;  %4543 = vmatpush.bf16.msrb.mxu3 %v5474_v51 }
0x1234   :  { %v5945_v63 = vpop.eup %5944 }
0x1235   :  { %v4254_v15 = vmul.f32 %v5945_v63, %v7720_v17  ;;  %v4237_v21 = vpop.xlane.xlu0 %4236  ;;  %4544 = vmatpush.bf16.msrb.mxu3 %v5473_v13 }
0x1236   :  { %5946 = vrcp.f32 %v4237_v21  ;;  %v5469_v21 = vld [vmem:[#allocation22] sm:$0xff] }
0x1237   :  { %v4262_v4 = vpack.c.bf16 %v4254_v15, %v4254_v15  ;;  %5948 = vrcp.f32 %v4240_v6  ;;  %v5470_v6 = vld [vmem:[#allocation22 + $0x8] sm:$0xff] }
0x1239   :  { %v4308_v42 = vunpack.c.l.b16 %v4262_v4  ;;  %4545 = vmatpush.bf16.msrb.mxu3 %v5472_v29 }
0x123b   :  { %v4311_v20 = vpack.c.b16 %v4308_v42, %v4307_v34 }
0x123c   :  { %v5947_v58 = vpop.eup %5946 }
0x123d   :  { %5319 = vmatmul.msk.bf16.vlgmr.msrb.gmra.mxu2 %vm674_vm1, %v4311_v20  ;;  %v5949_v59 = vpop.eup %5948  ;;  %v4255_v40 = vmul.f32 %v5947_v58, %v7726_v2  ;;  %4546 = vmatpush.bf16.msrb.mxu3 %v5471_v53 }
0x123e   :  { %v4256_v38 = vmul.f32 %v5949_v59, %v7698_v33 }
0x123f   :  { %v4263_v17 = vpack.c.bf16 %v4255_v40, %v4255_v40 }
0x1240   :  { %v4264_v8 = vpack.c.bf16 %v4256_v38, %v4256_v38 }
0x1241   :  { %v4309_v0 = vunpack.c.l.b16 %v4263_v17  ;;  %4547 = vmatpush.bf16.msrb.mxu3 %v5470_v6 }
0x1242   :  { %v4310_v24 = vunpack.c.l.b16 %v4264_v8 }
0x1243   :  { %v3835_v2 = vpop.f32.mrf.mxu2 }
0x1244   :  { %v4312_v56 = vpack.c.b16 %v4310_v24, %v4309_v0 }
0x1245   :  { %v3802_v52 = vpop.f32.mrf.mxu1  ;;  %4548 = vmatpush.bf16.msrb.mxu3 %v5469_v21 }
0x124b   :  { %v3837_v33 = vpop.f32.mrf.mxu2 }
0x124c   :  { %v5626_v32 = vpack.i.bf16 %v3837_v33, %v3835_v2 }
0x124d   :  { %5320 = vmatmul.msk.bf16.gmra.mxu2 %vm674_vm1, %v4312_v56  ;;  %v3804_v27 = vpop.f32.mrf.mxu1 }
0x124e   :  { %v5611_v22 = vpack.i.bf16 %v3804_v27, %v3802_v52 }
0x1253   :  { %v3840_v31 = vpop.f32.mrf.mxu2 }
0x1255   :  { %v4045_v18 = vpop.f32.mrf.mxu1 }
0x125b   :  { %v3842_v35 = vpop.f32.mrf.mxu2 }
0x125c   :  { %v5641_v49 = vpack.i.bf16 %v3842_v35, %v3840_v31 }
0x125d   :  { %v4047_v47 = vpop.f32.mrf.mxu1 }
0x125e   :  { %v5601_v55 = vpack.i.bf16 %v4047_v47, %v4045_v18 }
0x1260   :  { %5602 = vrot.lane.b32.xlu1 %v5601_v55, %s6430_s1 }
0x1268   :  { %5627 = vrot.lane.b32.xlu1 %v5626_v32, %s7963_s23 }
0x1269   :  { %v4050_v61 = vpop.f32.mrf.mxu1 }
0x1271   :  { %v4052_v60 = vpop.f32.mrf.mxu1 }
0x1272   :  { %v5616_v48 = vpack.i.bf16 %v4052_v60, %v4050_v61 }
0x127b   :  { %v4083_v7 = vpop.f32.mrf.mxu2 }
0x127e   :  { %v4293_v37 = vpop.f32.mrf.mxu1 }
0x1283   :  { %v4085_v54 = vpop.f32.mrf.mxu2 }
0x1284   :  { %v5631_v46 = vpack.i.bf16 %v4085_v54, %v4083_v7 }
0x1286   :  { %v4295_v25 = vpop.f32.mrf.mxu1 }
0x1287   :  { %v5606_v36 = vpack.i.bf16 %v4295_v25, %v4293_v37 }
0x1289   :  { %5607 = vrot.lane.b32.xlu0 %v5606_v36, %s6435_s2 }
0x128c   :  { %v4088_v16 = vpop.f32.mrf.mxu2 }
0x1291   :  { %5612 = vrot.lane.b32.xlu0 %v5611_v22, %s7963_s23 }
0x1294   :  { %v4090_v44 = vpop.f32.mrf.mxu2 }
0x1295   :  { %v5646_v63 = vpack.i.bf16 %v4090_v44, %v4088_v16 }
0x1299   :  { %5617 = vrot.lane.b32.xlu0 %v5616_v48, %s6430_s1 }
0x129a   :  { %v5598_v4 = vpop.permute.xlu0 %5597 }
0x129b   :  { %v5600_v42 = vunpack.i.h.bf16 %v5598_v4  ;;  %v5599_v20 = vunpack.i.l.bf16 %v5598_v4 }
0x129d   :  { %v4438_v38 = vsel %vm1812_vm5, %v7752_v5, %v5600_v42  ;;  %v4437_v17 = vsel %vm1812_vm5, %v7746_v11, %v5599_v20 }
0x12a1   :  { %5632 = vrot.lane.b32.xlu0 %v5631_v46, %s6430_s1 }
0x12a9   :  { %5642 = vrot.lane.b32.xlu0 %v5641_v49, %s7963_s23 }
0x12ac   :  { %v4298_v9 = vpop.f32.mrf.mxu1 }
0x12b4   :  { %v4300_v23 = vpop.f32.mrf.mxu1 }
0x12b5   :  { %v5621_v41 = vpack.i.bf16 %v4300_v23, %v4298_v9 }
0x12b7   :  { %5622 = vrot.lane.b32.xlu2 %v5621_v41, %s6435_s2 }
0x12c0   :  { %v4331_v43 = vpop.f32.mrf.mxu2 }
0x12c8   :  { %v4333_v50 = vpop.f32.mrf.mxu2 }
0x12c9   :  { %v5636_v1 = vpack.i.bf16 %v4333_v50, %v4331_v43 }
0x12cb   :  { %5637 = vrot.lane.b32.xlu1 %v5636_v1, %s6435_s2 }
0x12d0   :  { %v4336_v57 = vpop.f32.mrf.mxu2 }
0x12d2   :  { %v5603_v34 = vpop.permute.xlu1 %5602 }
0x12d3   :  { %5647 = vrot.lane.b32.xlu1 %v5646_v63, %s6430_s1  ;;  %v5605_v58 = vunpack.i.h.bf16 %v5603_v34  ;;  %v5604_v59 = vunpack.i.l.bf16 %v5603_v34 }
0x12d5   :  { %v4446_v0 = vsel %vm619_vm0, %v4438_v38, %v5605_v58  ;;  %v4445_v24 = vsel %vm619_vm0, %v4437_v17, %v5604_v59  ;;  %v5974_v58 = vld [vmem:[#allocation5] sm:$0xff]  }
0x12d8   :  { %v4338_v12 = vpop.f32.mrf.mxu2 }
0x12d9   :  { %v5651_v15 = vpack.i.bf16 %v4338_v12, %v4336_v57 }
0x12da   :  { %v5628_v48 = vpop.permute.xlu1 %5627 }
0x12db   :  { %5652 = vrot.lane.b32.xlu0 %v5651_v15, %s6435_s2  ;;  %v5629_v46 = vunpack.i.l.bf16 %v5628_v48 }
0x12dd   :  { %v4441_v23 = vsel %vm1812_vm5, %v7765_v3, %v5629_v46  ;;  %v5977_v46 = vld [vmem:[#allocation5 + $0x18] sm:$0xff]  }
0x12fb   :  { %v5608_v40 = vpop.permute.xlu0 %5607 }
0x12fc   :  { %v5610_v8 = vunpack.i.h.bf16 %v5608_v40  ;;  %v5609_v52 = vunpack.i.l.bf16 %v5608_v40 }
0x12fe   :  { %v4453_v56 = vsel %vm2548_vm3, %v4445_v24, %v5609_v52  ;;  %v4454_v27 = vsel %vm2548_vm3, %v4446_v0, %v5610_v8  ;;  %v5488_v8 = vunpack.c.h.bf16 %v5974_v58 }
0x12ff   :  { %v5354_v22 = vpack.c.bf16 %v4454_v27, %v4453_v56  ;;  %v5491_v27 = vunpack.c.l.bf16 %v5975_v45 }
0x1301   :  { %5355 = vmatmul.msk.bf16.vlgmr.msrb.gmra.mxu3 %vm7232_vm6, %v5354_v22 }
0x1303   :  { %v5613_v18 = vpop.permute.xlu0 %5612 }
0x1304   :  { %v5615_v5 = vunpack.i.h.bf16 %v5613_v18  ;;  %v5614_v47 = vunpack.i.l.bf16 %v5613_v18 }
0x1306   :  { %v4440_v32 = vsel %vm1812_vm5, %v7757_v39, %v5615_v5  ;;  %v4439_v61 = vsel %vm1812_vm5, %v7755_v14, %v5614_v47  ;;  %v5630_v39 = vunpack.i.h.bf16 %v5628_v48  ;;  %v5492_v47 = vunpack.c.h.bf16 %v5975_v45 }
0x1308   :  { %v4442_v16 = vsel %vm1812_vm5, %v7769_v10, %v5630_v39 }
0x130b   :  { %v5618_v2 = vpop.permute.xlu0 %5617 }
0x130c   :  { %v5620_v55 = vunpack.i.h.bf16 %v5618_v2  ;;  %v5619_v11 = vunpack.i.l.bf16 %v5618_v2 }
0x130e   :  { %v4447_v31 = vsel %vm619_vm0, %v4439_v61, %v5619_v11  ;;  %v4448_v25 = vsel %vm619_vm0, %v4440_v32, %v5620_v55  ;;  %v5976_v61 = vld [vmem:[#allocation5 + $0x10] sm:$0xff]  }
0x1311   :  { %v5623_v33 = vpop.permute.xlu2 %5622 }
0x1312   :  { %v5625_v60 = vunpack.i.h.bf16 %v5623_v33  ;;  %v5624_v37 = vunpack.i.l.bf16 %v5623_v33 }
0x1313   :  { %v5633_v54 = vpop.permute.xlu0 %5632 }
0x1314   :  { %v4456_v36 = vsel %vm2548_vm3, %v4448_v25, %v5625_v60  ;;  %v4455_v35 = vsel %vm2548_vm3, %v4447_v31, %v5624_v37  ;;  %v5635_v49 = vunpack.i.h.bf16 %v5633_v54  ;;  %v5634_v14 = vunpack.i.l.bf16 %v5633_v54 }
0x1315   :  { %v5357_v7 = vpack.c.bf16 %v4456_v36, %v4455_v35  ;;  %v5495_v60 = vunpack.c.l.bf16 %v5976_v61  ;;  %v5496_v35 = vunpack.c.h.bf16 %v5976_v61 }
0x1316   :  { %v4449_v62 = vsel %vm619_vm0, %v4441_v23, %v5634_v14  ;;  %v4450_v43 = vsel %vm619_vm0, %v4442_v16, %v5635_v49  ;;  %v5499_v49 = vunpack.c.l.bf16 %v5977_v46 }
0x1317   :  { %5358 = vmatmul.msk.bf16.gmra.mxu3 %vm7232_vm6, %v5357_v7 }
0x131b   :  { %v5643_v13 = vpop.permute.xlu0 %5642 }
0x131c   :  { %v5645_v10 = vunpack.i.h.bf16 %v5643_v13  ;;  %v5644_v29 = vunpack.i.l.bf16 %v5643_v13 }
0x131e   :  { %v4444_v63 = vsel %vm1812_vm5, %v7775_v30, %v5645_v10  ;;  %v4443_v6 = vsel %vm1812_vm5, %v7772_v19, %v5644_v29  ;;  %v5669_v30 = vld [vmem:[%s7938_s13] ss:$0 sm:$0xff]  ;;  %v5487_v19 = vunpack.c.l.bf16 %v5974_v58 }
0x133d   :  { %v5638_v9 = vpop.permute.xlu1 %5637 }
0x133e   :  { %v5640_v41 = vunpack.i.h.bf16 %v5638_v9  ;;  %v5639_v44 = vunpack.i.l.bf16 %v5638_v9 }
0x1340   :  { %v4457_v28 = vsel %vm2548_vm3, %v4449_v62, %v5639_v44  ;;  %v4458_v51 = vsel %vm2548_vm3, %v4450_v43, %v5640_v41  ;;  %v5500_v41 = vunpack.c.h.bf16 %v5977_v46 }
0x1341   :  { %v5360_v50 = vpack.c.bf16 %v4458_v51, %v4457_v28 }
0x1343   :  { %5361 = vmatmul.msk.bf16.gmra.mxu3 %vm7232_vm6, %v5360_v50 }
0x1345   :  { %v5648_v1 = vpop.permute.xlu1 %5647 }
0x1346   :  { %v5650_v57 = vunpack.i.h.bf16 %v5648_v1  ;;  %v5649_v3 = vunpack.i.l.bf16 %v5648_v1 }
0x1348   :  { %v4452_v21 = vsel %vm619_vm0, %v4444_v63, %v5650_v57  ;;  %v4451_v4 = vsel %vm619_vm0, %v4443_v6, %v5649_v3 }
0x134d   :  { %v5653_v53 = vpop.permute.xlu0 %5652 }
0x134e   :  { %v5655_v12 = vunpack.i.h.bf16 %v5653_v53  ;;  %v5654_v15 = vunpack.i.l.bf16 %v5653_v53 }
0x1350   :  { %v4459_v34 = vsel %vm2548_vm3, %v4451_v4, %v5654_v15  ;;  %v4460_v42 = vsel %vm2548_vm3, %v4452_v21, %v5655_v12 }
0x1351   :  { %v5363_v20 = vpack.c.bf16 %v4460_v42, %v4459_v34 }
0x1353   :  { %5364 = vmatmul.msk.bf16.gmra.mxu3 %vm7232_vm6, %v5363_v20 }
0x1384   :  { %v4550_v59 = vpop.f32.mrf.mxu3 }
0x1385   :  { %v4551_v40 = vadd.f32 %v5669_v30, %v4550_v59 }
0x1387   :  { %v4570_v38 = vadd.f32 %v5487_v19, %v4551_v40 }
0x1389   :  { %v4578_v17 = vmul.f32 %v6875_v26, %v4570_v38 }
0x138b   :  { %4586 = vadd.xlane.f32.xlu2 %v4578_v17 }
0x138c   :  { %v4552_v52 = vpop.f32.mrf.mxu3 }
0x138d   :  { %v4553_v0 = vadd.f32 %v5669_v30, %v4552_v52 }
0x138f   :  { %v4571_v24 = vadd.f32 %v5488_v8, %v4553_v0 }
0x1391   :  { %v4579_v56 = vmul.f32 %v6875_v26, %v4571_v24 }
0x1393   :  { %4588 = vadd.xlane.f32.xlu1 %v4579_v56 }
0x139a   :  { %v4555_v22 = vpop.f32.mrf.mxu3 }
0x139b   :  { %v4556_v18 = vadd.f32 %v5669_v30, %v4555_v22 }
0x139d   :  { %v4572_v2 = vadd.f32 %v5491_v27, %v4556_v18 }
0x139f   :  { %v4580_v5 = vmul.f32 %v6875_v26, %v4572_v2 }
0x13a1   :  { %4590 = vadd.xlane.f32.xlu0 %v4580_v5 }
0x13a2   :  { %v4557_v55 = vpop.f32.mrf.mxu3 }
0x13a3   :  { %v4558_v11 = vadd.f32 %v5669_v30, %v4557_v55 }
0x13a5   :  { %v4573_v33 = vadd.f32 %v5492_v47, %v4558_v11 }
0x13a7   :  { %v4581_v32 = vmul.f32 %v6875_v26, %v4573_v33 }
0x13a9   :  { %4592 = vadd.xlane.f32.xlu2 %v4581_v32 }
0x13c6   :  { %v4560_v37 = vpop.f32.mrf.mxu3 }
0x13c7   :  { %v4561_v31 = vadd.f32 %v5669_v30, %v4560_v37 }
0x13c9   :  { %v4574_v25 = vadd.f32 %v5495_v60, %v4561_v31 }
0x13cb   :  { %v4582_v36 = vmul.f32 %v6875_v26, %v4574_v25 }
0x13cd   :  { %4594 = vadd.xlane.f32.xlu1 %v4582_v36 }
0x13ce   :  { %v4562_v7 = vpop.f32.mrf.mxu3 }
0x13cf   :  { %v4563_v48 = vadd.f32 %v5669_v30, %v4562_v7 }
0x13d1   :  { %v4575_v54 = vadd.f32 %v5496_v35, %v4563_v48 }
0x13d3   :  { %v4583_v39 = vmul.f32 %v6875_v26, %v4575_v54 }
0x13d5   :  { %4596 = vadd.xlane.f32.xlu0 %v4583_v39 }
0x13d6   :  { %v4565_v14 = vpop.f32.mrf.mxu3 }
0x13d7   :  { %v4566_v9 = vadd.f32 %v5669_v30, %v4565_v14 }
0x13d9   :  { %v4576_v16 = vadd.f32 %v5499_v49, %v4566_v9  ;;  %v5978_v49 = vld [vmem:[%s7943_s18] sm:$0xf]  ;;  %s6438_s18 = smov [#allocation27]  }
0x13da   :  { %v7888_v14 = vperm.slane %v5978_v49, 3 }
0x13db   :  { %v4584_v23 = vmul.f32 %v6875_v26, %v4576_v16 }
0x13dd   :  { %4598 = vadd.xlane.f32.xlu2 %v4584_v23 }
0x13de   :  { %v4567_v44 = vpop.f32.mrf.mxu3 }
0x13df   :  { %v4568_v62 = vadd.f32 %v5669_v30, %v4567_v44 }
0x13e1   :  { %v4577_v43 = vadd.f32 %v5500_v41, %v4568_v62  ;;  %v5979_v41 = vld [vmem:[%s7944_s19] sm:$0xf]  ;;  %s4801_s19 = sshll.u32 %s6438_s18, 4  ;;  %s4802_s19 = int_to_ptr.vmem [resolvable:$true] %s4801_s19 }
0x13e2   :  { %v7893_v44 = vperm.slane %v5979_v41, 3 }
0x13e3   :  { %v4585_v28 = vmul.f32 %v6875_v26, %v4577_v43 }
0x13e5   :  { %4600 = vadd.xlane.f32.xlu1 %v4585_v28 }
0x13fe   :  { %v4587_v51 = vpop.xlane.xlu2 %4586 }
0x13ff   :  { %v4602_v50 = vmul.f32 0.03125, %v4587_v51 }
0x1401   :  { %v4610_v13 = vsub.f32 %v4578_v17, %v4602_v50 }
0x1403   :  { %v7840_v1 = vmul.f32 %v6875_v26, %v4610_v13 }
0x1405   :  { %v4626_v10 = vmul.f32 %v7840_v1, %v7840_v1 }
0x1406   :  { %v4589_v29 = vpop.xlane.xlu1 %4588 }
0x1407   :  { %v4603_v57 = vmul.f32 0.03125, %v4589_v29  ;;  %4634 = vadd.xlane.f32.xlu0 %v4626_v10 }
0x1409   :  { %v4611_v3 = vsub.f32 %v4579_v56, %v4603_v57 }
0x140b   :  { %v7845_v53 = vmul.f32 %v6875_v26, %v4611_v3 }
0x140d   :  { %v4627_v63 = vmul.f32 %v7845_v53, %v7845_v53 }
0x140f   :  { %4636 = vadd.xlane.f32.xlu2 %v4627_v63 }
0x1414   :  { %v4591_v6 = vpop.xlane.xlu0 %4590 }
0x1415   :  { %v4604_v12 = vmul.f32 0.03125, %v4591_v6 }
0x1417   :  { %v4612_v15 = vsub.f32 %v4580_v5, %v4604_v12 }
0x1419   :  { %v7850_v21 = vmul.f32 %v6875_v26, %v4612_v15 }
0x141b   :  { %v4628_v4 = vmul.f32 %v7850_v21, %v7850_v21 }
0x141c   :  { %v4593_v34 = vpop.xlane.xlu2 %4592 }
0x141d   :  { %v4605_v42 = vmul.f32 0.03125, %v4593_v34  ;;  %4638 = vadd.xlane.f32.xlu1 %v4628_v4 }
0x141f   :  { %v4613_v20 = vsub.f32 %v4581_v32, %v4605_v42 }
0x1421   :  { %v7855_v30 = vmul.f32 %v6875_v26, %v4613_v20 }
0x1423   :  { %v4629_v58 = vmul.f32 %v7855_v30, %v7855_v30 }
0x1425   :  { %4640 = vadd.xlane.f32.xlu0 %v4629_v58 }
0x1440   :  { %v4595_v19 = vpop.xlane.xlu1 %4594 }
0x1441   :  { %v4606_v59 = vmul.f32 0.03125, %v4595_v19 }
0x1443   :  { %v4614_v40 = vsub.f32 %v4582_v36, %v4606_v59 }
0x1445   :  { %v7860_v38 = vmul.f32 %v6875_v26, %v4614_v40 }
0x1447   :  { %v4630_v17 = vmul.f32 %v7860_v38, %v7860_v38 }
0x1448   :  { %v4597_v8 = vpop.xlane.xlu0 %4596 }
0x1449   :  { %v4607_v52 = vmul.f32 0.03125, %v4597_v8  ;;  %4642 = vadd.xlane.f32.xlu2 %v4630_v17 }
0x144b   :  { %v4615_v0 = vsub.f32 %v4583_v39, %v4607_v52 }
0x144d   :  { %v7865_v24 = vmul.f32 %v6875_v26, %v4615_v0 }
0x144f   :  { %v4631_v56 = vmul.f32 %v7865_v24, %v7865_v24 }
0x1450   :  { %v4599_v45 = vpop.xlane.xlu2 %4598 }
0x1451   :  { %v4608_v27 = vmul.f32 0.03125, %v4599_v45  ;;  %4644 = vadd.xlane.f32.xlu1 %v4631_v56 }
0x1453   :  { %v4616_v22 = vsub.f32 %v4584_v23, %v4608_v27 }
0x1455   :  { %v7870_v18 = vmul.f32 %v6875_v26, %v4616_v22 }
0x1457   :  { %v4632_v2 = vmul.f32 %v7870_v18, %v7870_v18 }
0x1458   :  { %v4601_v5 = vpop.xlane.xlu1 %4600 }
0x1459   :  { %v4609_v47 = vmul.f32 0.03125, %v4601_v5  ;;  %4646 = vadd.xlane.f32.xlu0 %v4632_v2 }
0x145b   :  { %v4617_v55 = vsub.f32 %v4585_v28, %v4609_v47 }
0x145d   :  { %v7875_v11 = vmul.f32 %v6875_v26, %v4617_v55 }
0x145f   :  { %v4633_v33 = vmul.f32 %v7875_v11, %v7875_v11 }
0x1461   :  { %4648 = vadd.xlane.f32.xlu2 %v4633_v33 }
0x147a   :  { %v4635_v32 = vpop.xlane.xlu0 %4634 }
0x147b   :  { %v4650_v26 = vmul.f32 0.03125, %v4635_v32 }
0x147d   :  { %v4658_v61 = vadd.f32 1e-05, %v4650_v26 }
0x147f   :  { %5950 = vrsqrt.f32 %v4658_v61  ;;  %vm4672_vm1 = vweird.f32 %v4658_v61 }
0x1482   :  { %v4637_v60 = vpop.xlane.xlu2 %4636 }
0x1483   :  { %v4651_v37 = vmul.f32 0.03125, %v4637_v60 }
0x1485   :  { %v5951_v31 = vpop.eup %5950  ;;  %v4659_v25 = vadd.f32 1e-05, %v4651_v37 }
0x1486   :  { %v4667_v36 = vmul.f32 %v5951_v31, %v4658_v61  ;;  %vm4673_vm0 = vweird.f32 %v5951_v31 }
0x1487   :  { %5952 = vrsqrt.f32 %v4659_v25  ;;  %vm4674_vm5 = vmor %vm4672_vm1, %vm4673_vm0  ;;  %vm4682_vm6 = vweird.f32 %v4659_v25 }
0x1488   :  { %v4668_v35 = vmul.f32 %v5951_v31, %v4667_v36 }
0x148a   :  { %v4669_v7 = vmul.f32 0.5, %v4668_v35 }
0x148c   :  { %v4670_v48 = vsub.f32 1.5, %v4669_v7 }
0x148d   :  { %v5953_v54 = vpop.eup %5952 }
0x148e   :  { %v4671_v39 = vmul.f32 %v5951_v31, %v4670_v48  ;;  %v4677_v46 = vmul.f32 %v5953_v54, %v4659_v25  ;;  %vm4683_vm3 = vweird.f32 %v5953_v54 }
0x148f   :  { %vm4684_vm9 = vmor %vm4682_vm6, %vm4683_vm3 }
0x1490   :  { %v4675_v9 = vsel %vm4674_vm5, %v5951_v31, %v4671_v39  ;;  %v4678_v16 = vmul.f32 %v5953_v54, %v4677_v46  ;;  %v4639_v23 = vpop.xlane.xlu1 %4638 }
0x1491   :  { %v4746_v62 = vmul.f32 %v4675_v9, %v7840_v1  ;;  %v4652_v43 = vmul.f32 0.03125, %v4639_v23 }
0x1492   :  { %v4679_v28 = vmul.f32 0.5, %v4678_v16 }
0x1493   :  { %v4755_v51 = vmul.f32 %v7888_v14, %v4746_v62  ;;  %v4660_v50 = vadd.f32 1e-05, %v4652_v43 }
0x1494   :  { %v4680_v13 = vsub.f32 1.5, %v4679_v28 }
0x1495   :  { %v4764_v10 = vadd.f32 %v7893_v44, %v4755_v51  ;;  %5954 = vrsqrt.f32 %v4660_v50  ;;  %vm4692_vm11 = vweird.f32 %v4660_v50 }
0x1496   :  { %v4681_v29 = vmul.f32 %v5953_v54, %v4680_v13 }
0x1497   :  { %4776 = vst [vmem:[#allocation27] sm:$0xff] %v4764_v10 }
0x1498   :  { %v4685_v57 = vsel %vm4684_vm9, %v5953_v54, %v4681_v29  ;;  %v4641_v3 = vpop.xlane.xlu0 %4640 }
0x1499   :  { %v4747_v63 = vmul.f32 %v4685_v57, %v7845_v53  ;;  %v4653_v6 = vmul.f32 0.03125, %v4641_v3 }
0x149b   :  { %v5955_v1 = vpop.eup %5954  ;;  %v4756_v12 = vmul.f32 %v7888_v14, %v4747_v63  ;;  %v4661_v15 = vadd.f32 1e-05, %v4653_v6 }
0x149c   :  { %v4687_v4 = vmul.f32 %v5955_v1, %v4660_v50  ;;  %vm4693_vm10 = vweird.f32 %v5955_v1 }
0x149d   :  { %v4765_v34 = vadd.f32 %v7893_v44, %v4756_v12  ;;  %5956 = vrsqrt.f32 %v4661_v15  ;;  %vm4694_vm12 = vmor %vm4692_vm11, %vm4693_vm10  ;;  %vm4702_vm14 = vweird.f32 %v4661_v15 }
0x149e   :  { %v4688_v42 = vmul.f32 %v5955_v1, %v4687_v4 }
0x149f   :  { %4777 = vst [vmem:[#allocation27 + $0x8] sm:$0xff] %v4765_v34 }
0x14a0   :  { %v4689_v20 = vmul.f32 0.5, %v4688_v42 }
0x14a2   :  { %v4690_v58 = vsub.f32 1.5, %v4689_v20 }
0x14a3   :  { %v5957_v19 = vpop.eup %5956 }
0x14a4   :  { %v4691_v59 = vmul.f32 %v5955_v1, %v4690_v58  ;;  %v4697_v40 = vmul.f32 %v5957_v19, %v4661_v15  ;;  %vm4703_vm13 = vweird.f32 %v5957_v19 }
0x14a5   :  { %vm4704_vm15 = vmor %vm4702_vm14, %vm4703_vm13 }
0x14a6   :  { %v4695_v53 = vsel %vm4694_vm12, %v5955_v1, %v4691_v59  ;;  %v4698_v17 = vmul.f32 %v5957_v19, %v4697_v40 }
0x14a7   :  { %v4748_v8 = vmul.f32 %v4695_v53, %v7850_v21 }
0x14a8   :  { %v4699_v52 = vmul.f32 0.5, %v4698_v17 }
0x14a9   :  { %v4757_v0 = vmul.f32 %v7888_v14, %v4748_v8 }
0x14aa   :  { %v4700_v56 = vsub.f32 1.5, %v4699_v52 }
0x14ab   :  { %v4766_v45 = vadd.f32 %v7893_v44, %v4757_v0 }
0x14ac   :  { %v4701_v27 = vmul.f32 %v5957_v19, %v4700_v56 }
0x14ad   :  { %4778 = vst [vmem:[#allocation27 + $0x10] sm:$0xff] %v4766_v45 }
0x14ae   :  { %v4705_v22 = vsel %vm4704_vm15, %v5957_v19, %v4701_v27 }
0x14af   :  { %v4749_v2 = vmul.f32 %v4705_v22, %v7855_v30 }
0x14b1   :  { %v4758_v5 = vmul.f32 %v7888_v14, %v4749_v2 }
0x14b3   :  { %v4767_v47 = vadd.f32 %v7893_v44, %v4758_v5 }
0x14b5   :  { %4779 = vst [vmem:[#allocation27 + $0x18] sm:$0xff] %v4767_v47 }
0x14bc   :  { %v4643_v21 = vpop.xlane.xlu2 %4642 }
0x14bd   :  { %v4654_v55 = vmul.f32 0.03125, %v4643_v21 }
0x14bf   :  { %v4662_v33 = vadd.f32 1e-05, %v4654_v55 }
0x14c1   :  { %5958 = vrsqrt.f32 %v4662_v33  ;;  %vm4712_vm4 = vweird.f32 %v4662_v33 }
0x14c4   :  { %v4645_v32 = vpop.xlane.xlu1 %4644 }
0x14c5   :  { %v4655_v26 = vmul.f32 0.03125, %v4645_v32 }
0x14c7   :  { %v5959_v61 = vpop.eup %5958  ;;  %v4663_v60 = vadd.f32 1e-05, %v4655_v26 }
0x14c8   :  { %v4707_v37 = vmul.f32 %v5959_v61, %v4662_v33  ;;  %vm4713_vm2 = vweird.f32 %v5959_v61 }
0x14c9   :  { %5960 = vrsqrt.f32 %v4663_v60  ;;  %vm4714_vm7 = vmor %vm4712_vm4, %vm4713_vm2  ;;  %vm4722_vm0 = vweird.f32 %v4663_v60 }
0x14ca   :  { %v4708_v31 = vmul.f32 %v5959_v61, %v4707_v37 }
0x14cc   :  { %v4709_v25 = vmul.f32 0.5, %v4708_v31  ;;  %v4647_v36 = vpop.xlane.xlu0 %4646 }
0x14cd   :  { %v4656_v35 = vmul.f32 0.03125, %v4647_v36 }
0x14ce   :  { %v4710_v30 = vsub.f32 1.5, %v4709_v25 }
0x14cf   :  { %v5961_v7 = vpop.eup %5960  ;;  %v4664_v48 = vadd.f32 1e-05, %v4656_v35 }
0x14d0   :  { %v4711_v54 = vmul.f32 %v5959_v61, %v4710_v30  ;;  %v4717_v39 = vmul.f32 %v5961_v7, %v4663_v60  ;;  %vm4723_vm8 = vweird.f32 %v5961_v7 }
0x14d1   :  { %5962 = vrsqrt.f32 %v4664_v48  ;;  %vm4724_vm1 = vmor %vm4722_vm0, %vm4723_vm8  ;;  %vm4732_vm3 = vweird.f32 %v4664_v48 }
0x14d2   :  { %v4715_v46 = vsel %vm4714_vm7, %v5959_v61, %v4711_v54  ;;  %v4718_v49 = vmul.f32 %v5961_v7, %v4717_v39 }
0x14d3   :  { %v4750_v9 = vmul.f32 %v4715_v46, %v7860_v38 }
0x14d4   :  { %v4719_v16 = vmul.f32 0.5, %v4718_v49  ;;  %v4649_v23 = vpop.xlane.xlu2 %4648 }
0x14d5   :  { %v4759_v41 = vmul.f32 %v7888_v14, %v4750_v9  ;;  %v4657_v62 = vmul.f32 0.03125, %v4649_v23 }
0x14d6   :  { %v4720_v43 = vsub.f32 1.5, %v4719_v16 }
0x14d7   :  { %v5963_v28 = vpop.eup %5962  ;;  %v4768_v51 = vadd.f32 %v7893_v44, %v4759_v41  ;;  %v4665_v50 = vadd.f32 1e-05, %v4657_v62 }
0x14d8   :  { %v4721_v13 = vmul.f32 %v5961_v7, %v4720_v43  ;;  %v4727_v10 = vmul.f32 %v5963_v28, %v4664_v48  ;;  %vm4733_vm5 = vweird.f32 %v5963_v28 }
0x14d9   :  { %4780 = vst [vmem:[#allocation27 + $0x20] sm:$0xff] %v4768_v51  ;;  %5964 = vrsqrt.f32 %v4665_v50  ;;  %vm4734_vm6 = vmor %vm4732_vm3, %vm4733_vm5  ;;  %vm4742_vm10 = vweird.f32 %v4665_v50 }
0x14da   :  { %v4725_v29 = vsel %vm4724_vm1, %v5961_v7, %v4721_v13  ;;  %v4728_v57 = vmul.f32 %v5963_v28, %v4727_v10 }
0x14db   :  { %v4751_v38 = vmul.f32 %v4725_v29, %v7865_v24 }
0x14dc   :  { %v4729_v3 = vmul.f32 0.5, %v4728_v57 }
0x14dd   :  { %v4760_v63 = vmul.f32 %v7888_v14, %v4751_v38 }
0x14de   :  { %v4730_v6 = vsub.f32 1.5, %v4729_v3 }
0x14df   :  { %v5965_v1 = vpop.eup %5964  ;;  %v4769_v12 = vadd.f32 %v7893_v44, %v4760_v63 }
0x14e0   :  { %v4731_v15 = vmul.f32 %v5963_v28, %v4730_v6  ;;  %v4737_v4 = vmul.f32 %v5965_v1, %v4665_v50  ;;  %vm4743_vm9 = vweird.f32 %v5965_v1 }
0x14e1   :  { %4781 = vst [vmem:[#allocation27 + $0x28] sm:$0xff] %v4769_v12  ;;  %vm4744_vm11 = vmor %vm4742_vm10, %vm4743_vm9 }
0x14e2   :  { %v4735_v34 = vsel %vm4734_vm6, %v5963_v28, %v4731_v15  ;;  %v4738_v42 = vmul.f32 %v5965_v1, %v4737_v4 }
0x14e3   :  { %v4752_v20 = vmul.f32 %v4735_v34, %v7870_v18 }
0x14e4   :  { %v4739_v58 = vmul.f32 0.5, %v4738_v42 }
0x14e5   :  { %v4761_v24 = vmul.f32 %v7888_v14, %v4752_v20 }
0x14e6   :  { %v4740_v19 = vsub.f32 1.5, %v4739_v58 }
0x14e7   :  { %v4770_v59 = vadd.f32 %v7893_v44, %v4761_v24 }
0x14e8   :  { %v4741_v40 = vmul.f32 %v5965_v1, %v4740_v19 }
0x14e9   :  { %4782 = vst [vmem:[#allocation27 + $0x30] sm:$0xff] %v4770_v59 }
0x14ea   :  { %v4745_v53 = vsel %vm4744_vm11, %v5965_v1, %v4741_v40 }
0x14eb   :  { %v4753_v17 = vmul.f32 %v4745_v53, %v7875_v11 }
0x14ed   :  { %v4762_v18 = vmul.f32 %v7888_v14, %v4753_v17 }
0x14ef   :  { %v4771_v8 = vadd.f32 %v7893_v44, %v4762_v18 }
0x14f1   :  { %4783 = vst [vmem:[#allocation27 + $0x38] sm:$0xff] %v4771_v8 }
0x14f2   :  { %4809 = dma.vmem_to_hbm [thread:$0]  %s4802_s19, 1024, %s4804_s7, [#allocation28], %s6437_s28, %s6437_s28, %s6430_s1  }
0x14f3   :  { %6404 = dma.done.wait [#allocation4], 512  }
0x14f4   :  { %6405 = vsyncadd [#allocation4], 4294966784 }
0x14f5   :  { %6406 = dma.done.wait [#allocation28], 1024  }
0x14f6   :  { %6407 = vsyncadd [#allocation28], 4294966272 }
0x14f7   :  { %4818 = vsyncpa [#allocation3], 1 }
0x14f8   :  { %4819 = vsyncpa [#allocation6], 1 }
0x14f9   :  { %4820 = vsyncpa [#allocation9], 1 }
0x14fa   :  { %4821 = vsyncpa [#allocation12], 1 }
0x14fb   :  { %4822 = vsyncpa [#allocation15], 1 }
0x14fc   :  { %4823 = vsyncpa [#allocation18], 1 }
0x14fd   :  { %4824 = vsyncpa [#allocation21], 1 }
0x14fe   :  { %4825 = vsyncpa [#allocation24], 1 }
0x14ff   :  { %4826 = vsyncpa [#allocation4], 1 }
0x1500   :  { %4827 = vsyncpa [#allocation28], 1 }

</bundles_post_ra>
